<compile_context>
chip_gen: v7x
topology: tpu7x:2x2x1
jax: 0.10.0
libtpu: 0.0.40
codegen_flags: <defaults>
</compile_context>

<pallas_src>
import jax
import jax.numpy as jnp
from jax.experimental import pallas as pl
from jax.experimental.pallas import tpu as pltpu


# ------------------------------ Pallas kernel ------------------------------ #

def _residual_block_kernel(x_ref, w1_ref, s1_ref, b1_ref,
                           w2t_ref, s2_ref, b2_ref,
                           out_ref, pad_ref, col_ref):
    """Fused (conv3x3+BN+ReLU) -> (conv3x3+BN) -> +x -> ReLU, one image/step.

    Ref shapes (C = channels, HW = H*W):
      x_ref, out_ref : (1, C, HW)    channel-major, lane dim = HW (lane-dense)
      w1_ref         : (9C, C)       im2col weight, tap-major then c_in
      w2t_ref        : (C, 9C)       stage-2 weight, pre-transposed on host
      s1_ref, b1_ref : (1, C)        folded BN1 scale / bias
      s2_ref, b2_ref : (C, 1)        folded BN2 scale / bias (channel-major)
      pad_ref        : (H+2, W+2, C) f32 VMEM scratch ('SAME' zero halo)
      col_ref        : (HW, 9C)      f32 VMEM scratch (im2col patch matrix)
    """
    Hp, Wp, C = pad_ref.shape
    H, W = Hp - 2, Wp - 2
    HW = H * W

    x_cm = x_ref[0].astype(jnp.float32)          # (C, HW) residual / output layout
    x_hwc = x_cm.T                               # (HW, C) one small in-kernel
                                                 # transpose (replaces a host
                                                 # NCHW->NHWC HBM pass)

    # In-kernel zero padding: halo zeroed once; only the interior is
    # (re)written per stage, so borders stay zero for both convolutions.
    pad_ref[...] = jnp.zeros_like(pad_ref)
    pad_ref[1:H + 1, 1:W + 1, :] = x_hwc.reshape(H, W, C)

    def im2col():
        # 9 shifted taps -> one (HW, 9C) patch matrix in VMEM.
        xp = pad_ref[...]                        # (H+2, W+2, C)
        for t in range(9):
            kh, kw = divmod(t, 3)
            patch = xp[kh:kh + H, kw:kw + W, :]  # (H, W, C)
            col_ref[:, t * C:(t + 1) * C] = patch.reshape(HW, C)
        return col_ref[...]                      # (HW, 9C)

    # ---- Stage 1: conv1 + bn1 + relu (single matmul, K = 9C) ---- #
    col = im2col()
    h = jnp.dot(col, w1_ref[...], preferred_element_type=jnp.float32)   # (HW, C)
    h = jnp.maximum(h * s1_ref[...] + b1_ref[...], 0.0)
    pad_ref[1:H + 1, 1:W + 1, :] = h.reshape(H, W, C)   # h stays in VMEM

    # ---- Stage 2: conv2 + bn2 + residual + relu, channel-major output ---- #
    col = im2col()
    # (C, 9C) . (HW, 9C)^T -> (C, HW): contract trailing dims of both operands
    # (MXU-native "rhs transposed" matmul, no data transpose needed).
    y = jax.lax.dot_general(w2t_ref[...], col,
                            dimension_numbers=(((1,), (1,)), ((), ())),
                            preferred_element_type=jnp.float32)         # (C, HW)
    y = jnp.maximum(y * s2_ref[...] + b2_ref[...] + x_cm, 0.0)

    out_ref[0] = y.astype(out_ref.dtype)         # lane-dense store (last dim = HW)


# ------------------------------ host wrapper ------------------------------- #

def _residual_block_pallas(x_flat, w1m, s1, b1, w2t, s2, b2, *, H, W):
    N, C, HW = x_flat.shape
    assert HW == H * W

    img_spec = pl.BlockSpec((1, C, HW), lambda n: (n, 0, 0))

    def const2d(shape):
        return pl.BlockSpec(shape, lambda n: (0, 0))

    return pl.pallas_call(
        _residual_block_kernel,
        out_shape=jax.ShapeDtypeStruct((N, C, HW), x_flat.dtype),
        grid_spec=pltpu.PrefetchScalarGridSpec(
            num_scalar_prefetch=0,
            grid=(N,),                          # one image per grid step
            in_specs=[
                img_spec,                       # x
                const2d((9 * C, C)),            # w1 (im2col layout)
                const2d((1, C)),                # bn1 scale
                const2d((1, C)),                # bn1 bias
                const2d((C, 9 * C)),            # w2 (pre-transposed)
                const2d((C, 1)),                # bn2 scale
                const2d((C, 1)),                # bn2 bias
            ],
            out_specs=img_spec,
            scratch_shapes=[
                pltpu.VMEM((H + 2, W + 2, C), jnp.float32),   # padded activation
                pltpu.VMEM((H * W, 9 * C), jnp.float32),      # im2col matrix
            ],
        ),
        compiler_params=pltpu.CompilerParams(
            dimension_semantics=("parallel",),
            vmem_limit_bytes=32 * 1024 * 1024,
        ),
    )(x_flat, w1m, s1, b1, w2t, s2, b2)


class ResidualBlockPallas:
    """JAX/Pallas equivalent of the PyTorch ResidualBlock (eval-mode BN)."""

    def __init__(self, num_filters: int, key):
        C = num_filters
        k = jax.random.split(key, 12)
        bound = 1.0 / jnp.sqrt(C * 9.0)            # Conv2d default init range
        # Conv weights stored HWIO (== torch OIHW transposed (2, 3, 1, 0)).
        self.w1 = jax.random.uniform(k[0], (3, 3, C, C), jnp.float32, -bound, bound)
        self.b1 = jax.random.uniform(k[1], (C,), jnp.float32, -bound, bound)
        self.w2 = jax.random.uniform(k[2], (3, 3, C, C), jnp.float32, -bound, bound)
        self.b2 = jax.random.uniform(k[3], (C,), jnp.float32, -bound, bound)
        # BatchNorm affine params + running stats (deterministic, synthetic).
        self.g1 = 1.0 + 0.1 * jax.random.normal(k[4], (C,), jnp.float32)
        self.beta1 = 0.1 * jax.random.normal(k[5], (C,), jnp.float32)
        self.mean1 = 0.05 * jax.random.normal(k[6], (C,), jnp.float32)
        self.var1 = 1.0 + 0.1 * jax.random.uniform(k[7], (C,), jnp.float32)
        self.g2 = 1.0 + 0.1 * jax.random.normal(k[8], (C,), jnp.float32)
        self.beta2 = 0.1 * jax.random.normal(k[9], (C,), jnp.float32)
        self.mean2 = 0.05 * jax.random.normal(k[10], (C,), jnp.float32)
        self.var2 = 1.0 + 0.1 * jax.random.uniform(k[11], (C,), jnp.float32)
        self.eps = 1e-5

    def _folded(self, gamma, beta, mean, var, conv_bias):
        scale = gamma / jnp.sqrt(var + self.eps)
        bias = beta + scale * (conv_bias - mean)
        return scale.astype(jnp.float32), bias.astype(jnp.float32)

    def __call__(self, x_nchw):
        N, C, H, W = x_nchw.shape
        s1, o1 = self._folded(self.g1, self.beta1, self.mean1, self.var1, self.b1)
        s2, o2 = self._folded(self.g2, self.beta2, self.mean2, self.var2, self.b2)
        # Kernel weight layouts (tiny host-side reshape/transpose of 9*C*C vals).
        w1m = self.w1.reshape(9 * C, C)            # (tap*Cin, Cout), im2col order
        w2t = self.w2.reshape(9 * C, C).T          # (Cout, tap*Cin)
        # NCHW kept end-to-end; (N,C,H,W) <-> (N,C,H*W) reshapes are free.
        y = _residual_block_pallas(
            x_nchw.reshape(N, C, H * W),
            w1m, s1.reshape(1, C), o1.reshape(1, C),
            w2t, s2.reshape(C, 1), o2.reshape(C, 1),
            H=H, W=W)
        return y.reshape(N, C, H, W)


# -------------------------------- reference -------------------------------- #

def _reference(x_nchw, m: ResidualBlockPallas):
    x = jnp.transpose(x_nchw, (0, 2, 3, 1))

    def conv(v, w, b):
        return jax.lax.conv_general_dilated(
            v, w, (1, 1), "SAME",
            dimension_numbers=("NHWC", "HWIO", "NHWC")) + b

    def bn(v, g, beta, mean, var):
        return g * (v - mean) / jnp.sqrt(var + m.eps) + beta

    h = jax.nn.relu(bn(conv(x, m.w1, m.b1), m.g1, m.beta1, m.mean1, m.var1))
    h = bn(conv(h, m.w2, m.b2), m.g2, m.beta2, m.mean2, m.var2)
    return jnp.transpose(jax.nn.relu(h + x), (0, 3, 1, 2))


if __name__ == "__main__":
    key = jax.random.PRNGKey(0)
    k_param, k_x = jax.random.split(key)

    N, C, H, W = 2, 8, 16, 16                    # small NCHW shapes (like torch)
    block = ResidualBlockPallas(num_filters=C, key=k_param)
    x = jax.random.normal(k_x, (N, C, H, W), jnp.float32)

    fwd = jax.jit(lambda v: block(v))
    out = jax.block_until_ready(fwd(x))

    ref = jax.block_until_ready(_reference(x, block))
    assert out.shape == (N, C, H, W) and out.dtype == jnp.float32
    assert jnp.allclose(out, ref, atol=1e-3, rtol=1e-3), "mismatch vs reference"

    print("KERNEL_OK")
</pallas_src>

<mosaic_0001>
module attributes {stable_mosaic.version = 11 : i64} {
  func.func @_residual_block_kernel(%arg0: i32, %arg1: memref<1x8x256xf32, #tpu.memory_space<vmem>>, %arg2: memref<72x8xf32, #tpu.memory_space<vmem>>, %arg3: memref<1x8xf32, #tpu.memory_space<vmem>>, %arg4: memref<1x8xf32, #tpu.memory_space<vmem>>, %arg5: memref<8x72xf32, #tpu.memory_space<vmem>>, %arg6: memref<8x1xf32, #tpu.memory_space<vmem>>, %arg7: memref<8x1xf32, #tpu.memory_space<vmem>>, %arg8: memref<1x8x256xf32, #tpu.memory_space<vmem>>, %arg9: memref<18x18x8xf32, #tpu.memory_space<vmem>>, %arg10: memref<256x72xf32, #tpu.memory_space<vmem>>) attributes {dimension_semantics = [#tpu.dimension_semantics<parallel>], iteration_bounds = array<i64: 2>, scalar_prefetch = 0 : i64, scratch_operands = 2 : i64, tpu.core_type = #tpu.core_type<tc>, window_params = [{transform_indices = @transform_0, window_bounds = array<i64: 1, 8, 256>}, {pipeline_mode = #tpu.pipeline_mode<synchronous>, transform_indices = @transform_1, window_bounds = array<i64: 72, 8>}, {pipeline_mode = #tpu.pipeline_mode<synchronous>, transform_indices = @transform_2, window_bounds = array<i64: 1, 8>}, {pipeline_mode = #tpu.pipeline_mode<synchronous>, transform_indices = @transform_3, window_bounds = array<i64: 1, 8>}, {pipeline_mode = #tpu.pipeline_mode<synchronous>, transform_indices = @transform_4, window_bounds = array<i64: 8, 72>}, {pipeline_mode = #tpu.pipeline_mode<synchronous>, transform_indices = @transform_5, window_bounds = array<i64: 8, 1>}, {pipeline_mode = #tpu.pipeline_mode<synchronous>, transform_indices = @transform_6, window_bounds = array<i64: 8, 1>}, {transform_indices = @transform_7, window_bounds = array<i64: 1, 8, 256>}]} {
    %c0 = arith.constant 0 : index
    %c0_0 = arith.constant 0 : index
    %c0_1 = arith.constant 0 : index
    %0 = vector.load %arg1[%c0, %c0_0, %c0_1] : memref<1x8x256xf32, #tpu.memory_space<vmem>>, vector<1x8x256xf32>
    %1 = vector.shape_cast %0 : vector<1x8x256xf32> to vector<8x256xf32>
    %2 = tpu.transpose %1, [1, 0] : vector<8x256xf32> -> vector<256x8xf32>
    %cst = arith.constant 0.000000e+00 : f32
    %3 = vector.broadcast %cst : f32 to vector<18x18x8xf32>
    %c0_2 = arith.constant 0 : index
    %c0_3 = arith.constant 0 : index
    %c0_4 = arith.constant 0 : index
    %4 = vector.load %arg9[%c0_2, %c0_3, %c0_4] : memref<18x18x8xf32, #tpu.memory_space<vmem>>, vector<18x18x8xf32>
    tpu.vector_store %arg9[%c0_2, %c0_3, %c0_4], %3 {strides = array<i32>} : memref<18x18x8xf32, #tpu.memory_space<vmem>>, vector<18x18x8xf32>,
    %5 = vector.shape_cast %2 : vector<256x8xf32> to vector<16x16x8xf32>
    %c1 = arith.constant 1 : index
    %c1_5 = arith.constant 1 : index
    %c0_6 = arith.constant 0 : index
    %6 = vector.load %arg9[%c1, %c1_5, %c0_6] : memref<18x18x8xf32, #tpu.memory_space<vmem>>, vector<16x16x8xf32>
    tpu.vector_store %arg9[%c1, %c1_5, %c0_6], %5 {strides = array<i32>} : memref<18x18x8xf32, #tpu.memory_space<vmem>>, vector<16x16x8xf32>,
    %c0_7 = arith.constant 0 : index
    %c0_8 = arith.constant 0 : index
    %c0_9 = arith.constant 0 : index
    %7 = vector.load %arg9[%c0_7, %c0_8, %c0_9] : memref<18x18x8xf32, #tpu.memory_space<vmem>>, vector<18x18x8xf32>
    %8 = vector.extract_strided_slice %7 {offsets = [0, 0, 0], sizes = [16, 16, 8], strides = [1, 1, 1]} : vector<18x18x8xf32> to vector<16x16x8xf32>
    %9 = vector.shape_cast %8 : vector<16x16x8xf32> to vector<256x8xf32>
    %c0_10 = arith.constant 0 : index
    %c0_11 = arith.constant 0 : index
    %10 = vector.load %arg10[%c0_10, %c0_11] : memref<256x72xf32, #tpu.memory_space<vmem>>, vector<256x8xf32>
    tpu.vector_store %arg10[%c0_10, %c0_11], %9 {strides = array<i32>} : memref<256x72xf32, #tpu.memory_space<vmem>>, vector<256x8xf32>,
    %11 = vector.extract_strided_slice %7 {offsets = [0, 1, 0], sizes = [16, 16, 8], strides = [1, 1, 1]} : vector<18x18x8xf32> to vector<16x16x8xf32>
    %12 = vector.shape_cast %11 : vector<16x16x8xf32> to vector<256x8xf32>
    %c0_12 = arith.constant 0 : index
    %c8 = arith.constant 8 : index
    %13 = vector.load %arg10[%c0_12, %c8] : memref<256x72xf32, #tpu.memory_space<vmem>>, vector<256x8xf32>
    tpu.vector_store %arg10[%c0_12, %c8], %12 {strides = array<i32>} : memref<256x72xf32, #tpu.memory_space<vmem>>, vector<256x8xf32>,
    %14 = vector.extract_strided_slice %7 {offsets = [0, 2, 0], sizes = [16, 16, 8], strides = [1, 1, 1]} : vector<18x18x8xf32> to vector<16x16x8xf32>
    %15 = vector.shape_cast %14 : vector<16x16x8xf32> to vector<256x8xf32>
    %c0_13 = arith.constant 0 : index
    %c16 = arith.constant 16 : index
    %16 = vector.load %arg10[%c0_13, %c16] : memref<256x72xf32, #tpu.memory_space<vmem>>, vector<256x8xf32>
    tpu.vector_store %arg10[%c0_13, %c16], %15 {strides = array<i32>} : memref<256x72xf32, #tpu.memory_space<vmem>>, vector<256x8xf32>,
    %17 = vector.extract_strided_slice %7 {offsets = [1, 0, 0], sizes = [16, 16, 8], strides = [1, 1, 1]} : vector<18x18x8xf32> to vector<16x16x8xf32>
    %18 = vector.shape_cast %17 : vector<16x16x8xf32> to vector<256x8xf32>
    %c0_14 = arith.constant 0 : index
    %c24 = arith.constant 24 : index
    %19 = vector.load %arg10[%c0_14, %c24] : memref<256x72xf32, #tpu.memory_space<vmem>>, vector<256x8xf32>
    tpu.vector_store %arg10[%c0_14, %c24], %18 {strides = array<i32>} : memref<256x72xf32, #tpu.memory_space<vmem>>, vector<256x8xf32>,
    %20 = vector.extract_strided_slice %7 {offsets = [1, 1, 0], sizes = [16, 16, 8], strides = [1, 1, 1]} : vector<18x18x8xf32> to vector<16x16x8xf32>
    %21 = vector.shape_cast %20 : vector<16x16x8xf32> to vector<256x8xf32>
    %c0_15 = arith.constant 0 : index
    %c32 = arith.constant 32 : index
    %22 = vector.load %arg10[%c0_15, %c32] : memref<256x72xf32, #tpu.memory_space<vmem>>, vector<256x8xf32>
    tpu.vector_store %arg10[%c0_15, %c32], %21 {strides = array<i32>} : memref<256x72xf32, #tpu.memory_space<vmem>>, vector<256x8xf32>,
    %23 = vector.extract_strided_slice %7 {offsets = [1, 2, 0], sizes = [16, 16, 8], strides = [1, 1, 1]} : vector<18x18x8xf32> to vector<16x16x8xf32>
    %24 = vector.shape_cast %23 : vector<16x16x8xf32> to vector<256x8xf32>
    %c0_16 = arith.constant 0 : index
    %c40 = arith.constant 40 : index
    %25 = vector.load %arg10[%c0_16, %c40] : memref<256x72xf32, #tpu.memory_space<vmem>>, vector<256x8xf32>
    tpu.vector_store %arg10[%c0_16, %c40], %24 {strides = array<i32>} : memref<256x72xf32, #tpu.memory_space<vmem>>, vector<256x8xf32>,
    %26 = vector.extract_strided_slice %7 {offsets = [2, 0, 0], sizes = [16, 16, 8], strides = [1, 1, 1]} : vector<18x18x8xf32> to vector<16x16x8xf32>
    %27 = vector.shape_cast %26 : vector<16x16x8xf32> to vector<256x8xf32>
    %c0_17 = arith.constant 0 : index
    %c48 = arith.constant 48 : index
    %28 = vector.load %arg10[%c0_17, %c48] : memref<256x72xf32, #tpu.memory_space<vmem>>, vector<256x8xf32>
    tpu.vector_store %arg10[%c0_17, %c48], %27 {strides = array<i32>} : memref<256x72xf32, #tpu.memory_space<vmem>>, vector<256x8xf32>,
    %29 = vector.extract_strided_slice %7 {offsets = [2, 1, 0], sizes = [16, 16, 8], strides = [1, 1, 1]} : vector<18x18x8xf32> to vector<16x16x8xf32>
    %30 = vector.shape_cast %29 : vector<16x16x8xf32> to vector<256x8xf32>
    %c0_18 = arith.constant 0 : index
    %c56 = arith.constant 56 : index
    %31 = vector.load %arg10[%c0_18, %c56] : memref<256x72xf32, #tpu.memory_space<vmem>>, vector<256x8xf32>
    tpu.vector_store %arg10[%c0_18, %c56], %30 {strides = array<i32>} : memref<256x72xf32, #tpu.memory_space<vmem>>, vector<256x8xf32>,
    %32 = vector.extract_strided_slice %7 {offsets = [2, 2, 0], sizes = [16, 16, 8], strides = [1, 1, 1]} : vector<18x18x8xf32> to vector<16x16x8xf32>
    %33 = vector.shape_cast %32 : vector<16x16x8xf32> to vector<256x8xf32>
    %c0_19 = arith.constant 0 : index
    %c64 = arith.constant 64 : index
    %34 = vector.load %arg10[%c0_19, %c64] : memref<256x72xf32, #tpu.memory_space<vmem>>, vector<256x8xf32>
    tpu.vector_store %arg10[%c0_19, %c64], %33 {strides = array<i32>} : memref<256x72xf32, #tpu.memory_space<vmem>>, vector<256x8xf32>,
    %c0_20 = arith.constant 0 : index
    %c0_21 = arith.constant 0 : index
    %35 = vector.load %arg10[%c0_20, %c0_21] : memref<256x72xf32, #tpu.memory_space<vmem>>, vector<256x72xf32>
    %c0_22 = arith.constant 0 : index
    %c0_23 = arith.constant 0 : index
    %36 = vector.load %arg2[%c0_22, %c0_23] : memref<72x8xf32, #tpu.memory_space<vmem>>, vector<72x8xf32>
    %cst_24 = arith.constant dense<0.000000e+00> : vector<256x8xf32>
    %37 = tpu.matmul %35, %36, %cst_24 {dimension_numbers = #tpu.dot_dimension_numbers<[1], [0], [0], [1], [0, 0, 1, 1], [], []>} : vector<256x72xf32>, vector<72x8xf32>, vector<256x8xf32> -> vector<256x8xf32>
    %c0_25 = arith.constant 0 : index
    %c0_26 = arith.constant 0 : index
    %38 = vector.load %arg3[%c0_25, %c0_26] : memref<1x8xf32, #tpu.memory_space<vmem>>, vector<1x8xf32>
    %39 = vector.broadcast %38 : vector<1x8xf32> to vector<256x8xf32>
    %40 = arith.mulf %37, %39 : vector<256x8xf32>
    %c0_27 = arith.constant 0 : index
    %c0_28 = arith.constant 0 : index
    %41 = vector.load %arg4[%c0_27, %c0_28] : memref<1x8xf32, #tpu.memory_space<vmem>>, vector<1x8xf32>
    %42 = vector.broadcast %41 : vector<1x8xf32> to vector<256x8xf32>
    %43 = arith.addf %40, %42 : vector<256x8xf32>
    %cst_29 = arith.constant 0.000000e+00 : f32
    %44 = vector.broadcast %cst_29 : f32 to vector<256x8xf32>
    %45 = arith.maximumf %43, %44 : vector<256x8xf32>
    %46 = vector.shape_cast %45 : vector<256x8xf32> to vector<16x16x8xf32>
    %c1_30 = arith.constant 1 : index
    %c1_31 = arith.constant 1 : index
    %c0_32 = arith.constant 0 : index
    %47 = vector.load %arg9[%c1_30, %c1_31, %c0_32] : memref<18x18x8xf32, #tpu.memory_space<vmem>>, vector<16x16x8xf32>
    tpu.vector_store %arg9[%c1_30, %c1_31, %c0_32], %46 {strides = array<i32>} : memref<18x18x8xf32, #tpu.memory_space<vmem>>, vector<16x16x8xf32>,
    %c0_33 = arith.constant 0 : index
    %c0_34 = arith.constant 0 : index
    %c0_35 = arith.constant 0 : index
    %48 = vector.load %arg9[%c0_33, %c0_34, %c0_35] : memref<18x18x8xf32, #tpu.memory_space<vmem>>, vector<18x18x8xf32>
    %49 = vector.extract_strided_slice %48 {offsets = [0, 0, 0], sizes = [16, 16, 8], strides = [1, 1, 1]} : vector<18x18x8xf32> to vector<16x16x8xf32>
    %50 = vector.shape_cast %49 : vector<16x16x8xf32> to vector<256x8xf32>
    %c0_36 = arith.constant 0 : index
    %c0_37 = arith.constant 0 : index
    %51 = vector.load %arg10[%c0_36, %c0_37] : memref<256x72xf32, #tpu.memory_space<vmem>>, vector<256x8xf32>
    tpu.vector_store %arg10[%c0_36, %c0_37], %50 {strides = array<i32>} : memref<256x72xf32, #tpu.memory_space<vmem>>, vector<256x8xf32>,
    %52 = vector.extract_strided_slice %48 {offsets = [0, 1, 0], sizes = [16, 16, 8], strides = [1, 1, 1]} : vector<18x18x8xf32> to vector<16x16x8xf32>
    %53 = vector.shape_cast %52 : vector<16x16x8xf32> to vector<256x8xf32>
    %c0_38 = arith.constant 0 : index
    %c8_39 = arith.constant 8 : index
    %54 = vector.load %arg10[%c0_38, %c8_39] : memref<256x72xf32, #tpu.memory_space<vmem>>, vector<256x8xf32>
    tpu.vector_store %arg10[%c0_38, %c8_39], %53 {strides = array<i32>} : memref<256x72xf32, #tpu.memory_space<vmem>>, vector<256x8xf32>,
    %55 = vector.extract_strided_slice %48 {offsets = [0, 2, 0], sizes = [16, 16, 8], strides = [1, 1, 1]} : vector<18x18x8xf32> to vector<16x16x8xf32>
    %56 = vector.shape_cast %55 : vector<16x16x8xf32> to vector<256x8xf32>
    %c0_40 = arith.constant 0 : index
    %c16_41 = arith.constant 16 : index
    %57 = vector.load %arg10[%c0_40, %c16_41] : memref<256x72xf32, #tpu.memory_space<vmem>>, vector<256x8xf32>
    tpu.vector_store %arg10[%c0_40, %c16_41], %56 {strides = array<i32>} : memref<256x72xf32, #tpu.memory_space<vmem>>, vector<256x8xf32>,
    %58 = vector.extract_strided_slice %48 {offsets = [1, 0, 0], sizes = [16, 16, 8], strides = [1, 1, 1]} : vector<18x18x8xf32> to vector<16x16x8xf32>
    %59 = vector.shape_cast %58 : vector<16x16x8xf32> to vector<256x8xf32>
    %c0_42 = arith.constant 0 : index
    %c24_43 = arith.constant 24 : index
    %60 = vector.load %arg10[%c0_42, %c24_43] : memref<256x72xf32, #tpu.memory_space<vmem>>, vector<256x8xf32>
    tpu.vector_store %arg10[%c0_42, %c24_43], %59 {strides = array<i32>} : memref<256x72xf32, #tpu.memory_space<vmem>>, vector<256x8xf32>,
    %61 = vector.extract_strided_slice %48 {offsets = [1, 1, 0], sizes = [16, 16, 8], strides = [1, 1, 1]} : vector<18x18x8xf32> to vector<16x16x8xf32>
    %62 = vector.shape_cast %61 : vector<16x16x8xf32> to vector<256x8xf32>
    %c0_44 = arith.constant 0 : index
    %c32_45 = arith.constant 32 : index
    %63 = vector.load %arg10[%c0_44, %c32_45] : memref<256x72xf32, #tpu.memory_space<vmem>>, vector<256x8xf32>
    tpu.vector_store %arg10[%c0_44, %c32_45], %62 {strides = array<i32>} : memref<256x72xf32, #tpu.memory_space<vmem>>, vector<256x8xf32>,
    %64 = vector.extract_strided_slice %48 {offsets = [1, 2, 0], sizes = [16, 16, 8], strides = [1, 1, 1]} : vector<18x18x8xf32> to vector<16x16x8xf32>
    %65 = vector.shape_cast %64 : vector<16x16x8xf32> to vector<256x8xf32>
    %c0_46 = arith.constant 0 : index
    %c40_47 = arith.constant 40 : index
    %66 = vector.load %arg10[%c0_46, %c40_47] : memref<256x72xf32, #tpu.memory_space<vmem>>, vector<256x8xf32>
    tpu.vector_store %arg10[%c0_46, %c40_47], %65 {strides = array<i32>} : memref<256x72xf32, #tpu.memory_space<vmem>>, vector<256x8xf32>,
    %67 = vector.extract_strided_slice %48 {offsets = [2, 0, 0], sizes = [16, 16, 8], strides = [1, 1, 1]} : vector<18x18x8xf32> to vector<16x16x8xf32>
    %68 = vector.shape_cast %67 : vector<16x16x8xf32> to vector<256x8xf32>
    %c0_48 = arith.constant 0 : index
    %c48_49 = arith.constant 48 : index
    %69 = vector.load %arg10[%c0_48, %c48_49] : memref<256x72xf32, #tpu.memory_space<vmem>>, vector<256x8xf32>
    tpu.vector_store %arg10[%c0_48, %c48_49], %68 {strides = array<i32>} : memref<256x72xf32, #tpu.memory_space<vmem>>, vector<256x8xf32>,
    %70 = vector.extract_strided_slice %48 {offsets = [2, 1, 0], sizes = [16, 16, 8], strides = [1, 1, 1]} : vector<18x18x8xf32> to vector<16x16x8xf32>
    %71 = vector.shape_cast %70 : vector<16x16x8xf32> to vector<256x8xf32>
    %c0_50 = arith.constant 0 : index
    %c56_51 = arith.constant 56 : index
    %72 = vector.load %arg10[%c0_50, %c56_51] : memref<256x72xf32, #tpu.memory_space<vmem>>, vector<256x8xf32>
    tpu.vector_store %arg10[%c0_50, %c56_51], %71 {strides = array<i32>} : memref<256x72xf32, #tpu.memory_space<vmem>>, vector<256x8xf32>,
    %73 = vector.extract_strided_slice %48 {offsets = [2, 2, 0], sizes = [16, 16, 8], strides = [1, 1, 1]} : vector<18x18x8xf32> to vector<16x16x8xf32>
    %74 = vector.shape_cast %73 : vector<16x16x8xf32> to vector<256x8xf32>
    %c0_52 = arith.constant 0 : index
    %c64_53 = arith.constant 64 : index
    %75 = vector.load %arg10[%c0_52, %c64_53] : memref<256x72xf32, #tpu.memory_space<vmem>>, vector<256x8xf32>
    tpu.vector_store %arg10[%c0_52, %c64_53], %74 {strides = array<i32>} : memref<256x72xf32, #tpu.memory_space<vmem>>, vector<256x8xf32>,
    %c0_54 = arith.constant 0 : index
    %c0_55 = arith.constant 0 : index
    %76 = vector.load %arg10[%c0_54, %c0_55] : memref<256x72xf32, #tpu.memory_space<vmem>>, vector<256x72xf32>
    %c0_56 = arith.constant 0 : index
    %c0_57 = arith.constant 0 : index
    %77 = vector.load %arg5[%c0_56, %c0_57] : memref<8x72xf32, #tpu.memory_space<vmem>>, vector<8x72xf32>
    %cst_58 = arith.constant dense<0.000000e+00> : vector<8x256xf32>
    %78 = tpu.matmul %77, %76, %cst_58 {dimension_numbers = #tpu.dot_dimension_numbers<[1], [1], [0], [0], [0, 0, 1, 0], [], []>} : vector<8x72xf32>, vector<256x72xf32>, vector<8x256xf32> -> vector<8x256xf32>
    %c0_59 = arith.constant 0 : index
    %c0_60 = arith.constant 0 : index
    %79 = vector.load %arg6[%c0_59, %c0_60] : memref<8x1xf32, #tpu.memory_space<vmem>>, vector<8x1xf32>
    %80 = vector.broadcast %79 : vector<8x1xf32> to vector<8x256xf32>
    %81 = arith.mulf %78, %80 : vector<8x256xf32>
    %c0_61 = arith.constant 0 : index
    %c0_62 = arith.constant 0 : index
    %82 = vector.load %arg7[%c0_61, %c0_62] : memref<8x1xf32, #tpu.memory_space<vmem>>, vector<8x1xf32>
    %83 = vector.broadcast %82 : vector<8x1xf32> to vector<8x256xf32>
    %84 = arith.addf %81, %83 : vector<8x256xf32>
    %85 = arith.addf %84, %1 : vector<8x256xf32>
    %cst_63 = arith.constant 0.000000e+00 : f32
    %86 = vector.broadcast %cst_63 : f32 to vector<8x256xf32>
    %87 = arith.maximumf %85, %86 : vector<8x256xf32>
    %c0_64 = arith.constant 0 : index
    %c0_65 = arith.constant 0 : index
    %c0_66 = arith.constant 0 : index
    %88 = vector.load %arg8[%c0_64, %c0_65, %c0_66] : memref<1x8x256xf32, #tpu.memory_space<vmem>>, vector<1x8x256xf32>
    %89 = vector.shape_cast %88 : vector<1x8x256xf32> to vector<8x256xf32>
    %90 = vector.shape_cast %87 : vector<8x256xf32> to vector<1x8x256xf32>
    tpu.vector_store %arg8[%c0_64, %c0_65, %c0_66], %90 {strides = array<i32>} : memref<1x8x256xf32, #tpu.memory_space<vmem>>, vector<1x8x256xf32>,
    return
  }
  func.func @transform_0(%arg0: i32) -> (i32, i32, i32) {
    %c0_i32 = arith.constant 0 : i32
    %c0_i32_0 = arith.constant 0 : i32
    %c0_i32_1 = arith.constant 0 : i32
    return %arg0, %c0_i32, %c0_i32_0 : i32, i32, i32
  }
  func.func @transform_1(%arg0: i32) -> (i32, i32) {
    %c0_i32 = arith.constant 0 : i32
    %c0_i32_0 = arith.constant 0 : i32
    %c0_i32_1 = arith.constant 0 : i32
    return %c0_i32, %c0_i32_0 : i32, i32
  }
  func.func @transform_2(%arg0: i32) -> (i32, i32) {
    %c0_i32 = arith.constant 0 : i32
    %c0_i32_0 = arith.constant 0 : i32
    %c0_i32_1 = arith.constant 0 : i32
    return %c0_i32, %c0_i32_0 : i32, i32
  }
  func.func @transform_3(%arg0: i32) -> (i32, i32) {
    %c0_i32 = arith.constant 0 : i32
    %c0_i32_0 = arith.constant 0 : i32
    %c0_i32_1 = arith.constant 0 : i32
    return %c0_i32, %c0_i32_0 : i32, i32
  }
  func.func @transform_4(%arg0: i32) -> (i32, i32) {
    %c0_i32 = arith.constant 0 : i32
    %c0_i32_0 = arith.constant 0 : i32
    %c0_i32_1 = arith.constant 0 : i32
    return %c0_i32, %c0_i32_0 : i32, i32
  }
  func.func @transform_5(%arg0: i32) -> (i32, i32) {
    %c0_i32 = arith.constant 0 : i32
    %c0_i32_0 = arith.constant 0 : i32
    %c0_i32_1 = arith.constant 0 : i32
    return %c0_i32, %c0_i32_0 : i32, i32
  }
  func.func @transform_6(%arg0: i32) -> (i32, i32) {
    %c0_i32 = arith.constant 0 : i32
    %c0_i32_0 = arith.constant 0 : i32
    %c0_i32_1 = arith.constant 0 : i32
    return %c0_i32, %c0_i32_0 : i32, i32
  }
  func.func @transform_7(%arg0: i32) -> (i32, i32, i32) {
    %c0_i32 = arith.constant 0 : i32
    %c0_i32_0 = arith.constant 0 : i32
    %c0_i32_1 = arith.constant 0 : i32
    return %arg0, %c0_i32, %c0_i32_0 : i32, i32, i32
  }
}

</mosaic_0001>

<bundles_post_ra>
// kernel: _lambda_.1
= control target key start
LH: loop header
LB: loop body
LE: loop exit
PB: predicated region body
PF: predicated region fallthrough
CT: control target
= control target key end

     0   :  { %s4284_s24 = smov 0   ;;  %s7066_s0 = inlined_call_operand.vmem [shape: f32[2,8,256], index: 0, kind: input, shape index: {}]   ;;  %s7067_s1 = inlined_call_operand.vmem [shape: f32[72,8], index: 1, kind: input, shape index: {}]   ;;  %s7068_s2 = inlined_call_operand.vmem [shape: f32[1,8], index: 2, kind: input, shape index: {}]   ;;  %s7069_s3 = inlined_call_operand.vmem [shape: f32[1,8], index: 3, kind: input, shape index: {}]   ;;  %s7070_s4 = inlined_call_operand.vmem [shape: f32[8,72], index: 4, kind: input, shape index: {}]   ;;  %s7071_s5 = inlined_call_operand.vmem [shape: f32[8,1], index: 5, kind: input, shape index: {}]   ;;  %s7072_s6 = inlined_call_operand.vmem [shape: f32[8,1], index: 6, kind: input, shape index: {}]   ;;  %s7073_s7 = inlined_call_operand.vmem [shape: f32[2,8,256], index: 7, kind: output, shape index: {}]  }
   0x1 LB: > { %s3917_s25 = sadd.s32 4294967295, %s4232_s24   ;;  %p3921_p0 = scmp.ge.s32.totalorder %s4232_s24, 1  ;;  %s4232_s24 = sphi %s4284_s24, %s17_s24  }
   0x2   : > { %p237_p1 = scmp.lt.s32.totalorder %s4232_s24, 3 }
   0x4   : > { %p238_p2 = pnand %p3921_p0, %p237_p1 }
   0x6   : > { %241 = sbr.rel (%p238_p2) target bundleno = 1891 (0x763), region = 48 }
   0xd   : > { %p4294_p3 = scmp.lt.s32.totalorder %s3917_s25, 1  ;;  %vm345_vm0 = vcmask 64512   ;;  %v4234_v0 = vmov 0.0   ;;  %vm348_vm1 = vcmask 58368   ;;  %vm568_vm2 = vcmask 1046528   ;;  %s4235_s8 = smov 8  }
   0xe   : > { %350 = vst.msk [vmem:[#allocation2 + $0x18] sm:$0xff] %vm345_vm0, %v4234_v0  ;;  %351 = vst.msk [vmem:[#allocation2 + $0x20] sm:$0xff] %vm345_vm0, %v4234_v0  ;;  %vm745_vm3 = vcmask 130112   ;;  %vm778_vm4 = vcmask 1045504   ;;  %s4236_s9 = smov 16   ;;  %s4237_s10 = smov 24  }
   0xf   : > { %346 = vst.msk [vmem:[#allocation2] sm:$0xff] %vm345_vm0, %v4234_v0  ;;  %347 = vst.msk [vmem:[#allocation2 + $0x8] sm:$0xff] %vm345_vm0, %v4234_v0  ;;  %s7397_s25 = smov (!%p4294_p3, %s3917_s25), 1  ;;  %vm955_vm5 = vcmask 195712   ;;  %s4238_s11 = smov 32   ;;  %vm1086_vm6 = vcmask 261312  }
  0x10   : > { %353 = vst.msk [vmem:[#allocation2 + $0x30] sm:$0xff] %vm345_vm0, %v4234_v0  ;;  %354 = vst.msk [vmem:[#allocation2 + $0x38] sm:$0xff] %vm345_vm0, %v4234_v0  ;;  %s3995_s27 = sshll.u32 %s7397_s25, 4  ;;  %s4239_s12 = smov 40   ;;  %vm1221_vm7 = vcmask 326912   ;;  %vm1355_vm8 = vcmask 392512  }
  0x11   : > { %356 = vst.msk [vmem:[#allocation2 + $0x48] sm:$0xff] %vm345_vm0, %v4234_v0  ;;  %357 = vst.msk [vmem:[#allocation2 + $0x50] sm:$0xff] %vm345_vm0, %v4234_v0  ;;  %s4346_s30 = scalar_lea.vmem %s7066_s0, %s3995_s27  ;;  %s4240_s13 = smov 48   ;;  %vm1486_vm9 = vcmask 458112   ;;  %vm1621_vm10 = vcmask 523712   ;;  %vm1755_vm11 = vcmask 589312  }
  0x12   : > { %359 = vst.msk [vmem:[#allocation2 + $0x60] sm:$0xff] %vm345_vm0, %v4234_v0  ;;  %360 = vst.msk [vmem:[#allocation2 + $0x68] sm:$0xff] %vm345_vm0, %v4234_v0  ;;  %v279_v1 = vld [vmem:[%s4346_s30] sm:$0xff]  ;;  %v280_v10 = vld [vmem:[%s4346_s30 + $0x8] sm:$0xff]  ;;  %s4241_s14 = smov 56   ;;  %s4242_s15 = smov 64  }
  0x13   : > { %362 = vst.msk [vmem:[#allocation2 + $0x78] sm:$0xff] %vm345_vm0, %v4234_v0  ;;  %363 = vst.msk [vmem:[#allocation2 + $0x80] sm:$0xff] %vm345_vm0, %v4234_v0  ;;  %281 = vxpose.xlu0.b32.start.end [1/1] (short) %v279_v1, 128  ;;  %vm1829_vm12 = vcmask 588800   ;;  %s278_s20 = scalar_lea.vmem %s7073_s7, %s3995_s27 }
  0x14   : > { %365 = vst.msk [vmem:[#allocation2 + $0x90] sm:$0xff] %vm345_vm0, %v4234_v0  ;;  %366 = vst.msk [vmem:[#allocation2 + $0x98] sm:$0xff] %vm345_vm0, %v4234_v0 }
  0x15   : > { %368 = vst.msk [vmem:[#allocation2 + $0xa8] sm:$0xff] %vm345_vm0, %v4234_v0  ;;  %369 = vst.msk [vmem:[#allocation2 + $0xb0] sm:$0xff] %vm345_vm0, %v4234_v0 }
  0x16   : > { %371 = vst.msk [vmem:[#allocation2 + $0xc0] sm:$0xff] %vm345_vm0, %v4234_v0  ;;  %372 = vst.msk [vmem:[#allocation2 + $0xc8] sm:$0xff] %vm345_vm0, %v4234_v0  ;;  %v4367_v2 = vld [vmem:[#allocation2] sm:$0xff]  ;;  %v4369_v3 = vld [vmem:[#allocation2 + $0x8] sm:$0xff] }
  0x17   : > { %374 = vst.msk [vmem:[#allocation2 + $0xd8] sm:$0xff] %vm345_vm0, %v4234_v0  ;;  %375 = vst.msk [vmem:[#allocation2 + $0xe0] sm:$0xff] %vm345_vm0, %v4234_v0  ;;  %v569_v4 = vrot.slane %v4367_v2, 1  ;;  %v570_v5 = vrot.slane %v4369_v3, 1 }
  0x18   : > { %377 = vst.msk [vmem:[#allocation2 + $0xf0] sm:$0xff] %vm345_vm0, %v4234_v0  ;;  %378 = vst.msk [vmem:[#allocation2 + $0xf8] sm:$0xff] %vm345_vm0, %v4234_v0 }
  0x19   : > { %380 = vst.msk [vmem:[#allocation2 + $0x108] sm:$0xff] %vm345_vm0, %v4234_v0  ;;  %381 = vst.msk [vmem:[#allocation2 + $0x110] sm:$0xff] %vm345_vm0, %v4234_v0  ;;  %v571_v6 = vsel %vm568_vm2, %v569_v4, %v570_v5 }
  0x1a   : > { %383 = vst.msk [vmem:[#allocation2 + $0x120] sm:$0xff] %vm345_vm0, %v4234_v0  ;;  %384 = vst.msk [vmem:[#allocation2 + $0x128] sm:$0xff] %vm345_vm0, %v4234_v0  ;;  %649 = vrot.lane.b32.xlu1 %v571_v6, %s4235_s8 }
  0x1b   : > { %386 = vst.msk [vmem:[#allocation2 + $0x138] sm:$0xff] %vm345_vm0, %v4234_v0  ;;  %387 = vst.msk [vmem:[#allocation2 + $0x140] sm:$0xff] %vm345_vm0, %v4234_v0 }
  0x1c   : > { %389 = vst.msk [vmem:[#allocation2 + $0x150] sm:$0xff] %vm345_vm0, %v4234_v0  ;;  %390 = vst.msk [vmem:[#allocation2 + $0x158] sm:$0xff] %vm345_vm0, %v4234_v0 }
  0x1d   : > { %392 = vst.msk [vmem:[#allocation2 + $0x168] sm:$0xff] %vm345_vm0, %v4234_v0  ;;  %393 = vst.msk [vmem:[#allocation2 + $0x170] sm:$0xff] %vm345_vm0, %v4234_v0 }
  0x1e   : > { %395 = vst.msk [vmem:[#allocation2 + $0x180] sm:$0xff] %vm345_vm0, %v4234_v0  ;;  %396 = vst.msk [vmem:[#allocation2 + $0x188] sm:$0xff] %vm345_vm0, %v4234_v0 }
  0x1f   : > { %398 = vst.msk [vmem:[#allocation2 + $0x198] sm:$0xff] %vm345_vm0, %v4234_v0  ;;  %399 = vst.msk [vmem:[#allocation2 + $0x1a0] sm:$0xff] %vm345_vm0, %v4234_v0 }
  0x20   : > { %352 = vst.msk [vmem:[#allocation2 + $0x28] sm:$0x3] %vm348_vm1, %v4234_v0  ;;  %349 = vst.msk [vmem:[#allocation2 + $0x10] sm:$0x3] %vm348_vm1, %v4234_v0 }
  0x21   : > { %355 = vst.msk [vmem:[#allocation2 + $0x40] sm:$0x3] %vm348_vm1, %v4234_v0  ;;  %358 = vst.msk [vmem:[#allocation2 + $0x58] sm:$0x3] %vm348_vm1, %v4234_v0 }
  0x22   : > { %361 = vst.msk [vmem:[#allocation2 + $0x70] sm:$0x3] %vm348_vm1, %v4234_v0  ;;  %364 = vst.msk [vmem:[#allocation2 + $0x88] sm:$0x3] %vm348_vm1, %v4234_v0 }
  0x23   : > { %367 = vst.msk [vmem:[#allocation2 + $0xa0] sm:$0x3] %vm348_vm1, %v4234_v0  ;;  %370 = vst.msk [vmem:[#allocation2 + $0xb8] sm:$0x3] %vm348_vm1, %v4234_v0 }
  0x24   : > { %373 = vst.msk [vmem:[#allocation2 + $0xd0] sm:$0x3] %vm348_vm1, %v4234_v0  ;;  %376 = vst.msk [vmem:[#allocation2 + $0xe8] sm:$0x3] %vm348_vm1, %v4234_v0 }
  0x25   : > { %379 = vst.msk [vmem:[#allocation2 + $0x100] sm:$0x3] %vm348_vm1, %v4234_v0  ;;  %382 = vst.msk [vmem:[#allocation2 + $0x118] sm:$0x3] %vm348_vm1, %v4234_v0 }
  0x26   : > { %385 = vst.msk [vmem:[#allocation2 + $0x130] sm:$0x3] %vm348_vm1, %v4234_v0  ;;  %388 = vst.msk [vmem:[#allocation2 + $0x148] sm:$0x3] %vm348_vm1, %v4234_v0 }
  0x27   : > { %391 = vst.msk [vmem:[#allocation2 + $0x160] sm:$0x3] %vm348_vm1, %v4234_v0  ;;  %394 = vst.msk [vmem:[#allocation2 + $0x178] sm:$0x3] %vm348_vm1, %v4234_v0  ;;  %v4379_v7 = vld [vmem:[#allocation2 + $0x10] sm:$0x3] }
  0x28   : > { %397 = vst.msk [vmem:[#allocation2 + $0x190] sm:$0x3] %vm348_vm1, %v4234_v0  ;;  %400 = vst.msk [vmem:[#allocation2 + $0x1a8] sm:$0x3] %vm348_vm1, %v4234_v0  ;;  %v572_v8 = vrot.slane %v4379_v7, 1 }
  0x29   : > { %488 = vst.msk [vmem:[#allocation3] sm:$0xff] %vm345_vm0, %v4367_v2  ;;  %489 = vst.msk [vmem:[#allocation3 + $0x8] sm:$0xff] %vm345_vm0, %v4369_v3 }
  0x2a   : > { %v573_v9 = vsel %vm568_vm2, %v570_v5, %v572_v8  ;;  %vm6669_vm13 = vmpackc.low %vm1829_vm12, %vm1829_vm12 }
  0x2b   : > { %651 = vrot.lane.b32.xlu1 %v573_v9, %s4235_s8 }
  0x50   : > { %313 = vxpose.xlu0.b32.start.end [1/1] (short) %v280_v10, 128 }
  0x8c   : > { %v650_v11 = vpop.permute.xlu1 %649 }
  0x8d   : > { %746 = vst.msk [vmem:[#allocation3] sm:$0xff] %vm745_vm3, %v650_v11 }
  0x93   : > { %v297_v13 = vpop.trf.xlu0 }
  0x94   : > { %402 = vst.msk [vmem:[#allocation2 + $0x19] sm:$0xff] %vm345_vm0, %v297_v13 }
  0x97   : > { %v298_v14 = vpop.trf.xlu0 }
  0x98   : > { %403 = vst.msk [vmem:[#allocation2 + $0x21] sm:$0xff] %vm345_vm0, %v298_v14 }
  0x9b   : > { %v299_v15 = vpop.trf.xlu0  ;;  %v4389_v16 = vld [vmem:[#allocation2 + $0x18] sm:$0xff] }
  0x9c   : > { %404 = vst.msk [vmem:[#allocation2 + $0x31] sm:$0xff] %vm345_vm0, %v299_v15  ;;  %490 = vst.msk [vmem:[#allocation3 + $0x10] sm:$0xff] %vm345_vm0, %v4389_v16  ;;  %v574_v20 = vrot.slane %v4389_v16, 1 }
  0x9d   : > { %v652_v12 = vpop.permute.xlu1 %651 }
  0x9e   : > { %747 = vst.msk [vmem:[#allocation3 + $0x8] sm:$0xff] %vm745_vm3, %v652_v12 }
  0x9f   : > { %v300_v17 = vpop.trf.xlu0  ;;  %v4394_v18 = vld [vmem:[#allocation2 + $0x20] sm:$0xff]  ;;  %v4396_v19 = vld [vmem:[#allocation2 + $0x28] sm:$0x3] }
  0xa0   : > { %405 = vst.msk [vmem:[#allocation2 + $0x39] sm:$0xff] %vm345_vm0, %v300_v17  ;;  %v575_v21 = vrot.slane %v4394_v18, 1  ;;  %491 = vst.msk [vmem:[#allocation3 + $0x18] sm:$0xff] %vm345_vm0, %v4394_v18  ;;  %v577_v23 = vrot.slane %v4396_v19, 1 }
  0xa2   : > { %v4404_v22 = vsel %vm568_vm2, %v574_v20, %v575_v21  ;;  %v4415_v26 = vsel %vm568_vm2, %v575_v21, %v577_v23 }
  0xa3   : > { %7222 = vst [vmem:[#allocation4_spill] sm:$0xff] %v4404_v22  ;;  %653 = vrot.lane.b32.xlu1 %v4404_v22, %s4235_s8  ;;  %v301_v24 = vpop.trf.xlu0  ;;  %v4409_v25 = vld [vmem:[#allocation2 + $0x30] sm:$0xff]  ;;  %v780_v22 = vrot.slane %v4369_v3, 2 }
  0xa4   : > { %406 = vst.msk [vmem:[#allocation2 + $0x49] sm:$0xff] %vm345_vm0, %v301_v24  ;;  %492 = vst.msk [vmem:[#allocation3 + $0x20] sm:$0xff] %vm345_vm0, %v4409_v25  ;;  %v579_v30 = vrot.slane %v4409_v25, 1 }
  0xa7   : > { %655 = vrot.lane.b32.xlu1 %v4415_v26, %s4235_s8  ;;  %v302_v27 = vpop.trf.xlu0  ;;  %v4419_v28 = vld [vmem:[#allocation2 + $0x38] sm:$0xff]  ;;  %v4421_v29 = vld [vmem:[#allocation2 + $0x40] sm:$0x3] }
  0xa8   : > { %407 = vst.msk [vmem:[#allocation2 + $0x51] sm:$0xff] %vm345_vm0, %v302_v27  ;;  %v580_v31 = vrot.slane %v4419_v28, 1  ;;  %493 = vst.msk [vmem:[#allocation3 + $0x28] sm:$0xff] %vm345_vm0, %v4419_v28  ;;  %v582_v33 = vrot.slane %v4421_v29, 1 }
  0xaa   : > { %v4429_v32 = vsel %vm568_vm2, %v579_v30, %v580_v31  ;;  %v4440_v36 = vsel %vm568_vm2, %v580_v31, %v582_v33 }
  0xab   : > { %7223 = vst [vmem:[#allocation5_spill] sm:$0xff] %v4429_v32  ;;  %657 = vrot.lane.b32.xlu1 %v4429_v32, %s4235_s8  ;;  %v303_v34 = vpop.trf.xlu0  ;;  %v4434_v35 = vld [vmem:[#allocation2 + $0x48] sm:$0xff] }
  0xac   : > { %408 = vst.msk [vmem:[#allocation2 + $0x61] sm:$0xff] %vm345_vm0, %v303_v34  ;;  %494 = vst.msk [vmem:[#allocation3 + $0x30] sm:$0xff] %vm345_vm0, %v4434_v35  ;;  %v584_v40 = vrot.slane %v4434_v35, 1 }
  0xaf   : > { %659 = vrot.lane.b32.xlu1 %v4440_v36, %s4235_s8  ;;  %v304_v37 = vpop.trf.xlu0  ;;  %v4444_v38 = vld [vmem:[#allocation2 + $0x50] sm:$0xff]  ;;  %v4446_v39 = vld [vmem:[#allocation2 + $0x58] sm:$0x3] }
  0xb0   : > { %409 = vst.msk [vmem:[#allocation2 + $0x69] sm:$0xff] %vm345_vm0, %v304_v37  ;;  %v585_v41 = vrot.slane %v4444_v38, 1  ;;  %495 = vst.msk [vmem:[#allocation3 + $0x38] sm:$0xff] %vm345_vm0, %v4444_v38  ;;  %v587_v43 = vrot.slane %v4446_v39, 1 }
  0xb2   : > { %v4454_v42 = vsel %vm568_vm2, %v584_v40, %v585_v41  ;;  %v4465_v46 = vsel %vm568_vm2, %v585_v41, %v587_v43 }
  0xb3   : > { %7224 = vst [vmem:[#allocation6_spill] sm:$0xff] %v4454_v42  ;;  %661 = vrot.lane.b32.xlu1 %v4454_v42, %s4235_s8  ;;  %v305_v44 = vpop.trf.xlu0  ;;  %v4459_v45 = vld [vmem:[#allocation2 + $0x60] sm:$0xff] }
  0xb4   : > { %410 = vst.msk [vmem:[#allocation2 + $0x79] sm:$0xff] %vm345_vm0, %v305_v44  ;;  %496 = vst.msk [vmem:[#allocation3 + $0x40] sm:$0xff] %vm345_vm0, %v4459_v45  ;;  %v589_v50 = vrot.slane %v4459_v45, 1 }
  0xb7   : > { %663 = vrot.lane.b32.xlu1 %v4465_v46, %s4235_s8  ;;  %v306_v47 = vpop.trf.xlu0  ;;  %v4469_v48 = vld [vmem:[#allocation2 + $0x68] sm:$0xff]  ;;  %v4471_v49 = vld [vmem:[#allocation2 + $0x70] sm:$0x3] }
  0xb8   : > { %411 = vst.msk [vmem:[#allocation2 + $0x81] sm:$0xff] %vm345_vm0, %v306_v47  ;;  %v590_v51 = vrot.slane %v4469_v48, 1  ;;  %497 = vst.msk [vmem:[#allocation3 + $0x48] sm:$0xff] %vm345_vm0, %v4469_v48  ;;  %v592_v53 = vrot.slane %v4471_v49, 1 }
  0xba   : > { %v4479_v52 = vsel %vm568_vm2, %v589_v50, %v590_v51  ;;  %v4490_v56 = vsel %vm568_vm2, %v590_v51, %v592_v53 }
  0xbb   : > { %7225 = vst [vmem:[#allocation7_spill] sm:$0xff] %v4479_v52  ;;  %665 = vrot.lane.b32.xlu1 %v4479_v52, %s4235_s8  ;;  %v307_v54 = vpop.trf.xlu0  ;;  %v4484_v55 = vld [vmem:[#allocation2 + $0x78] sm:$0xff] }
  0xbc   : > { %412 = vst.msk [vmem:[#allocation2 + $0x91] sm:$0xff] %vm345_vm0, %v307_v54  ;;  %498 = vst.msk [vmem:[#allocation3 + $0x50] sm:$0xff] %vm345_vm0, %v4484_v55  ;;  %v594_v60 = vrot.slane %v4484_v55, 1 }
  0xbf   : > { %667 = vrot.lane.b32.xlu1 %v4490_v56, %s4235_s8  ;;  %v308_v57 = vpop.trf.xlu0  ;;  %v4494_v58 = vld [vmem:[#allocation2 + $0x80] sm:$0xff]  ;;  %v4496_v59 = vld [vmem:[#allocation2 + $0x88] sm:$0x3] }
  0xc0   : > { %413 = vst.msk [vmem:[#allocation2 + $0x99] sm:$0xff] %vm345_vm0, %v308_v57  ;;  %v595_v61 = vrot.slane %v4494_v58, 1  ;;  %499 = vst.msk [vmem:[#allocation3 + $0x58] sm:$0xff] %vm345_vm0, %v4494_v58  ;;  %v597_v63 = vrot.slane %v4496_v59, 1  ;;  %v7078_v53 = vrot.slane %v4494_v58, 2  ;;  %v807_v54 = vrot.slane %v4496_v59, 2 }
  0xc2   : > { %v4504_v62 = vsel %vm568_vm2, %v594_v60, %v595_v61  ;;  %v4515_v4 = vsel %vm568_vm2, %v595_v61, %v597_v63  ;;  %v4595_v59 = vsel %vm778_vm4, %v7078_v53, %v807_v54 }
  0xc3   : > { %7226 = vst [vmem:[#allocation8_spill] sm:$0xff] %v4504_v62  ;;  %669 = vrot.lane.b32.xlu1 %v4504_v62, %s4235_s8  ;;  %v309_v0 = vpop.trf.xlu0  ;;  %v4509_v1 = vld [vmem:[#allocation2 + $0x90] sm:$0xff] }
  0xc4   : > { %414 = vst.msk [vmem:[#allocation2 + $0xa9] sm:$0xff] %vm345_vm0, %v309_v0  ;;  %500 = vst.msk [vmem:[#allocation3 + $0x60] sm:$0xff] %vm345_vm0, %v4509_v1  ;;  %v599_v9 = vrot.slane %v4509_v1, 1 }
  0xc7   : > { %671 = vrot.lane.b32.xlu1 %v4515_v4, %s4235_s8  ;;  %v310_v5 = vpop.trf.xlu0  ;;  %v4519_v6 = vld [vmem:[#allocation2 + $0x98] sm:$0xff]  ;;  %v4521_v8 = vld [vmem:[#allocation2 + $0xa0] sm:$0x3] }
  0xc8   : > { %415 = vst.msk [vmem:[#allocation2 + $0xb1] sm:$0xff] %vm345_vm0, %v310_v5  ;;  %v600_v10 = vrot.slane %v4519_v6, 1  ;;  %501 = vst.msk [vmem:[#allocation3 + $0x68] sm:$0xff] %vm345_vm0, %v4519_v6  ;;  %v602_v12 = vrot.slane %v4521_v8, 1  ;;  %v7076_v61 = vrot.slane %v4519_v6, 2  ;;  %v812_v63 = vrot.slane %v4521_v8, 2 }
  0xca   : > { %v4529_v11 = vsel %vm568_vm2, %v599_v9, %v600_v10  ;;  %v4540_v15 = vsel %vm568_vm2, %v600_v10, %v602_v12  ;;  %v4609_v8 = vsel %vm778_vm4, %v7076_v61, %v812_v63 }
  0xcb   : > { %7227 = vst [vmem:[#allocation9_spill] sm:$0xff] %v4529_v11  ;;  %673 = vrot.lane.b32.xlu1 %v4529_v11, %s4235_s8  ;;  %v311_v13 = vpop.trf.xlu0  ;;  %v4534_v14 = vld [vmem:[#allocation2 + $0xa8] sm:$0xff] }
  0xcc   : > { %416 = vst.msk [vmem:[#allocation2 + $0xc1] sm:$0xff] %vm345_vm0, %v311_v13  ;;  %502 = vst.msk [vmem:[#allocation3 + $0x70] sm:$0xff] %vm345_vm0, %v4534_v14  ;;  %v604_v23 = vrot.slane %v4534_v14, 1 }
  0xcf   : > { %675 = vrot.lane.b32.xlu1 %v4540_v15, %s4235_s8  ;;  %v312_v17 = vpop.trf.xlu0  ;;  %v4544_v20 = vld [vmem:[#allocation2 + $0xb0] sm:$0xff]  ;;  %v457_v21 = vld [vmem:[#allocation2 + $0xb8] sm:$0x3] }
  0xd0   : > { %417 = vst.msk [vmem:[#allocation2 + $0xc9] sm:$0xff] %vm345_vm0, %v312_v17  ;;  %v605_v24 = vrot.slane %v4544_v20, 1  ;;  %503 = vst.msk [vmem:[#allocation3 + $0x78] sm:$0xff] %vm345_vm0, %v4544_v20  ;;  %v607_v30 = vrot.slane %v457_v21, 1  ;;  %v7075_v17 = vrot.slane %v4544_v20, 2 }
  0xd2   : > { %v4552_v27 = vsel %vm568_vm2, %v604_v23, %v605_v24  ;;  %v4562_v34 = vsel %vm568_vm2, %v605_v24, %v607_v30  ;;  %v817_v23 = vrot.slane %v457_v21, 2 }
  0xd3   : > { %7228 = vst [vmem:[#allocation10_spill] sm:$0xff] %v4552_v27  ;;  %677 = vrot.lane.b32.xlu1 %v4552_v27, %s4235_s8  ;;  %v329_v31 = vpop.trf.xlu0  ;;  %v4556_v33 = vld [vmem:[#allocation2 + $0xc0] sm:$0xff] }
  0xd4   : > { %7229 = vst [vmem:[#allocation11_spill] sm:$0xff] %v4556_v33  ;;  %418 = vst.msk [vmem:[#allocation2 + $0xd9] sm:$0xff] %vm345_vm0, %v329_v31  ;;  %v609_v47 = vrot.slane %v4556_v33, 1  ;;  %v4628_v21 = vsel %vm778_vm4, %v7075_v17, %v817_v23 }
  0xd5   : > { %504 = vst.msk [vmem:[#allocation3 + $0x80] sm:$0xff] %vm345_vm0, %v4556_v33  ;;  %7236 = vst [vmem:[#allocation18_spill] sm:$0xff] %v4628_v21 }
  0xd7   : > { %679 = vrot.lane.b32.xlu1 %v4562_v34, %s4235_s8  ;;  %v330_v37 = vpop.trf.xlu0  ;;  %v4566_v40 = vld [vmem:[#allocation2 + $0xc8] sm:$0xff]  ;;  %v460_v41 = vld [vmem:[#allocation2 + $0xd0] sm:$0x3] }
  0xd8   : > { %7230 = vst [vmem:[#allocation12_spill] sm:$0xff] %v4566_v40  ;;  %419 = vst.msk [vmem:[#allocation2 + $0xe1] sm:$0xff] %vm345_vm0, %v330_v37  ;;  %v610_v43 = vrot.slane %v4566_v40, 1  ;;  %v612_v44 = vrot.slane %v460_v41, 1  ;;  %v7074_v37 = vrot.slane %v4566_v40, 2 }
  0xd9   : > { %505 = vst.msk [vmem:[#allocation3 + $0x88] sm:$0xff] %vm345_vm0, %v4566_v40 }
  0xda   : > { %v4574_v50 = vsel %vm568_vm2, %v610_v43, %v612_v44  ;;  %v4577_v51 = vsel %vm568_vm2, %v609_v47, %v610_v43  ;;  %v822_v43 = vrot.slane %v460_v41, 2 }
  0xdb   : > { %7231 = vst [vmem:[#allocation13_spill] sm:$0xff] %v4577_v51  ;;  %683 = vrot.lane.b32.xlu0 %v4574_v50, %s4235_s8  ;;  %681 = vrot.lane.b32.xlu1 %v4577_v51, %s4235_s8  ;;  %v331_v57 = vpop.trf.xlu0  ;;  %v4585_v60 = vld [vmem:[#allocation2 + $0xd8] sm:$0xff] }
  0xdc   : > { %7232 = vst [vmem:[#allocation14_spill] sm:$0xff] %v4585_v60  ;;  %420 = vst.msk [vmem:[#allocation2 + $0xf1] sm:$0xff] %vm345_vm0, %v331_v57  ;;  %v614_v10 = vrot.slane %v4585_v60, 1 }
  0xdd   : > { %506 = vst.msk [vmem:[#allocation3 + $0x90] sm:$0xff] %vm345_vm0, %v4585_v60 }
  0xdf   : > { %881 = vrot.lane.b32.xlu0 %v4595_v59, %s4236_s9  ;;  %v332_v0 = vpop.trf.xlu0  ;;  %v4599_v5 = vld [vmem:[#allocation2 + $0xe0] sm:$0xff]  ;;  %v463_v9 = vld [vmem:[#allocation2 + $0xe8] sm:$0x3] }
  0xe0   : > { %7233 = vst [vmem:[#allocation15_spill] sm:$0xff] %v4599_v5  ;;  %421 = vst.msk [vmem:[#allocation2 + $0xf9] sm:$0xff] %vm345_vm0, %v332_v0  ;;  %v615_v12 = vrot.slane %v4599_v5, 1  ;;  %v617_v24 = vrot.slane %v463_v9, 1  ;;  %v4647_v0 = vsel %vm778_vm4, %v7074_v37, %v822_v43  ;;  %v827_v23 = vrot.slane %v463_v9, 2 }
  0xe1   : > { %507 = vst.msk [vmem:[#allocation3 + $0x98] sm:$0xff] %vm345_vm0, %v4599_v5  ;;  %7237 = vst [vmem:[#allocation19_spill] sm:$0xff] %v4647_v0 }
  0xe2   : > { %v4612_v13 = vsel %vm568_vm2, %v614_v10, %v615_v12  ;;  %v4631_v44 = vsel %vm568_vm2, %v615_v12, %v617_v24  ;;  %v7077_v12 = vrot.slane %v4599_v5, 2 }
  0xe3   : > { %7234 = vst [vmem:[#allocation16_spill] sm:$0xff] %v4612_v13  ;;  %885 = vrot.lane.b32.xlu0 %v4609_v8, %s4236_s9  ;;  %685 = vrot.lane.b32.xlu1 %v4612_v13, %s4235_s8  ;;  %v333_v30 = vpop.trf.xlu0  ;;  %v4619_v31 = vld [vmem:[#allocation2 + $0xf0] sm:$0xff] }
  0xe4   : > { %7235 = vst [vmem:[#allocation17_spill] sm:$0xff] %v4619_v31  ;;  %422 = vst.msk [vmem:[#allocation2 + $0x109] sm:$0xff] %vm345_vm0, %v333_v30  ;;  %v619_v41 = vrot.slane %v4619_v31, 1  ;;  %v4666_v9 = vsel %vm778_vm4, %v7077_v12, %v827_v23 }
  0xe5   : > { %508 = vst.msk [vmem:[#allocation3 + $0xa0] sm:$0xff] %vm345_vm0, %v4619_v31  ;;  %7240 = vst [vmem:[#allocation22_spill] sm:$0xff] %v4666_v9 }
  0xe7   : > { %889 = vrot.lane.b32.xlu0 %v4628_v21, %s4236_s9  ;;  %687 = vrot.lane.b32.xlu1 %v4631_v44, %s4235_s8  ;;  %v334_v47 = vpop.trf.xlu0  ;;  %v4637_v54 = vld [vmem:[#allocation2 + $0xf8] sm:$0xff]  ;;  %v466_v57 = vld [vmem:[#allocation2 + $0x100] sm:$0x3]  ;;  %v779_v21 = vrot.slane %v4367_v2, 2 }
  0xe8   : > { %423 = vst.msk [vmem:[#allocation2 + $0x111] sm:$0xff] %vm345_vm0, %v334_v47  ;;  %v620_v63 = vrot.slane %v4637_v54, 1  ;;  %509 = vst.msk [vmem:[#allocation3 + $0xa8] sm:$0xff] %vm345_vm0, %v4637_v54  ;;  %v622_v24 = vrot.slane %v466_v57, 1  ;;  %v7083_v43 = vrot.slane %v4637_v54, 2 }
  0xea   : > { %v4650_v10 = vsel %vm568_vm2, %v619_v41, %v620_v63  ;;  %v832_v41 = vrot.slane %v466_v57, 2  ;;  %v4669_v37 = vsel %vm568_vm2, %v620_v63, %v622_v24 }
  0xeb   : > { %7238 = vst [vmem:[#allocation20_spill] sm:$0xff] %v4650_v10  ;;  %893 = vrot.lane.b32.xlu0 %v4647_v0, %s4236_s9  ;;  %689 = vrot.lane.b32.xlu1 %v4650_v10, %s4235_s8  ;;  %v335_v30 = vpop.trf.xlu0  ;;  %v4657_v47 = vld [vmem:[#allocation2 + $0x108] sm:$0xff] }
  0xec   : > { %7239 = vst [vmem:[#allocation21_spill] sm:$0xff] %v4657_v47  ;;  %424 = vst.msk [vmem:[#allocation2 + $0x121] sm:$0xff] %vm345_vm0, %v335_v30  ;;  %v624_v57 = vrot.slane %v4657_v47, 1  ;;  %v4685_v63 = vsel %vm778_vm4, %v7083_v43, %v832_v41 }
  0xed   : > { %510 = vst.msk [vmem:[#allocation3 + $0xb0] sm:$0xff] %vm345_vm0, %v4657_v47  ;;  %7242 = vst [vmem:[#allocation24_spill] sm:$0xff] %v4685_v63 }
  0xef   : > { %897 = vrot.lane.b32.xlu0 %v4666_v9, %s4236_s9  ;;  %691 = vrot.lane.b32.xlu1 %v4669_v37, %s4235_s8  ;;  %v336_v30 = vpop.trf.xlu0  ;;  %v4675_v17 = vld [vmem:[#allocation2 + $0x110] sm:$0xff]  ;;  %v469_v61 = vld [vmem:[#allocation2 + $0x118] sm:$0x3] }
  0xf0   : > { %7241 = vst [vmem:[#allocation23_spill] sm:$0xff] %v4675_v17  ;;  %425 = vst.msk [vmem:[#allocation2 + $0x129] sm:$0xff] %vm345_vm0, %v336_v30  ;;  %v625_v23 = vrot.slane %v4675_v17, 1  ;;  %v7088_v12 = vrot.slane %v4675_v17, 2  ;;  %v837_v53 = vrot.slane %v469_v61, 2  ;;  %v627_v10 = vrot.slane %v469_v61, 1 }
  0xf1   : > { %511 = vst.msk [vmem:[#allocation3 + $0xb8] sm:$0xff] %vm345_vm0, %v4675_v17 }
  0xf2   : > { %v4688_v24 = vsel %vm568_vm2, %v624_v57, %v625_v23  ;;  %v4703_v41 = vsel %vm778_vm4, %v7088_v12, %v837_v53  ;;  %v4706_v61 = vsel %vm568_vm2, %v625_v23, %v627_v10 }
  0xf3   : > { %7243 = vst [vmem:[#allocation25_spill] sm:$0xff] %v4688_v24  ;;  %901 = vrot.lane.b32.xlu0 %v4685_v63, %s4236_s9  ;;  %693 = vrot.lane.b32.xlu1 %v4688_v24, %s4235_s8  ;;  %v337_v30 = vpop.trf.xlu0  ;;  %v4695_v13 = vld [vmem:[#allocation2 + $0x120] sm:$0xff]  ;;  %7245 = vst [vmem:[#allocation27_spill] sm:$0xff] %v4703_v41 }
  0xf4   : > { %7244 = vst [vmem:[#allocation26_spill] sm:$0xff] %v4695_v13  ;;  %426 = vst.msk [vmem:[#allocation2 + $0x139] sm:$0xff] %vm345_vm0, %v337_v30  ;;  %v629_v53 = vrot.slane %v4695_v13, 1 }
  0xf5   : > { %512 = vst.msk [vmem:[#allocation3 + $0xc0] sm:$0xff] %vm345_vm0, %v4695_v13 }
  0xf7   : > { %905 = vrot.lane.b32.xlu0 %v4703_v41, %s4236_s9  ;;  %695 = vrot.lane.b32.xlu1 %v4706_v61, %s4235_s8  ;;  %v338_v57 = vpop.trf.xlu0  ;;  %v4712_v43 = vld [vmem:[#allocation2 + $0x128] sm:$0xff]  ;;  %v472_v30 = vld [vmem:[#allocation2 + $0x130] sm:$0x3] }
  0xf8   : > { %7246 = vst [vmem:[#allocation28_spill] sm:$0xff] %v4712_v43  ;;  %427 = vst.msk [vmem:[#allocation2 + $0x141] sm:$0xff] %vm345_vm0, %v338_v57  ;;  %v7093_v24 = vrot.slane %v4712_v43, 2  ;;  %v842_v51 = vrot.slane %v472_v30, 2  ;;  %v630_v10 = vrot.slane %v4712_v43, 1  ;;  %v632_v27 = vrot.slane %v472_v30, 1 }
  0xf9   : > { %513 = vst.msk [vmem:[#allocation3 + $0xc8] sm:$0xff] %vm345_vm0, %v4712_v43 }
  0xfa   : > { %v4723_v23 = vsel %vm778_vm4, %v7093_v24, %v842_v51  ;;  %v4726_v12 = vsel %vm568_vm2, %v629_v53, %v630_v10  ;;  %v4738_v51 = vsel %vm568_vm2, %v630_v10, %v632_v27 }
  0xfb   : > { %7247 = vst [vmem:[#allocation29_spill] sm:$0xff] %v4723_v23  ;;  %7248 = vst [vmem:[#allocation30_spill] sm:$0xff] %v4726_v12  ;;  %909 = vrot.lane.b32.xlu0 %v4723_v23, %s4236_s9  ;;  %697 = vrot.lane.b32.xlu1 %v4726_v12, %s4235_s8  ;;  %v339_v57 = vpop.trf.xlu0  ;;  %v4732_v11 = vld [vmem:[#allocation2 + $0x138] sm:$0xff] }
  0xfc   : > { %7249 = vst [vmem:[#allocation31_spill] sm:$0xff] %v4732_v11  ;;  %428 = vst.msk [vmem:[#allocation2 + $0x151] sm:$0xff] %vm345_vm0, %v339_v57  ;;  %v634_v57 = vrot.slane %v4732_v11, 1 }
  0xfd   : > { %514 = vst.msk [vmem:[#allocation3 + $0xd0] sm:$0xff] %vm345_vm0, %v4732_v11 }
  0xff   : > { %699 = vrot.lane.b32.xlu1 %v4738_v51, %s4235_s8  ;;  %v340_v30 = vpop.trf.xlu0  ;;  %v4742_v53 = vld [vmem:[#allocation2 + $0x140] sm:$0xff]  ;;  %v475_v24 = vld [vmem:[#allocation2 + $0x148] sm:$0x3] }
 0x100   : > { %7250 = vst [vmem:[#allocation32_spill] sm:$0xff] %v4742_v53  ;;  %429 = vst.msk [vmem:[#allocation2 + $0x159] sm:$0xff] %vm345_vm0, %v340_v30  ;;  %v7104_v12 = vrot.slane %v4742_v53, 2  ;;  %v847_v23 = vrot.slane %v475_v24, 2  ;;  %v635_v27 = vrot.slane %v4742_v53, 1  ;;  %v637_v62 = vrot.slane %v475_v24, 1 }
 0x101   : > { %515 = vst.msk [vmem:[#allocation3 + $0xd8] sm:$0xff] %vm345_vm0, %v4742_v53 }
 0x102   : > { %v4753_v10 = vsel %vm778_vm4, %v7104_v12, %v847_v23  ;;  %v4756_v41 = vsel %vm568_vm2, %v634_v57, %v635_v27  ;;  %v4768_v23 = vsel %vm568_vm2, %v635_v27, %v637_v62 }
 0x103   : > { %7251 = vst [vmem:[#allocation33_spill] sm:$0xff] %v4753_v10  ;;  %7252 = vst [vmem:[#allocation34_spill] sm:$0xff] %v4756_v41  ;;  %913 = vrot.lane.b32.xlu0 %v4753_v10, %s4236_s9  ;;  %701 = vrot.lane.b32.xlu1 %v4756_v41, %s4235_s8  ;;  %v341_v30 = vpop.trf.xlu0  ;;  %v4762_v63 = vld [vmem:[#allocation2 + $0x150] sm:$0xff] }
 0x104   : > { %7253 = vst [vmem:[#allocation35_spill] sm:$0xff] %v4762_v63  ;;  %430 = vst.msk [vmem:[#allocation2 + $0x169] sm:$0xff] %vm345_vm0, %v341_v30  ;;  %v639_v30 = vrot.slane %v4762_v63, 1 }
 0x105   : > { %516 = vst.msk [vmem:[#allocation3 + $0xe0] sm:$0xff] %vm345_vm0, %v4762_v63 }
 0x107   : > { %703 = vrot.lane.b32.xlu1 %v4768_v23, %s4235_s8  ;;  %v342_v24 = vpop.trf.xlu0  ;;  %v4772_v57 = vld [vmem:[#allocation2 + $0x158] sm:$0xff]  ;;  %v478_v12 = vld [vmem:[#allocation2 + $0x160] sm:$0x3] }
 0x108   : > { %7254 = vst [vmem:[#allocation36_spill] sm:$0xff] %v4772_v57  ;;  %431 = vst.msk [vmem:[#allocation2 + $0x171] sm:$0xff] %vm345_vm0, %v342_v24  ;;  %v7115_v41 = vrot.slane %v4772_v57, 2  ;;  %v852_v10 = vrot.slane %v478_v12, 2  ;;  %v640_v62 = vrot.slane %v4772_v57, 1  ;;  %v642_v9 = vrot.slane %v478_v12, 1 }
 0x109   : > { %517 = vst.msk [vmem:[#allocation3 + $0xe8] sm:$0xff] %vm345_vm0, %v4772_v57 }
 0x10a   : > { %v4783_v27 = vsel %vm778_vm4, %v7115_v41, %v852_v10  ;;  %v4786_v52 = vsel %vm568_vm2, %v639_v30, %v640_v62  ;;  %v4798_v10 = vsel %vm568_vm2, %v640_v62, %v642_v9 }
 0x10b   : > { %7255 = vst [vmem:[#allocation37_spill] sm:$0xff] %v4783_v27  ;;  %7256 = vst [vmem:[#allocation38_spill] sm:$0xff] %v4786_v52  ;;  %917 = vrot.lane.b32.xlu0 %v4783_v27, %s4236_s9  ;;  %705 = vrot.lane.b32.xlu1 %v4786_v52, %s4235_s8  ;;  %v4792_v24 = vld [vmem:[#allocation2 + $0x168] sm:$0xff]  ;;  %v343_v42 = vpop.trf.xlu0 }
 0x10c   : > { %7257 = vst [vmem:[#allocation39_spill] sm:$0xff] %v4792_v24  ;;  %518 = vst.msk [vmem:[#allocation3 + $0xf0] sm:$0xff] %vm345_vm0, %v4792_v24  ;;  %v644_v0 = vrot.slane %v4792_v24, 1 }
 0x10d   : > { %432 = vst.msk [vmem:[#allocation2 + $0x181] sm:$0xff] %vm345_vm0, %v343_v42  ;;  %7258 = vst [vmem:[#allocation40_spill] sm:$0xff] %v4798_v10 }
 0x10f   : > { %707 = vrot.lane.b32.xlu1 %v4798_v10, %s4235_s8  ;;  %v4802_v12 = vld [vmem:[#allocation2 + $0x170] sm:$0xff]  ;;  %v481_v30 = vld [vmem:[#allocation2 + $0x178] sm:$0x3]  ;;  %v344_v41 = vpop.trf.xlu0 }
 0x110   : > { %7259 = vst [vmem:[#allocation41_spill] sm:$0xff] %v4802_v12  ;;  %v7127_v52 = vrot.slane %v4802_v12, 2  ;;  %v857_v27 = vrot.slane %v481_v30, 2  ;;  %519 = vst.msk [vmem:[#allocation3 + $0xf8] sm:$0xff] %vm345_vm0, %v4802_v12  ;;  %v645_v42 = vrot.slane %v4802_v12, 1  ;;  %v647_v32 = vrot.slane %v481_v30, 1 }
 0x111   : > { %433 = vst.msk [vmem:[#allocation2 + $0x189] sm:$0xff] %vm345_vm0, %v344_v41  ;;  %v782_v30 = vrot.slane %v4379_v7, 2  ;;  %v784_v7 = vrot.slane %v4389_v16, 2 }
 0x112   : > { %v4813_v9 = vsel %vm778_vm4, %v7127_v52, %v857_v27  ;;  %v4816_v62 = vsel %vm568_vm2, %v644_v0, %v645_v42  ;;  %v4826_v27 = vsel %vm568_vm2, %v645_v42, %v647_v32  ;;  %v781_v0 = vsel %vm778_vm4, %v779_v21, %v780_v22 }
 0x113   : > { %7260 = vst [vmem:[#allocation42_spill] sm:$0xff] %v4816_v62  ;;  %921 = vrot.lane.b32.xlu0 %v4813_v9, %s4236_s9  ;;  %709 = vrot.lane.b32.xlu1 %v4816_v62, %s4235_s8  ;;  %7261 = vst [vmem:[#allocation43_spill] sm:$0xff] %v4826_v27  ;;  %v783_v3 = vsel %vm778_vm4, %v780_v22, %v782_v30  ;;  %v785_v42 = vrot.slane %v4394_v18, 2  ;;  %v787_v22 = vrot.slane %v4396_v19, 2  ;;  %v790_v30 = vrot.slane %v4419_v28, 2 }
 0x114   : > { %v789_v19 = vrot.slane %v4409_v25, 2  ;;  %v7266_v52 = vrot.slane %v4544_v20, 2 }
 0x115   : > { %v654_v41 = vpop.permute.xlu1 %653 }
 0x116   : > { %748 = vst.msk [vmem:[#allocation3 + $0x10] sm:$0xff] %vm745_vm3, %v654_v41  ;;  %v4847_v41 = vsel %vm778_vm4, %v784_v7, %v785_v42 }
 0x117   : > { %992 = vrot.lane.b32.xlu0 %v4394_v18, %s4237_s10  ;;  %711 = vrot.lane.b32.xlu1 %v4826_v27, %s4235_s8 }
 0x119   : > { %v656_v2 = vpop.permute.xlu1 %655 }
 0x11a   : > { %749 = vst.msk [vmem:[#allocation3 + $0x18] sm:$0xff] %vm745_vm3, %v656_v2 }
 0x11b   : > { %996 = vrot.lane.b32.xlu0 %v4419_v28, %s4237_s10  ;;  %859 = vrot.lane.b32.xlu1 %v781_v0, %s4236_s9  ;;  %v4856_v0 = vsel %vm778_vm4, %v785_v42, %v787_v22 }
 0x11d   : > { %v658_v32 = vpop.permute.xlu1 %657 }
 0x11e   : > { %750 = vst.msk [vmem:[#allocation3 + $0x20] sm:$0xff] %vm745_vm3, %v658_v32  ;;  %v792_v32 = vrot.slane %v4421_v29, 2  ;;  %v794_v29 = vrot.slane %v4434_v35, 2 }
 0x11f   : > { %1000 = vrot.lane.b32.xlu0 %v4444_v38, %s4237_s10  ;;  %861 = vrot.lane.b32.xlu1 %v783_v3, %s4236_s9  ;;  %v4866_v3 = vsel %vm778_vm4, %v789_v19, %v790_v30  ;;  %v797_v19 = vrot.slane %v4446_v39, 2  ;;  %v799_v39 = vrot.slane %v4459_v45, 2 }
 0x120   : > { %v4875_v7 = vsel %vm778_vm4, %v790_v30, %v792_v32  ;;  %v800_v32 = vrot.slane %v4469_v48, 2 }
 0x121   : > { %v660_v21 = vpop.permute.xlu1 %659 }
 0x122   : > { %751 = vst.msk [vmem:[#allocation3 + $0x28] sm:$0xff] %vm745_vm3, %v660_v21  ;;  %v795_v21 = vrot.slane %v4444_v38, 2 }
 0x123   : > { %1004 = vrot.lane.b32.xlu0 %v4469_v48, %s4237_s10  ;;  %863 = vrot.lane.b32.xlu1 %v4847_v41, %s4236_s9 }
 0x125   : > { %v662_v18 = vpop.permute.xlu1 %661 }
 0x126   : > { %752 = vst.msk [vmem:[#allocation3 + $0x30] sm:$0xff] %vm745_vm3, %v662_v18  ;;  %v4885_v18 = vsel %vm778_vm4, %v794_v29, %v795_v21  ;;  %v4904_v29 = vsel %vm778_vm4, %v799_v39, %v800_v32  ;;  %v7262_v39 = vrot.slane %v4494_v58, 2 }
 0x127   : > { %1008 = vrot.lane.b32.xlu0 %v4494_v58, %s4237_s10  ;;  %865 = vrot.lane.b32.xlu1 %v4856_v0, %s4236_s9 }
 0x129   : > { %v664_v2 = vpop.permute.xlu1 %663 }
 0x12a   : > { %753 = vst.msk [vmem:[#allocation3 + $0x38] sm:$0xff] %vm745_vm3, %v664_v2  ;;  %v4894_v2 = vsel %vm778_vm4, %v795_v21, %v797_v19 }
 0x12b   : > { %1012 = vrot.lane.b32.xlu0 %v4519_v6, %s4237_s10  ;;  %867 = vrot.lane.b32.xlu1 %v4866_v3, %s4236_s9 }
 0x12d   : > { %v666_v42 = vpop.permute.xlu1 %665 }
 0x12e   : > { %754 = vst.msk [vmem:[#allocation3 + $0x40] sm:$0xff] %vm745_vm3, %v666_v42 }
 0x12f   : > { %1016 = vrot.lane.b32.xlu0 %v4544_v20, %s4237_s10  ;;  %869 = vrot.lane.b32.xlu1 %v4875_v7, %s4236_s9 }
 0x131   : > { %v668_v22 = vpop.permute.xlu1 %667 }
 0x132   : > { %755 = vst.msk [vmem:[#allocation3 + $0x48] sm:$0xff] %vm745_vm3, %v668_v22  ;;  %v802_v22 = vrot.slane %v4471_v49, 2  ;;  %v804_v49 = vrot.slane %v4484_v55, 2 }
 0x133   : > { %1020 = vrot.lane.b32.xlu0 %v4566_v40, %s4237_s10  ;;  %871 = vrot.lane.b32.xlu1 %v4885_v18, %s4236_s9 }
 0x134   : > { %v4913_v19 = vsel %vm778_vm4, %v800_v32, %v802_v22  ;;  %v809_v32 = vrot.slane %v4509_v1, 2 }
 0x135   : > { %v670_v30 = vpop.permute.xlu1 %669 }
 0x136   : > { %756 = vst.msk [vmem:[#allocation3 + $0x50] sm:$0xff] %vm745_vm3, %v670_v30 }
 0x137   : > { %1024 = vrot.lane.b32.xlu0 %v4599_v5, %s4237_s10  ;;  %873 = vrot.lane.b32.xlu1 %v4894_v2, %s4236_s9 }
 0x139   : > { %v672_v42 = vpop.permute.xlu1 %671 }
 0x13a   : > { %757 = vst.msk [vmem:[#allocation3 + $0x58] sm:$0xff] %vm745_vm3, %v672_v42  ;;  %v4924_v42 = vsel %vm778_vm4, %v804_v49, %v7262_v39  ;;  %v814_v49 = vrot.slane %v4534_v14, 2 }
 0x13b   : > { %1028 = vrot.lane.b32.xlu0 %v4637_v54, %s4237_s10  ;;  %875 = vrot.lane.b32.xlu1 %v4904_v29, %s4236_s9  ;;  %7263 = vst [vmem:[#allocation44_spill] sm:$0xff] %v4924_v42 }
 0x13d   : > { %v674_v21 = vpop.permute.xlu1 %673 }
 0x13e   : > { %758 = vst.msk [vmem:[#allocation3 + $0x60] sm:$0xff] %vm745_vm3, %v674_v21  ;;  %v7264_v21 = vrot.slane %v4519_v6, 2 }
 0x13f   : > { %1032 = vrot.lane.b32.xlu0 %v4675_v17, %s4237_s10  ;;  %877 = vrot.lane.b32.xlu1 %v4913_v19, %s4236_s9 }
 0x141   : > { %v676_v30 = vpop.permute.xlu1 %675 }
 0x142   : > { %759 = vst.msk [vmem:[#allocation3 + $0x68] sm:$0xff] %vm745_vm3, %v676_v30  ;;  %v4935_v30 = vsel %vm778_vm4, %v809_v32, %v7264_v21  ;;  %v819_v32 = vrot.slane %v4556_v33, 2 }
 0x143   : > { %1036 = vrot.lane.b32.xlu0 %v4712_v43, %s4237_s10  ;;  %879 = vrot.lane.b32.xlu1 %v4924_v42, %s4236_s9  ;;  %7265 = vst [vmem:[#allocation45_spill] sm:$0xff] %v4935_v30 }
 0x145   : > { %v678_v22 = vpop.permute.xlu1 %677 }
 0x146   : > { %760 = vst.msk [vmem:[#allocation3 + $0x70] sm:$0xff] %vm745_vm3, %v678_v22  ;;  %v4946_v22 = vsel %vm778_vm4, %v814_v49, %v7266_v52  ;;  %v824_v52 = vrot.slane %v4585_v60, 2  ;;  %v4965_v49 = vld [vmem:[#allocation2 + $0x188] sm:$0xff] }
 0x147   : > { %1040 = vrot.lane.b32.xlu0 %v4742_v53, %s4237_s10  ;;  %883 = vrot.lane.b32.xlu1 %v4935_v30, %s4236_s9  ;;  %7267 = vst [vmem:[#allocation46_spill] sm:$0xff] %v4946_v22 }
 0x149   : > { %v680_v39 = vpop.permute.xlu1 %679 }
 0x14a   : > { %761 = vst.msk [vmem:[#allocation3 + $0x78] sm:$0xff] %vm745_vm3, %v680_v39  ;;  %v7268_v39 = vrot.slane %v4566_v40, 2 }
 0x14b   : > { %1044 = vrot.lane.b32.xlu0 %v4772_v57, %s4237_s10  ;;  %887 = vrot.lane.b32.xlu1 %v4946_v22, %s4236_s9 }
 0x14c   : > { %v4958_v42 = vsel %vm778_vm4, %v819_v32, %v7268_v39  ;;  %v829_v32 = vrot.slane %v4619_v31, 2 }
 0x14d   : > { %v682_v21 = vpop.permute.xlu1 %681  ;;  %v684_v30 = vpop.permute.xlu0 %683 }
 0x14e   : > { %762 = vst.msk [vmem:[#allocation3 + $0x80] sm:$0xff] %vm745_vm3, %v682_v21  ;;  %763 = vst.msk [vmem:[#allocation3 + $0x88] sm:$0xff] %vm745_vm3, %v684_v30  ;;  %v7269_v30 = vrot.slane %v4599_v5, 2 }
 0x14f   : > { %1048 = vrot.lane.b32.xlu0 %v4802_v12, %s4237_s10  ;;  %891 = vrot.lane.b32.xlu1 %v4958_v42, %s4236_s9 }
 0x150   : > { %v4971_v21 = vsel %vm778_vm4, %v824_v52, %v7269_v30  ;;  %v834_v52 = vrot.slane %v4657_v47, 2 }
 0x151   : > { %v882_v22 = vpop.permute.xlu0 %881  ;;  %7270 = vst [vmem:[#allocation47_spill] sm:$0xff] %v4971_v21 }
 0x152   : > { %967 = vst.msk [vmem:[#allocation3 + $0x58] sm:$0xff] %vm955_vm5, %v882_v22  ;;  %v7271_v22 = vrot.slane %v4637_v54, 2 }
 0x153   : > { %895 = vrot.lane.b32.xlu1 %v4971_v21, %s4236_s9  ;;  %1052 = vrot.lane.b32.xlu0 %v4965_v49, %s4237_s10 }
 0x154   : > { %v4983_v5 = vsel %vm778_vm4, %v829_v32, %v7271_v22 }
 0x155   : > { %v686_v39 = vpop.permute.xlu1 %685  ;;  %v886_v40 = vpop.permute.xlu0 %885 }
 0x156   : > { %764 = vst.msk [vmem:[#allocation3 + $0x90] sm:$0xff] %vm745_vm3, %v686_v39 }
 0x157   : > { %969 = vst.msk [vmem:[#allocation3 + $0x68] sm:$0xff] %vm955_vm5, %v886_v40  ;;  %899 = vrot.lane.b32.xlu1 %v4983_v5, %s4236_s9  ;;  %1127 = vrot.lane.b32.xlu0 %v4415_v26, %s4238_s11  ;;  %v7272_v40 = vrot.slane %v4675_v17, 2  ;;  %v839_v26 = vrot.slane %v4695_v13, 2 }
 0x159   : > { %v688_v30 = vpop.permute.xlu1 %687  ;;  %v890_v21 = vpop.permute.xlu0 %889  ;;  %v4995_v32 = vsel %vm778_vm4, %v834_v52, %v7272_v40  ;;  %v844_v52 = vrot.slane %v4732_v11, 2 }
 0x15a   : > { %765 = vst.msk [vmem:[#allocation3 + $0x98] sm:$0xff] %vm745_vm3, %v688_v30 }
 0x15b   : > { %971 = vst.msk [vmem:[#allocation3 + $0x78] sm:$0xff] %vm955_vm5, %v890_v21  ;;  %903 = vrot.lane.b32.xlu1 %v4995_v32, %s4236_s9  ;;  %1131 = vrot.lane.b32.xlu0 %v4440_v36, %s4238_s11  ;;  %v7273_v21 = vrot.slane %v4712_v43, 2 }
 0x15d   : > { %v690_v39 = vpop.permute.xlu1 %689  ;;  %v894_v22 = vpop.permute.xlu0 %893  ;;  %v5007_v30 = vsel %vm778_vm4, %v839_v26, %v7273_v21  ;;  %v849_v26 = vrot.slane %v4762_v63, 2 }
 0x15e   : > { %766 = vst.msk [vmem:[#allocation3 + $0xa0] sm:$0xff] %vm745_vm3, %v690_v39  ;;  %v7274_v39 = vrot.slane %v4742_v53, 2 }
 0x15f   : > { %973 = vst.msk [vmem:[#allocation3 + $0x88] sm:$0xff] %vm955_vm5, %v894_v22  ;;  %907 = vrot.lane.b32.xlu1 %v5007_v30, %s4236_s9  ;;  %1135 = vrot.lane.b32.xlu0 %v4465_v46, %s4238_s11 }
 0x160   : > { %v5019_v22 = vsel %vm778_vm4, %v844_v52, %v7274_v39  ;;  %v854_v52 = vrot.slane %v4792_v24, 2 }
 0x161   : > { %v692_v40 = vpop.permute.xlu1 %691  ;;  %v898_v17 = vpop.permute.xlu0 %897 }
 0x162   : > { %767 = vst.msk [vmem:[#allocation3 + $0xa8] sm:$0xff] %vm745_vm3, %v692_v40 }
 0x163   : > { %975 = vst.msk [vmem:[#allocation3 + $0x98] sm:$0xff] %vm955_vm5, %v898_v17  ;;  %911 = vrot.lane.b32.xlu1 %v5019_v22, %s4236_s9  ;;  %1139 = vrot.lane.b32.xlu0 %v4490_v56, %s4238_s11  ;;  %v7275_v17 = vrot.slane %v4772_v57, 2  ;;  %v7292_v57 = vld [vmem:[#allocation13_spill] sm:$0xff] }
 0x165   : > { %v694_v21 = vpop.permute.xlu1 %693  ;;  %v902_v43 = vpop.permute.xlu0 %901  ;;  %v5031_v40 = vsel %vm778_vm4, %v849_v26, %v7275_v17 }
 0x166   : > { %768 = vst.msk [vmem:[#allocation3 + $0xb0] sm:$0xff] %vm745_vm3, %v694_v21  ;;  %v7276_v21 = vrot.slane %v4802_v12, 2 }
 0x167   : > { %977 = vst.msk [vmem:[#allocation3 + $0xa8] sm:$0xff] %vm955_vm5, %v902_v43  ;;  %915 = vrot.lane.b32.xlu1 %v5031_v40, %s4236_s9  ;;  %1143 = vrot.lane.b32.xlu0 %v4515_v4, %s4238_s11 }
 0x168   : > { %v5042_v43 = vsel %vm778_vm4, %v854_v52, %v7276_v21 }
 0x169   : > { %v696_v39 = vpop.permute.xlu1 %695  ;;  %v906_v53 = vpop.permute.xlu0 %905 }
 0x16a   : > { %769 = vst.msk [vmem:[#allocation3 + $0xb8] sm:$0xff] %vm745_vm3, %v696_v39 }
 0x16b   : > { %979 = vst.msk [vmem:[#allocation3 + $0xb8] sm:$0xff] %vm955_vm5, %v906_v53  ;;  %919 = vrot.lane.b32.xlu1 %v5042_v43, %s4236_s9  ;;  %1147 = vrot.lane.b32.xlu0 %v4540_v15, %s4238_s11 }
 0x16d   : > { %v698_v26 = vpop.permute.xlu1 %697  ;;  %v910_v52 = vpop.permute.xlu0 %909 }
 0x16e   : > { %770 = vst.msk [vmem:[#allocation3 + $0xc0] sm:$0xff] %vm745_vm3, %v698_v26 }
 0x16f   : > { %990 = vrot.lane.b32.xlu1 %v4389_v16, %s4237_s10  ;;  %1151 = vrot.lane.b32.xlu0 %v4562_v34, %s4238_s11 }
 0x171   : > { %v700_v17 = vpop.permute.xlu1 %699 }
 0x172   : > { %771 = vst.msk [vmem:[#allocation3 + $0xc8] sm:$0xff] %vm745_vm3, %v700_v17 }
 0x173   : > { %981 = vst.msk [vmem:[#allocation3 + $0xc8] sm:$0xff] %vm955_vm5, %v910_v52  ;;  %994 = vrot.lane.b32.xlu1 %v4409_v25, %s4237_s10  ;;  %1155 = vrot.lane.b32.xlu0 %v4574_v50, %s4238_s11 }
 0x175   : > { %v702_v53 = vpop.permute.xlu1 %701  ;;  %v914_v39 = vpop.permute.xlu0 %913 }
 0x176   : > { %772 = vst.msk [vmem:[#allocation3 + $0xd0] sm:$0xff] %vm745_vm3, %v702_v53 }
 0x177   : > { %998 = vrot.lane.b32.xlu1 %v4434_v35, %s4237_s10  ;;  %1159 = vrot.lane.b32.xlu0 %v4631_v44, %s4238_s11 }
 0x179   : > { %v704_v16 = vpop.permute.xlu1 %703 }
 0x17a   : > { %773 = vst.msk [vmem:[#allocation3 + $0xd8] sm:$0xff] %vm745_vm3, %v704_v16 }
 0x17b   : > { %983 = vst.msk [vmem:[#allocation3 + $0xd8] sm:$0xff] %vm955_vm5, %v914_v39  ;;  %1002 = vrot.lane.b32.xlu1 %v4459_v45, %s4237_s10  ;;  %1163 = vrot.lane.b32.xlu0 %v4669_v37, %s4238_s11 }
 0x17d   : > { %v706_v21 = vpop.permute.xlu1 %705  ;;  %v918_v26 = vpop.permute.xlu0 %917 }
 0x17e   : > { %774 = vst.msk [vmem:[#allocation3 + $0xe0] sm:$0xff] %vm745_vm3, %v706_v21  ;;  %v5087_v21 = vld [vmem:[#allocation2 + $0x190] sm:$0x3] }
 0x17f   : > { %1006 = vrot.lane.b32.xlu1 %v4484_v55, %s4237_s10  ;;  %1167 = vrot.lane.b32.xlu0 %v4706_v61, %s4238_s11 }
 0x181   : > { %v708_v17 = vpop.permute.xlu1 %707 }
 0x182   : > { %775 = vst.msk [vmem:[#allocation3 + $0xe8] sm:$0xff] %vm745_vm3, %v708_v17  ;;  %v1123_v17 = vrot.slane %v5087_v21, 1 }
 0x183   : > { %985 = vst.msk [vmem:[#allocation3 + $0xe8] sm:$0xff] %vm955_vm5, %v918_v26  ;;  %1010 = vrot.lane.b32.xlu1 %v4509_v1, %s4237_s10  ;;  %1171 = vrot.lane.b32.xlu0 %v4738_v51, %s4238_s11  ;;  %v7144_v26 = vrot.slane %v4965_v49, 1 }
 0x185   : > { %v710_v52 = vpop.permute.xlu1 %709  ;;  %v922_v53 = vpop.permute.xlu0 %921 }
 0x186   : > { %776 = vst.msk [vmem:[#allocation3 + $0xf0] sm:$0xff] %vm745_vm3, %v710_v52 }
 0x187   : > { %1014 = vrot.lane.b32.xlu1 %v4534_v14, %s4237_s10  ;;  %1175 = vrot.lane.b32.xlu0 %v4768_v23, %s4238_s11 }
 0x189   : > { %v712_v16 = vpop.permute.xlu1 %711  ;;  %v993_v39 = vpop.permute.xlu0 %992 }
 0x18a   : > { %777 = vst.msk [vmem:[#allocation3 + $0xf8] sm:$0xff] %vm745_vm3, %v712_v16 }
 0x18b   : > { %987 = vst.msk [vmem:[#allocation3 + $0xf8] sm:$0xff] %vm955_vm5, %v922_v53  ;;  %1018 = vrot.lane.b32.xlu1 %v4556_v33, %s4237_s10  ;;  %1179 = vrot.lane.b32.xlu0 %v4798_v10, %s4238_s11  ;;  %v5105_v53 = vsel %vm568_vm2, %v7144_v26, %v1123_v17  ;;  %v7280_v26 = vld [vmem:[#allocation5_spill] sm:$0xff] }
 0x18c   : > { %7277 = vst [vmem:[#allocation48_spill] sm:$0xff] %v5105_v53  ;;  %v7291_v10 = vld [vmem:[#allocation33_spill] sm:$0xff] }
 0x18d   : > { %v860_v52 = vpop.permute.xlu1 %859  ;;  %v997_v12 = vpop.permute.xlu0 %996 }
 0x18e   : > { %956 = vst.msk [vmem:[#allocation3] sm:$0xff] %vm955_vm5, %v860_v52 }
 0x18f   : > { %1022 = vrot.lane.b32.xlu1 %v4585_v60, %s4237_s10  ;;  %1183 = vrot.lane.b32.xlu0 %v4826_v27, %s4238_s11  ;;  %v7290_v27 = vld [vmem:[#allocation10_spill] sm:$0xff] }
 0x191   : > { %v862_v16 = vpop.permute.xlu1 %861  ;;  %v1001_v33 = vpop.permute.xlu0 %1000 }
 0x192   : > { %957 = vst.msk [vmem:[#allocation3 + $0x8] sm:$0xff] %vm955_vm5, %v862_v16 }
 0x193   : > { %1026 = vrot.lane.b32.xlu1 %v4619_v31, %s4237_s10  ;;  %1187 = vrot.lane.b32.xlu0 %v5105_v53, %s4238_s11  ;;  %1088 = vst.msk [vmem:[#allocation3 + $0x8] sm:$0xff] %vm1086_vm6, %v993_v39  ;;  %v7288_v31 = vld [vmem:[#allocation9_spill] sm:$0xff] }
 0x194   : > { %v7289_v53 = vld [vmem:[#allocation29_spill] sm:$0xff] }
 0x195   : > { %v864_v52 = vpop.permute.xlu1 %863  ;;  %v1005_v60 = vpop.permute.xlu0 %1004 }
 0x196   : > { %958 = vst.msk [vmem:[#allocation3 + $0x10] sm:$0xff] %vm955_vm5, %v864_v52 }
 0x197   : > { %1030 = vrot.lane.b32.xlu1 %v4657_v47, %s4237_s10  ;;  %1261 = vrot.lane.b32.xlu0 %v4856_v0, %s4239_s12  ;;  %v7287_v47 = vld [vmem:[#allocation27_spill] sm:$0xff] }
 0x199   : > { %v866_v17 = vpop.permute.xlu1 %865  ;;  %v1009_v16 = vpop.permute.xlu0 %1008 }
 0x19a   : > { %959 = vst.msk [vmem:[#allocation3 + $0x18] sm:$0xff] %vm955_vm5, %v866_v17 }
 0x19b   : > { %1034 = vrot.lane.b32.xlu1 %v4695_v13, %s4237_s10  ;;  %1265 = vrot.lane.b32.xlu0 %v4875_v7, %s4239_s12  ;;  %1090 = vst.msk [vmem:[#allocation3 + $0x18] sm:$0xff] %vm1086_vm6, %v997_v12  ;;  %v7286_v13 = vld [vmem:[#allocation8_spill] sm:$0xff] }
 0x19d   : > { %v868_v39 = vpop.permute.xlu1 %867  ;;  %v1013_v52 = vpop.permute.xlu0 %1012 }
 0x19e   : > { %960 = vst.msk [vmem:[#allocation3 + $0x20] sm:$0xff] %vm955_vm5, %v868_v39 }
 0x19f   : > { %1098 = vst.msk [vmem:[#allocation3 + $0x58] sm:$0xff] %vm1086_vm6, %v1013_v52  ;;  %1038 = vrot.lane.b32.xlu1 %v4732_v11, %s4237_s10  ;;  %1269 = vrot.lane.b32.xlu0 %v4894_v2, %s4239_s12  ;;  %v7285_v11 = vld [vmem:[#allocation24_spill] sm:$0xff] }
 0x1a1   : > { %v870_v0 = vpop.permute.xlu1 %869  ;;  %v1017_v17 = vpop.permute.xlu0 %1016 }
 0x1a2   : > { %961 = vst.msk [vmem:[#allocation3 + $0x28] sm:$0xff] %vm955_vm5, %v870_v0  ;;  %v5145_v0 = vld [vmem:[#allocation2 + $0x180] sm:$0xff] }
 0x1a3   : > { %1100 = vst.msk [vmem:[#allocation3 + $0x68] sm:$0xff] %vm1086_vm6, %v1017_v17  ;;  %1092 = vst.msk [vmem:[#allocation3 + $0x28] sm:$0xff] %vm1086_vm6, %v1001_v33  ;;  %1042 = vrot.lane.b32.xlu1 %v4762_v63, %s4237_s10  ;;  %1273 = vrot.lane.b32.xlu0 %v4913_v19, %s4239_s12  ;;  %v7284_v63 = vld [vmem:[#allocation7_spill] sm:$0xff] }
 0x1a5   : > { %v872_v12 = vpop.permute.xlu1 %871  ;;  %v1021_v39 = vpop.permute.xlu0 %1020 }
 0x1a6   : > { %962 = vst.msk [vmem:[#allocation3 + $0x30] sm:$0xff] %vm955_vm5, %v872_v12 }
 0x1a7   : > { %1102 = vst.msk [vmem:[#allocation3 + $0x78] sm:$0xff] %vm1086_vm6, %v1021_v39  ;;  %1046 = vrot.lane.b32.xlu1 %v4792_v24, %s4237_s10  ;;  %1277 = vrot.lane.b32.xlu0 %v4595_v59, %s4239_s12  ;;  %v7278_v39 = vld [vmem:[#allocation4_spill] sm:$0xff] }
 0x1a9   : > { %v874_v52 = vpop.permute.xlu1 %873  ;;  %v1025_v33 = vpop.permute.xlu0 %1024 }
 0x1aa   : > { %963 = vst.msk [vmem:[#allocation3 + $0x38] sm:$0xff] %vm955_vm5, %v874_v52  ;;  %v7279_v52 = vld [vmem:[#allocation18_spill] sm:$0xff] }
 0x1ab   : > { %1104 = vst.msk [vmem:[#allocation3 + $0x88] sm:$0xff] %vm1086_vm6, %v1025_v33  ;;  %1094 = vst.msk [vmem:[#allocation3 + $0x38] sm:$0xff] %vm1086_vm6, %v1005_v60  ;;  %1050 = vrot.lane.b32.xlu1 %v5145_v0, %s4237_s10  ;;  %1281 = vrot.lane.b32.xlu0 %v4609_v8, %s4239_s12 }
 0x1ad   : > { %v876_v17 = vpop.permute.xlu1 %875  ;;  %v1029_v12 = vpop.permute.xlu0 %1028 }
 0x1ae   : > { %964 = vst.msk [vmem:[#allocation3 + $0x40] sm:$0xff] %vm955_vm5, %v876_v17  ;;  %v7281_v17 = vld [vmem:[#allocation19_spill] sm:$0xff] }
 0x1af   : > { %1106 = vst.msk [vmem:[#allocation3 + $0x98] sm:$0xff] %vm1086_vm6, %v1029_v12  ;;  %1125 = vrot.lane.b32.xlu1 %v7278_v39, %s4238_s11  ;;  %1285 = vrot.lane.b32.xlu0 %v7279_v52, %s4239_s12  ;;  %v7282_v39 = vld [vmem:[#allocation6_spill] sm:$0xff] }
 0x1b1   : > { %v878_v33 = vpop.permute.xlu1 %877  ;;  %v1033_v60 = vpop.permute.xlu0 %1032 }
 0x1b2   : > { %965 = vst.msk [vmem:[#allocation3 + $0x48] sm:$0xff] %vm955_vm5, %v878_v33  ;;  %v7283_v33 = vld [vmem:[#allocation22_spill] sm:$0xff] }
 0x1b3   : > { %1108 = vst.msk [vmem:[#allocation3 + $0xa8] sm:$0xff] %vm1086_vm6, %v1033_v60  ;;  %1096 = vst.msk [vmem:[#allocation3 + $0x48] sm:$0xff] %vm1086_vm6, %v1009_v16  ;;  %1129 = vrot.lane.b32.xlu1 %v7280_v26, %s4238_s11  ;;  %1289 = vrot.lane.b32.xlu0 %v7281_v17, %s4239_s12 }
 0x1b5   : > { %v880_v12 = vpop.permute.xlu1 %879  ;;  %v1037_v24 = vpop.permute.xlu0 %1036 }
 0x1b6   : > { %966 = vst.msk [vmem:[#allocation3 + $0x50] sm:$0xff] %vm955_vm5, %v880_v12 }
 0x1b7   : > { %1110 = vst.msk [vmem:[#allocation3 + $0xb8] sm:$0xff] %vm1086_vm6, %v1037_v24  ;;  %1133 = vrot.lane.b32.xlu1 %v7282_v39, %s4238_s11  ;;  %1293 = vrot.lane.b32.xlu0 %v7283_v33, %s4239_s12 }
 0x1b9   : > { %v884_v60 = vpop.permute.xlu1 %883  ;;  %v1041_v16 = vpop.permute.xlu0 %1040 }
 0x1ba   : > { %968 = vst.msk [vmem:[#allocation3 + $0x60] sm:$0xff] %vm955_vm5, %v884_v60 }
 0x1bb   : > { %1112 = vst.msk [vmem:[#allocation3 + $0xc8] sm:$0xff] %vm1086_vm6, %v1041_v16  ;;  %1137 = vrot.lane.b32.xlu1 %v7284_v63, %s4238_s11  ;;  %1297 = vrot.lane.b32.xlu0 %v7285_v11, %s4239_s12 }
 0x1bd   : > { %v888_v12 = vpop.permute.xlu1 %887  ;;  %v1045_v24 = vpop.permute.xlu0 %1044 }
 0x1be   : > { %970 = vst.msk [vmem:[#allocation3 + $0x70] sm:$0xff] %vm955_vm5, %v888_v12 }
 0x1bf   : > { %1114 = vst.msk [vmem:[#allocation3 + $0xd8] sm:$0xff] %vm1086_vm6, %v1045_v24  ;;  %1141 = vrot.lane.b32.xlu1 %v7286_v13, %s4238_s11  ;;  %1301 = vrot.lane.b32.xlu0 %v7287_v47, %s4239_s12 }
 0x1c1   : > { %v892_v60 = vpop.permute.xlu1 %891  ;;  %v1049_v16 = vpop.permute.xlu0 %1048 }
 0x1c2   : > { %972 = vst.msk [vmem:[#allocation3 + $0x80] sm:$0xff] %vm955_vm5, %v892_v60 }
 0x1c3   : > { %1116 = vst.msk [vmem:[#allocation3 + $0xe8] sm:$0xff] %vm1086_vm6, %v1049_v16  ;;  %1145 = vrot.lane.b32.xlu1 %v7288_v31, %s4238_s11  ;;  %1305 = vrot.lane.b32.xlu0 %v7289_v53, %s4239_s12 }
 0x1c5   : > { %v896_v12 = vpop.permute.xlu1 %895  ;;  %v1053_v24 = vpop.permute.xlu0 %1052 }
 0x1c6   : > { %974 = vst.msk [vmem:[#allocation3 + $0x90] sm:$0xff] %vm955_vm5, %v896_v12  ;;  %v7293_v12 = vld [vmem:[#allocation37_spill] sm:$0xff] }
 0x1c7   : > { %1118 = vst.msk [vmem:[#allocation3 + $0xf8] sm:$0xff] %vm1086_vm6, %v1053_v24  ;;  %1149 = vrot.lane.b32.xlu1 %v7290_v27, %s4238_s11  ;;  %1309 = vrot.lane.b32.xlu0 %v7291_v10, %s4239_s12  ;;  %v7155_v27 = vrot.slane %v4965_v49, 2  ;;  %v1257_v10 = vrot.slane %v5087_v21, 2 }
 0x1c9   : > { %v900_v60 = vpop.permute.xlu1 %899  ;;  %v1128_v16 = vpop.permute.xlu0 %1127 }
 0x1ca   : > { %976 = vst.msk [vmem:[#allocation3 + $0xa0] sm:$0xff] %vm955_vm5, %v900_v60  ;;  %v7294_v60 = vld [vmem:[#allocation16_spill] sm:$0xff] }
 0x1cb   : > { %1223 = vst.msk [vmem:[#allocation3 + $0x8] sm:$0xff] %vm1221_vm7, %v1128_v16  ;;  %1153 = vrot.lane.b32.xlu1 %v7292_v57, %s4238_s11  ;;  %1313 = vrot.lane.b32.xlu0 %v7293_v12, %s4239_s12 }
 0x1cd   : > { %v904_v24 = vpop.permute.xlu1 %903  ;;  %v1132_v31 = vpop.permute.xlu0 %1131 }
 0x1ce   : > { %978 = vst.msk [vmem:[#allocation3 + $0xb0] sm:$0xff] %vm955_vm5, %v904_v24  ;;  %v7295_v24 = vld [vmem:[#allocation20_spill] sm:$0xff] }
 0x1cf   : > { %1225 = vst.msk [vmem:[#allocation3 + $0x18] sm:$0xff] %vm1221_vm7, %v1132_v31  ;;  %1157 = vrot.lane.b32.xlu1 %v7294_v60, %s4238_s11  ;;  %1317 = vrot.lane.b32.xlu0 %v4813_v9, %s4239_s12  ;;  %v5214_v31 = vsel %vm778_vm4, %v7155_v27, %v1257_v10  ;;  %v7297_v27 = vld [vmem:[#allocation30_spill] sm:$0xff] }
 0x1d1   : > { %v908_v16 = vpop.permute.xlu1 %907  ;;  %v1136_v57 = vpop.permute.xlu0 %1135 }
 0x1d2   : > { %980 = vst.msk [vmem:[#allocation3 + $0xc0] sm:$0xff] %vm955_vm5, %v908_v16  ;;  %v7296_v16 = vld [vmem:[#allocation25_spill] sm:$0xff] }
 0x1d3   : > { %1227 = vst.msk [vmem:[#allocation3 + $0x28] sm:$0xff] %vm1221_vm7, %v1136_v57  ;;  %1161 = vrot.lane.b32.xlu1 %v7295_v24, %s4238_s11  ;;  %1321 = vrot.lane.b32.xlu0 %v5214_v31, %s4239_s12 }
 0x1d5   : > { %v912_v21 = vpop.permute.xlu1 %911  ;;  %v1140_v60 = vpop.permute.xlu0 %1139 }
 0x1d6   : > { %982 = vst.msk [vmem:[#allocation3 + $0xd0] sm:$0xff] %vm955_vm5, %v912_v21 }
 0x1d7   : > { %1229 = vst.msk [vmem:[#allocation3 + $0x38] sm:$0xff] %vm1221_vm7, %v1140_v60  ;;  %1165 = vrot.lane.b32.xlu1 %v7296_v16, %s4238_s11  ;;  %1392 = vrot.lane.b32.xlu0 %v4419_v28, %s4240_s13  ;;  %v7298_v28 = vld [vmem:[#allocation34_spill] sm:$0xff] }
 0x1d9   : > { %v916_v57 = vpop.permute.xlu1 %915  ;;  %v1144_v10 = vpop.permute.xlu0 %1143 }
 0x1da   : > { %984 = vst.msk [vmem:[#allocation3 + $0xe0] sm:$0xff] %vm955_vm5, %v916_v57 }
 0x1db   : > { %1231 = vst.msk [vmem:[#allocation3 + $0x48] sm:$0xff] %vm1221_vm7, %v1144_v10  ;;  %1169 = vrot.lane.b32.xlu1 %v7297_v27, %s4238_s11  ;;  %1396 = vrot.lane.b32.xlu0 %v4444_v38, %s4240_s13  ;;  %v7299_v38 = vld [vmem:[#allocation38_spill] sm:$0xff] }
 0x1dd   : > { %v920_v60 = vpop.permute.xlu1 %919  ;;  %v1148_v21 = vpop.permute.xlu0 %1147 }
 0x1de   : > { %986 = vst.msk [vmem:[#allocation3 + $0xf0] sm:$0xff] %vm955_vm5, %v920_v60 }
 0x1df   : > { %1233 = vst.msk [vmem:[#allocation3 + $0x58] sm:$0xff] %vm1221_vm7, %v1148_v21  ;;  %1173 = vrot.lane.b32.xlu1 %v7298_v28, %s4238_s11  ;;  %1400 = vrot.lane.b32.xlu0 %v4469_v48, %s4240_s13  ;;  %v1120_v48 = vrot.slane %v5145_v0, 1 }
 0x1e1   : > { %v991_v57 = vpop.permute.xlu1 %990  ;;  %v1152_v10 = vpop.permute.xlu0 %1151 }
 0x1e2   : > { %1087 = vst.msk [vmem:[#allocation3] sm:$0xff] %vm1086_vm6, %v991_v57 }
 0x1e3   : > { %1235 = vst.msk [vmem:[#allocation3 + $0x68] sm:$0xff] %vm1221_vm7, %v1152_v10  ;;  %1177 = vrot.lane.b32.xlu1 %v7299_v38, %s4238_s11  ;;  %1404 = vrot.lane.b32.xlu0 %v4494_v58, %s4240_s13  ;;  %v7300_v58 = vrot.slane %v4965_v49, 1 }
 0x1e5   : > { %v995_v60 = vpop.permute.xlu1 %994  ;;  %v1156_v21 = vpop.permute.xlu0 %1155 }
 0x1e6   : > { %1089 = vst.msk [vmem:[#allocation3 + $0x10] sm:$0xff] %vm1086_vm6, %v995_v60  ;;  %v5256_v60 = vsel %vm568_vm2, %v1120_v48, %v7300_v58 }
 0x1e7   : > { %1237 = vst.msk [vmem:[#allocation3 + $0x78] sm:$0xff] %vm1221_vm7, %v1156_v21  ;;  %1181 = vrot.lane.b32.xlu1 %v4816_v62, %s4238_s11  ;;  %1408 = vrot.lane.b32.xlu0 %v4519_v6, %s4240_s13 }
 0x1e9   : > { %v999_v57 = vpop.permute.xlu1 %998  ;;  %v1160_v10 = vpop.permute.xlu0 %1159 }
 0x1ea   : > { %1091 = vst.msk [vmem:[#allocation3 + $0x20] sm:$0xff] %vm1086_vm6, %v999_v57 }
 0x1eb   : > { %1239 = vst.msk [vmem:[#allocation3 + $0x88] sm:$0xff] %vm1221_vm7, %v1160_v10  ;;  %1185 = vrot.lane.b32.xlu1 %v5256_v60, %s4238_s11  ;;  %1412 = vrot.lane.b32.xlu0 %v4544_v20, %s4240_s13 }
 0x1ed   : > { %v1003_v21 = vpop.permute.xlu1 %1002  ;;  %v1164_v62 = vpop.permute.xlu0 %1163 }
 0x1ee   : > { %1093 = vst.msk [vmem:[#allocation3 + $0x30] sm:$0xff] %vm1086_vm6, %v1003_v21 }
 0x1ef   : > { %1241 = vst.msk [vmem:[#allocation3 + $0x98] sm:$0xff] %vm1221_vm7, %v1164_v62  ;;  %1259 = vrot.lane.b32.xlu1 %v4847_v41, %s4239_s12  ;;  %1527 = vrot.lane.b32.xlu0 %v4440_v36, %s4241_s14 }
 0x1f1   : > { %v1007_v6 = vpop.permute.xlu1 %1006  ;;  %v1168_v48 = vpop.permute.xlu0 %1167 }
 0x1f2   : > { %1095 = vst.msk [vmem:[#allocation3 + $0x40] sm:$0xff] %vm1086_vm6, %v1007_v6 }
 0x1f3   : > { %1243 = vst.msk [vmem:[#allocation3 + $0xa8] sm:$0xff] %vm1221_vm7, %v1168_v48  ;;  %1263 = vrot.lane.b32.xlu1 %v4866_v3, %s4239_s12  ;;  %1661 = vrot.lane.b32.xlu0 %v4875_v7, %s4242_s15 }
 0x1f5   : > { %v1011_v20 = vpop.permute.xlu1 %1010  ;;  %v1172_v62 = vpop.permute.xlu0 %1171 }
 0x1f6   : > { %1097 = vst.msk [vmem:[#allocation3 + $0x50] sm:$0xff] %vm1086_vm6, %v1011_v20 }
 0x1f7   : > { %1245 = vst.msk [vmem:[#allocation3 + $0xb8] sm:$0xff] %vm1221_vm7, %v1172_v62  ;;  %1267 = vrot.lane.b32.xlu1 %v4885_v18, %s4239_s12  ;;  %1531 = vrot.lane.b32.xlu0 %v4465_v46, %s4241_s14  ;;  %v7301_v46 = vld [vmem:[#allocation44_spill] sm:$0xff] }
 0x1f9   : > { %v1015_v36 = vpop.permute.xlu1 %1014  ;;  %v1176_v41 = vpop.permute.xlu0 %1175 }
 0x1fa   : > { %1099 = vst.msk [vmem:[#allocation3 + $0x60] sm:$0xff] %vm1086_vm6, %v1015_v36 }
 0x1fb   : > { %1247 = vst.msk [vmem:[#allocation3 + $0xc8] sm:$0xff] %vm1221_vm7, %v1176_v41  ;;  %1271 = vrot.lane.b32.xlu1 %v4904_v29, %s4239_s12  ;;  %1665 = vrot.lane.b32.xlu0 %v4894_v2, %s4242_s15  ;;  %v7302_v2 = vld [vmem:[#allocation45_spill] sm:$0xff] }
 0x1fd   : > { %v1019_v7 = vpop.permute.xlu1 %1018  ;;  %v1180_v57 = vpop.permute.xlu0 %1179 }
 0x1fe   : > { %1101 = vst.msk [vmem:[#allocation3 + $0x70] sm:$0xff] %vm1086_vm6, %v1019_v7 }
 0x1ff   : > { %1249 = vst.msk [vmem:[#allocation3 + $0xd8] sm:$0xff] %vm1221_vm7, %v1180_v57  ;;  %1275 = vrot.lane.b32.xlu1 %v7301_v46, %s4239_s12  ;;  %1535 = vrot.lane.b32.xlu0 %v4490_v56, %s4241_s14  ;;  %v7303_v56 = vld [vmem:[#allocation46_spill] sm:$0xff] }
 0x201   : > { %v1023_v10 = vpop.permute.xlu1 %1022  ;;  %v1184_v58 = vpop.permute.xlu0 %1183 }
 0x202   : > { %1103 = vst.msk [vmem:[#allocation3 + $0x80] sm:$0xff] %vm1086_vm6, %v1023_v10 }
 0x203   : > { %1251 = vst.msk [vmem:[#allocation3 + $0xe8] sm:$0xff] %vm1221_vm7, %v1184_v58  ;;  %1279 = vrot.lane.b32.xlu1 %v7302_v2, %s4239_s12  ;;  %1669 = vrot.lane.b32.xlu0 %v4913_v19, %s4242_s15 }
 0x205   : > { %v1027_v21 = vpop.permute.xlu1 %1026  ;;  %v1188_v6 = vpop.permute.xlu0 %1187 }
 0x206   : > { %1105 = vst.msk [vmem:[#allocation3 + $0x90] sm:$0xff] %vm1086_vm6, %v1027_v21 }
 0x207   : > { %1253 = vst.msk [vmem:[#allocation3 + $0xf8] sm:$0xff] %vm1221_vm7, %v1188_v6  ;;  %1283 = vrot.lane.b32.xlu1 %v7303_v56, %s4239_s12  ;;  %1539 = vrot.lane.b32.xlu0 %v4515_v4, %s4241_s14  ;;  %v7304_v4 = vld [vmem:[#allocation47_spill] sm:$0xff] }
 0x209   : > { %v1031_v48 = vpop.permute.xlu1 %1030  ;;  %v1262_v20 = vpop.permute.xlu0 %1261 }
 0x20a   : > { %1107 = vst.msk [vmem:[#allocation3 + $0xa0] sm:$0xff] %vm1086_vm6, %v1031_v48  ;;  %v1254_v48 = vrot.slane %v5145_v0, 2 }
 0x20b   : > { %1357 = vst.msk [vmem:[#allocation3 + $0x8] sm:$0xff] %vm1355_vm8, %v1262_v20  ;;  %1287 = vrot.lane.b32.xlu1 %v4958_v42, %s4239_s12  ;;  %1673 = vrot.lane.b32.xlu0 %v4595_v59, %s4242_s15 }
 0x20d   : > { %v1035_v19 = vpop.permute.xlu1 %1034  ;;  %v1266_v62 = vpop.permute.xlu0 %1265 }
 0x20e   : > { %1109 = vst.msk [vmem:[#allocation3 + $0xb0] sm:$0xff] %vm1086_vm6, %v1035_v19 }
 0x20f   : > { %1359 = vst.msk [vmem:[#allocation3 + $0x18] sm:$0xff] %vm1355_vm8, %v1266_v62  ;;  %1291 = vrot.lane.b32.xlu1 %v7304_v4, %s4239_s12  ;;  %1543 = vrot.lane.b32.xlu0 %v4540_v15, %s4241_s14 }
 0x211   : > { %v1039_v36 = vpop.permute.xlu1 %1038  ;;  %v1270_v41 = vpop.permute.xlu0 %1269 }
 0x212   : > { %1111 = vst.msk [vmem:[#allocation3 + $0xc0] sm:$0xff] %vm1086_vm6, %v1039_v36  ;;  %v7307_v36 = vld [vmem:[#allocation15_spill] sm:$0xff] }
 0x213   : > { %1361 = vst.msk [vmem:[#allocation3 + $0x28] sm:$0xff] %vm1355_vm8, %v1270_v41  ;;  %1295 = vrot.lane.b32.xlu1 %v4983_v5, %s4239_s12  ;;  %1677 = vrot.lane.b32.xlu0 %v4609_v8, %s4242_s15 }
 0x215   : > { %v1043_v59 = vpop.permute.xlu1 %1042  ;;  %v1274_v7 = vpop.permute.xlu0 %1273 }
 0x216   : > { %1113 = vst.msk [vmem:[#allocation3 + $0xd0] sm:$0xff] %vm1086_vm6, %v1043_v59 }
 0x217   : > { %1363 = vst.msk [vmem:[#allocation3 + $0x38] sm:$0xff] %vm1355_vm8, %v1274_v7  ;;  %1299 = vrot.lane.b32.xlu1 %v4995_v32, %s4239_s12  ;;  %1547 = vrot.lane.b32.xlu0 %v4562_v34, %s4241_s14  ;;  %v7305_v34 = vld [vmem:[#allocation12_spill] sm:$0xff] }
 0x219   : > { %v1047_v15 = vpop.permute.xlu1 %1046  ;;  %v1278_v57 = vpop.permute.xlu0 %1277 }
 0x21a   : > { %1115 = vst.msk [vmem:[#allocation3 + $0xe0] sm:$0xff] %vm1086_vm6, %v1047_v15  ;;  %v1820_v15 = vld [vmem:[%s7067_s1] sm:$0xff] }
 0x21b   : > { %1365 = vst.msk [vmem:[#allocation3 + $0x48] sm:$0xff] %vm1355_vm8, %v1278_v57  ;;  %1303 = vrot.lane.b32.xlu1 %v5007_v30, %s4239_s12  ;;  %1681 = vrot.lane.b32.xlu0 %v7279_v52, %s4242_s15  ;;  %v1821_v57 = vld [vmem:[%s7067_s1 + $0x8] sm:$0xff] }
 0x21d   : > { %v1051_v8 = vpop.permute.xlu1 %1050  ;;  %v1282_v10 = vpop.permute.xlu0 %1281 }
 0x21e   : > { %1117 = vst.msk [vmem:[#allocation3 + $0xf0] sm:$0xff] %vm1086_vm6, %v1051_v8 }
 0x21f   : > { %1367 = vst.msk [vmem:[#allocation3 + $0x58] sm:$0xff] %vm1355_vm8, %v1282_v10  ;;  %1307 = vrot.lane.b32.xlu1 %v5019_v22, %s4239_s12  ;;  %1416 = vrot.lane.b32.xlu0 %v7305_v34, %s4240_s13  ;;  %v1822_v10 = vld [vmem:[%s7067_s1 + $0x10] sm:$0xff] }
 0x221   : > { %v1126_v58 = vpop.permute.xlu1 %1125  ;;  %v1286_v21 = vpop.permute.xlu0 %1285 }
 0x222   : > { %1222 = vst.msk [vmem:[#allocation3] sm:$0xff] %vm1221_vm7, %v1126_v58 }
 0x223   : > { %1369 = vst.msk [vmem:[#allocation3 + $0x68] sm:$0xff] %vm1355_vm8, %v1286_v21  ;;  %1311 = vrot.lane.b32.xlu1 %v5031_v40, %s4239_s12  ;;  %1551 = vrot.lane.b32.xlu0 %v4574_v50, %s4241_s14  ;;  %v7306_v50 = vrot.slane %v4965_v49, 2  ;;  %v1824_v21 = vld [vmem:[%s7067_s1 + $0x20] sm:$0xff] }
 0x225   : > { %v1130_v52 = vpop.permute.xlu1 %1129  ;;  %v1290_v6 = vpop.permute.xlu0 %1289  ;;  %v5358_v62 = vsel %vm778_vm4, %v1254_v48, %v7306_v50  ;;  %v1826_v48 = vld [vmem:[%s7067_s1 + $0x30] sm:$0xff]  ;;  %v7308_v50 = vld [vmem:[#allocation23_spill] sm:$0xff] }
 0x226   : > { %1224 = vst.msk [vmem:[#allocation3 + $0x10] sm:$0xff] %vm1221_vm7, %v1130_v52 }
 0x227   : > { %1371 = vst.msk [vmem:[#allocation3 + $0x78] sm:$0xff] %vm1355_vm8, %v1290_v6  ;;  %1315 = vrot.lane.b32.xlu1 %v5042_v43, %s4239_s12  ;;  %1685 = vrot.lane.b32.xlu0 %v7281_v17, %s4242_s15 }
 0x229   : > { %v1134_v20 = vpop.permute.xlu1 %1133  ;;  %v1294_v19 = vpop.permute.xlu0 %1293 }
 0x22a   : > { %1226 = vst.msk [vmem:[#allocation3 + $0x20] sm:$0xff] %vm1221_vm7, %v1134_v20 }
 0x22b   : > { %1373 = vst.msk [vmem:[#allocation3 + $0x88] sm:$0xff] %vm1355_vm8, %v1294_v19  ;;  %1319 = vrot.lane.b32.xlu1 %v5358_v62, %s4239_s12  ;;  %1420 = vrot.lane.b32.xlu0 %v7307_v36, %s4240_s13 }
 0x22d   : > { %v1138_v41 = vpop.permute.xlu1 %1137  ;;  %v1298_v59 = vpop.permute.xlu0 %1297 }
 0x22e   : > { %1228 = vst.msk [vmem:[#allocation3 + $0x30] sm:$0xff] %vm1221_vm7, %v1138_v41 }
 0x22f   : > { %1375 = vst.msk [vmem:[#allocation3 + $0x98] sm:$0xff] %vm1355_vm8, %v1298_v59  ;;  %1390 = vrot.lane.b32.xlu1 %v4409_v25, %s4240_s13  ;;  %1555 = vrot.lane.b32.xlu0 %v4631_v44, %s4241_s14  ;;  %v4138_v25 = vpack.c.bf16 %v1821_v57, %v1820_v15 }
 0x231   : > { %v1142_v17 = vpop.permute.xlu1 %1141  ;;  %v1302_v7 = vpop.permute.xlu0 %1301  ;;  %4139 = vmatprep.subr.bf16.mxu0 %v4138_v25 }
 0x232   : > { %1230 = vst.msk [vmem:[#allocation3 + $0x40] sm:$0xff] %vm1221_vm7, %v1142_v17  ;;  %4141 = vmatpush3.bf16.msra.mxu0 %v4138_v25 }
 0x233   : > { %1377 = vst.msk [vmem:[#allocation3 + $0xa8] sm:$0xff] %vm1355_vm8, %v1302_v7  ;;  %1394 = vrot.lane.b32.xlu1 %v4434_v35, %s4240_s13  ;;  %1689 = vrot.lane.b32.xlu0 %v7283_v33, %s4242_s15  ;;  %v1823_v35 = vld [vmem:[%s7067_s1 + $0x18] sm:$0xff] }
 0x234   : > { %v4142_v33 = vpack.c.bf16 %v1823_v35, %v1822_v10 }
 0x235   : > { %v1146_v44 = vpop.permute.xlu1 %1145  ;;  %v1306_v8 = vpop.permute.xlu0 %1305 }
 0x236   : > { %1232 = vst.msk [vmem:[#allocation3 + $0x50] sm:$0xff] %vm1221_vm7, %v1146_v44  ;;  %4143 = vmatprep.subr.bf16.mxu0 %v4142_v33 }
 0x237   : > { %1379 = vst.msk [vmem:[#allocation3 + $0xb8] sm:$0xff] %vm1355_vm8, %v1306_v8  ;;  %1398 = vrot.lane.b32.xlu1 %v4459_v45, %s4240_s13  ;;  %1424 = vrot.lane.b32.xlu0 %v4637_v54, %s4240_s13  ;;  %v1825_v45 = vld [vmem:[%s7067_s1 + $0x28] sm:$0xff] }
 0x238   : > { %4145 = vmatpush3.bf16.msra.mxu0 %v4142_v33  ;;  %v4146_v54 = vpack.c.bf16 %v1825_v45, %v1824_v21 }
 0x239   : > { %v1150_v34 = vpop.permute.xlu1 %1149  ;;  %v1310_v58 = vpop.permute.xlu0 %1309 }
 0x23a   : > { %1234 = vst.msk [vmem:[#allocation3 + $0x60] sm:$0xff] %vm1221_vm7, %v1150_v34  ;;  %4147 = vmatprep.subr.bf16.mxu0 %v4146_v54  ;;  %v7315_v34 = vld [vmem:[#allocation10_spill] sm:$0xff] }
 0x23b   : > { %1381 = vst.msk [vmem:[#allocation3 + $0xc8] sm:$0xff] %vm1355_vm8, %v1310_v58  ;;  %1402 = vrot.lane.b32.xlu1 %v4484_v55, %s4240_s13  ;;  %1559 = vrot.lane.b32.xlu0 %v4669_v37, %s4241_s14  ;;  %v1827_v55 = vld [vmem:[%s7067_s1 + $0x38] sm:$0xff] }
 0x23c   : > { %4149 = vmatpush3.bf16.msra.mxu0 %v4146_v54  ;;  %v4150_v37 = vpack.c.bf16 %v1827_v55, %v1826_v48 }
 0x23d   : > { %v1154_v52 = vpop.permute.xlu1 %1153  ;;  %v1314_v6 = vpop.permute.xlu0 %1313 }
 0x23e   : > { %1236 = vst.msk [vmem:[#allocation3 + $0x70] sm:$0xff] %vm1221_vm7, %v1154_v52  ;;  %4151 = vmatprep.subr.bf16.mxu0 %v4150_v37  ;;  %v7318_v52 = vld [vmem:[#allocation43_spill] sm:$0xff] }
 0x23f   : > { %1383 = vst.msk [vmem:[#allocation3 + $0xd8] sm:$0xff] %vm1355_vm8, %v1314_v6  ;;  %1406 = vrot.lane.b32.xlu1 %v4509_v1, %s4240_s13  ;;  %1693 = vrot.lane.b32.xlu0 %v7285_v11, %s4242_s15  ;;  %v1828_v1 = vld [vmem:[%s7067_s1 + $0x40] sm:$0xff] }
 0x240   : > { %4153 = vmatpush3.bf16.msra.mxu0 %v4150_v37 }
 0x241   : > { %v1158_v20 = vpop.permute.xlu1 %1157  ;;  %v1318_v19 = vpop.permute.xlu0 %1317  ;;  %4088 = vmatprep.subr.mxu0 %v1828_v1 }
 0x242   : > { %1238 = vst.msk [vmem:[#allocation3 + $0x80] sm:$0xff] %vm1221_vm7, %v1158_v20 }
 0x243   : > { %1385 = vst.msk [vmem:[#allocation3 + $0xe8] sm:$0xff] %vm1355_vm8, %v1318_v19  ;;  %1410 = vrot.lane.b32.xlu1 %v4534_v14, %s4240_s13  ;;  %1428 = vrot.lane.b32.xlu0 %v7308_v50, %s4240_s13  ;;  %v7321_v50 = vld [vmem:[#allocation48_spill] sm:$0xff] }
 0x244   : > { %4089 = vmatpush3.msra.mxu0 %v1828_v1 }
 0x245   : > { %v1162_v11 = vpop.permute.xlu1 %1161  ;;  %v1322_v36 = vpop.permute.xlu0 %1321 }
 0x246   : > { %1240 = vst.msk [vmem:[#allocation3 + $0x90] sm:$0xff] %vm1221_vm7, %v1162_v11 }
 0x247   : > { %1387 = vst.msk [vmem:[#allocation3 + $0xf8] sm:$0xff] %vm1355_vm8, %v1322_v36  ;;  %1525 = vrot.lane.b32.xlu1 %v7280_v26, %s4241_s14  ;;  %1563 = vrot.lane.b32.xlu0 %v4706_v61, %s4241_s14  ;;  %v7309_v61 = vld [vmem:[#allocation28_spill] sm:$0xff] }
 0x249   : > { %v1166_v14 = vpop.permute.xlu1 %1165  ;;  %v1393_v41 = vpop.permute.xlu0 %1392 }
 0x24a   : > { %1242 = vst.msk [vmem:[#allocation3 + $0xa0] sm:$0xff] %vm1221_vm7, %v1166_v14 }
 0x24b   : > { %1488 = vst.msk [vmem:[#allocation3 + $0x8] sm:$0xff] %vm1486_vm9, %v1393_v41  ;;  %1659 = vrot.lane.b32.xlu1 %v4866_v3, %s4242_s15  ;;  %1697 = vrot.lane.b32.xlu0 %v7287_v47, %s4242_s15 }
 0x24d   : > { %v1170_v59 = vpop.permute.xlu1 %1169  ;;  %v1397_v17 = vpop.permute.xlu0 %1396 }
 0x24e   : > { %1244 = vst.msk [vmem:[#allocation3 + $0xb0] sm:$0xff] %vm1221_vm7, %v1170_v59  ;;  %v7323_v59 = vld [vmem:[#allocation17_spill] sm:$0xff] }
 0x24f   : > { %1490 = vst.msk [vmem:[#allocation3 + $0x18] sm:$0xff] %vm1486_vm9, %v1397_v17  ;;  %1529 = vrot.lane.b32.xlu1 %v7282_v39, %s4241_s14  ;;  %1432 = vrot.lane.b32.xlu0 %v7309_v61, %s4240_s13 }
 0x251   : > { %v1174_v26 = vpop.permute.xlu1 %1173  ;;  %v1401_v7 = vpop.permute.xlu0 %1400 }
 0x252   : > { %1246 = vst.msk [vmem:[#allocation3 + $0xc0] sm:$0xff] %vm1221_vm7, %v1174_v26 }
 0x253   : > { %1492 = vst.msk [vmem:[#allocation3 + $0x28] sm:$0xff] %vm1486_vm9, %v1401_v7  ;;  %1663 = vrot.lane.b32.xlu1 %v4885_v18, %s4242_s15  ;;  %1567 = vrot.lane.b32.xlu0 %v4738_v51, %s4241_s14  ;;  %v7310_v51 = vld [vmem:[#allocation32_spill] sm:$0xff] }
 0x255   : > { %v1178_v47 = vpop.permute.xlu1 %1177  ;;  %v1405_v3 = vpop.permute.xlu0 %1404 }
 0x256   : > { %1248 = vst.msk [vmem:[#allocation3 + $0xd0] sm:$0xff] %vm1221_vm7, %v1178_v47  ;;  %v7324_v47 = vld [vmem:[#allocation21_spill] sm:$0xff] }
 0x257   : > { %1494 = vst.msk [vmem:[#allocation3 + $0x38] sm:$0xff] %vm1486_vm9, %v1405_v3  ;;  %1533 = vrot.lane.b32.xlu1 %v7284_v63, %s4241_s14  ;;  %1701 = vrot.lane.b32.xlu0 %v7289_v53, %s4242_s15 }
 0x259   : > { %v1182_v39 = vpop.permute.xlu1 %1181  ;;  %v1409_v15 = vpop.permute.xlu0 %1408 }
 0x25a   : > { %1250 = vst.msk [vmem:[#allocation3 + $0xe0] sm:$0xff] %vm1221_vm7, %v1182_v39 }
 0x25b   : > { %1496 = vst.msk [vmem:[#allocation3 + $0x48] sm:$0xff] %vm1486_vm9, %v1409_v15  ;;  %1667 = vrot.lane.b32.xlu1 %v4904_v29, %s4242_s15  ;;  %1436 = vrot.lane.b32.xlu0 %v7310_v51, %s4240_s13  ;;  %v7311_v29 = vld [vmem:[#allocation33_spill] sm:$0xff] }
 0x25d   : > { %v1186_v18 = vpop.permute.xlu1 %1185  ;;  %v1413_v57 = vpop.permute.xlu0 %1412 }
 0x25e   : > { %1252 = vst.msk [vmem:[#allocation3 + $0xf0] sm:$0xff] %vm1221_vm7, %v1186_v18  ;;  %v7325_v18 = vld [vmem:[#allocation26_spill] sm:$0xff] }
 0x25f   : > { %1498 = vst.msk [vmem:[#allocation3 + $0x58] sm:$0xff] %vm1486_vm9, %v1413_v57  ;;  %1537 = vrot.lane.b32.xlu1 %v7286_v13, %s4241_s14  ;;  %1571 = vrot.lane.b32.xlu0 %v4768_v23, %s4241_s14  ;;  %v7312_v13 = vld [vmem:[#allocation9_spill] sm:$0xff]  ;;  %v7313_v23 = vld [vmem:[#allocation36_spill] sm:$0xff] }
 0x261   : > { %v1260_v63 = vpop.permute.xlu1 %1259  ;;  %v1528_v53 = vpop.permute.xlu0 %1527 }
 0x262   : > { %1356 = vst.msk [vmem:[#allocation3] sm:$0xff] %vm1355_vm8, %v1260_v63 }
 0x263   : > { %1623 = vst.msk [vmem:[#allocation3 + $0x8] sm:$0xff] %vm1621_vm10, %v1528_v53  ;;  %1671 = vrot.lane.b32.xlu1 %v7301_v46, %s4242_s15  ;;  %1705 = vrot.lane.b32.xlu0 %v7311_v29, %s4242_s15  ;;  %v7314_v46 = vld [vmem:[#allocation40_spill] sm:$0xff] }
 0x265   : > { %v1264_v25 = vpop.permute.xlu1 %1263  ;;  %v1662_v44 = vpop.permute.xlu0 %1661 }
 0x266   : > { %1358 = vst.msk [vmem:[#allocation3 + $0x10] sm:$0xff] %vm1355_vm8, %v1264_v25  ;;  %v7326_v25 = vld [vmem:[#allocation31_spill] sm:$0xff] }
 0x267   : > { %1757 = vst.msk [vmem:[#allocation3 + $0x8] sm:$0xff] %vm1755_vm11, %v1662_v44  ;;  %1541 = vrot.lane.b32.xlu1 %v7312_v13, %s4241_s14  ;;  %1440 = vrot.lane.b32.xlu0 %v7313_v23, %s4240_s13 }
 0x269   : > { %v1268_v8 = vpop.permute.xlu1 %1267  ;;  %v1532_v10 = vpop.permute.xlu0 %1531 }
 0x26a   : > { %1360 = vst.msk [vmem:[#allocation3 + $0x20] sm:$0xff] %vm1355_vm8, %v1268_v8 }
 0x26b   : > { %1625 = vst.msk [vmem:[#allocation3 + $0x18] sm:$0xff] %vm1621_vm10, %v1532_v10  ;;  %1675 = vrot.lane.b32.xlu1 %v7302_v2, %s4242_s15  ;;  %1575 = vrot.lane.b32.xlu0 %v7314_v46, %s4241_s14  ;;  %v7316_v2 = vld [vmem:[#allocation41_spill] sm:$0xff]  ;;  %v7327_v10 = vld [vmem:[#allocation35_spill] sm:$0xff] }
 0x26d   : > { %v1272_v35 = vpop.permute.xlu1 %1271  ;;  %v1666_v33 = vpop.permute.xlu0 %1665 }
 0x26e   : > { %1362 = vst.msk [vmem:[#allocation3 + $0x30] sm:$0xff] %vm1355_vm8, %v1272_v35 }
 0x26f   : > { %1759 = vst.msk [vmem:[#allocation3 + $0x18] sm:$0xff] %vm1755_vm11, %v1666_v33  ;;  %1545 = vrot.lane.b32.xlu1 %v7315_v34, %s4241_s14  ;;  %1709 = vrot.lane.b32.xlu0 %v7293_v12, %s4242_s15  ;;  %v7317_v12 = vld [vmem:[#allocation11_spill] sm:$0xff]  ;;  %v1789_v34 = vld [vmem:[#allocation3 + $0x8] sm:$0xff] }
 0x271   : > { %v1276_v58 = vpop.permute.xlu1 %1275  ;;  %v1536_v21 = vpop.permute.xlu0 %1535 }
 0x272   : > { %1364 = vst.msk [vmem:[#allocation3 + $0x40] sm:$0xff] %vm1355_vm8, %v1276_v58 }
 0x273   : > { %1627 = vst.msk [vmem:[#allocation3 + $0x28] sm:$0xff] %vm1621_vm10, %v1536_v21  ;;  %1679 = vrot.lane.b32.xlu1 %v7303_v56, %s4242_s15  ;;  %1444 = vrot.lane.b32.xlu0 %v7316_v2, %s4240_s13  ;;  %v7319_v56 = vld [vmem:[#allocation13_spill] sm:$0xff] }
 0x275   : > { %v1280_v45 = vpop.permute.xlu1 %1279  ;;  %v1670_v54 = vpop.permute.xlu0 %1669 }
 0x276   : > { %1366 = vst.msk [vmem:[#allocation3 + $0x50] sm:$0xff] %vm1355_vm8, %v1280_v45 }
 0x277   : > { %1761 = vst.msk [vmem:[#allocation3 + $0x28] sm:$0xff] %vm1755_vm11, %v1670_v54  ;;  %1414 = vrot.lane.b32.xlu1 %v7317_v12, %s4240_s13  ;;  %1579 = vrot.lane.b32.xlu0 %v7318_v52, %s4241_s14  ;;  %v7329_v12 = vld [vmem:[#allocation42_spill] sm:$0xff] }
 0x279   : > { %v1284_v6 = vpop.permute.xlu1 %1283  ;;  %v1540_v48 = vpop.permute.xlu0 %1539 }
 0x27a   : > { %1368 = vst.msk [vmem:[#allocation3 + $0x60] sm:$0xff] %vm1355_vm8, %v1284_v6 }
 0x27b   : > { %1629 = vst.msk [vmem:[#allocation3 + $0x38] sm:$0xff] %vm1621_vm10, %v1540_v48  ;;  %1549 = vrot.lane.b32.xlu1 %v7319_v56, %s4241_s14  ;;  %1713 = vrot.lane.b32.xlu0 %v4813_v9, %s4242_s15  ;;  %v7320_v9 = vld [vmem:[#allocation14_spill] sm:$0xff] }
 0x27d   : > { %v1288_v55 = vpop.permute.xlu1 %1287  ;;  %v1674_v37 = vpop.permute.xlu0 %1673 }
 0x27e   : > { %1370 = vst.msk [vmem:[#allocation3 + $0x70] sm:$0xff] %vm1355_vm8, %v1288_v55 }
 0x27f   : > { %1763 = vst.msk [vmem:[#allocation3 + $0x38] sm:$0xff] %vm1755_vm11, %v1674_v37  ;;  %1683 = vrot.lane.b32.xlu1 %v4958_v42, %s4242_s15  ;;  %1448 = vrot.lane.b32.xlu0 %v4965_v49, %s4240_s13  ;;  %v7322_v42 = vld [vmem:[#allocation16_spill] sm:$0xff]  ;;  %v1793_v37 = vld [vmem:[#allocation3 + $0x28] sm:$0xff] }
 0x281   : > { %v1292_v20 = vpop.permute.xlu1 %1291  ;;  %v1544_v19 = vpop.permute.xlu0 %1543 }
 0x282   : > { %1372 = vst.msk [vmem:[#allocation3 + $0x80] sm:$0xff] %vm1355_vm8, %v1292_v20 }
 0x283   : > { %1631 = vst.msk [vmem:[#allocation3 + $0x48] sm:$0xff] %vm1621_vm10, %v1544_v19  ;;  %1418 = vrot.lane.b32.xlu1 %v7320_v9, %s4240_s13  ;;  %1583 = vrot.lane.b32.xlu0 %v7321_v50, %s4241_s14 }
 0x285   : > { %v1296_v1 = vpop.permute.xlu1 %1295  ;;  %v1678_v11 = vpop.permute.xlu0 %1677 }
 0x286   : > { %1374 = vst.msk [vmem:[#allocation3 + $0x90] sm:$0xff] %vm1355_vm8, %v1296_v1 }
 0x287   : > { %1765 = vst.msk [vmem:[#allocation3 + $0x48] sm:$0xff] %vm1755_vm11, %v1678_v11  ;;  %1553 = vrot.lane.b32.xlu1 %v7322_v42, %s4241_s14  ;;  %1717 = vrot.lane.b32.xlu0 %v5214_v31, %s4242_s15 }
 0x289   : > { %v1300_v49 = vpop.permute.xlu1 %1299  ;;  %v1548_v36 = vpop.permute.xlu0 %1547 }
 0x28a   : > { %1376 = vst.msk [vmem:[#allocation3 + $0xa0] sm:$0xff] %vm1355_vm8, %v1300_v49 }
 0x28b   : > { %1633 = vst.msk [vmem:[#allocation3 + $0x58] sm:$0xff] %vm1621_vm10, %v1548_v36  ;;  %1687 = vrot.lane.b32.xlu1 %v7304_v4, %s4242_s15 }
 0x28d   : > { %v1304_v14 = vpop.permute.xlu1 %1303  ;;  %v1682_v41 = vpop.permute.xlu0 %1681 }
 0x28e   : > { %1378 = vst.msk [vmem:[#allocation3 + $0xb0] sm:$0xff] %vm1355_vm8, %v1304_v14  ;;  %v1797_v36 = vld [vmem:[#allocation3 + $0x48] sm:$0xff] }
 0x28f   : > { %1767 = vst.msk [vmem:[#allocation3 + $0x58] sm:$0xff] %vm1755_vm11, %v1682_v41  ;;  %1422 = vrot.lane.b32.xlu1 %v7323_v59, %s4240_s13 }
 0x291   : > { %v1308_v17 = vpop.permute.xlu1 %1307  ;;  %v1417_v31 = vpop.permute.xlu0 %1416 }
 0x292   : > { %1380 = vst.msk [vmem:[#allocation3 + $0xc0] sm:$0xff] %vm1355_vm8, %v1308_v17 }
 0x293   : > { %1500 = vst.msk [vmem:[#allocation3 + $0x68] sm:$0xff] %vm1486_vm9, %v1417_v31  ;;  %1557 = vrot.lane.b32.xlu1 %v7295_v24, %s4241_s14 }
 0x295   : > { %v1312_v61 = vpop.permute.xlu1 %1311  ;;  %v1552_v4 = vpop.permute.xlu0 %1551 }
 0x296   : > { %1382 = vst.msk [vmem:[#allocation3 + $0xd0] sm:$0xff] %vm1355_vm8, %v1312_v61  ;;  %v1799_v31 = vld [vmem:[#allocation3 + $0x58] sm:$0xff] }
 0x297   : > { %1635 = vst.msk [vmem:[#allocation3 + $0x68] sm:$0xff] %vm1621_vm10, %v1552_v4  ;;  %1691 = vrot.lane.b32.xlu1 %v4983_v5, %s4242_s15 }
 0x299   : > { %v1316_v26 = vpop.permute.xlu1 %1315  ;;  %v1686_v7 = vpop.permute.xlu0 %1685 }
 0x29a   : > { %1384 = vst.msk [vmem:[#allocation3 + $0xe0] sm:$0xff] %vm1355_vm8, %v1316_v26 }
 0x29b   : > { %1769 = vst.msk [vmem:[#allocation3 + $0x68] sm:$0xff] %vm1755_vm11, %v1686_v7  ;;  %1426 = vrot.lane.b32.xlu1 %v7324_v47, %s4240_s13 }
 0x29d   : > { %v1320_v3 = vpop.permute.xlu1 %1319  ;;  %v1421_v24 = vpop.permute.xlu0 %1420 }
 0x29e   : > { %1386 = vst.msk [vmem:[#allocation3 + $0xf0] sm:$0xff] %vm1355_vm8, %v1320_v3 }
 0x29f   : > { %1502 = vst.msk [vmem:[#allocation3 + $0x78] sm:$0xff] %vm1486_vm9, %v1421_v24  ;;  %1561 = vrot.lane.b32.xlu1 %v7296_v16, %s4241_s14 }
 0x2a1   : > { %v1391_v39 = vpop.permute.xlu1 %1390  ;;  %v1556_v5 = vpop.permute.xlu0 %1555 }
 0x2a2   : > { %1487 = vst.msk [vmem:[#allocation3] sm:$0xff] %vm1486_vm9, %v1391_v39  ;;  %v1801_v39 = vld [vmem:[#allocation3 + $0x68] sm:$0xff] }
 0x2a3   : > { %1637 = vst.msk [vmem:[#allocation3 + $0x78] sm:$0xff] %vm1621_vm10, %v1556_v5  ;;  %1695 = vrot.lane.b32.xlu1 %v4995_v32, %s4242_s15 }
 0x2a5   : > { %v1395_v15 = vpop.permute.xlu1 %1394  ;;  %v1690_v51 = vpop.permute.xlu0 %1689 }
 0x2a6   : > { %1489 = vst.msk [vmem:[#allocation3 + $0x10] sm:$0xff] %vm1486_vm9, %v1395_v15 }
 0x2a7   : > { %1771 = vst.msk [vmem:[#allocation3 + $0x78] sm:$0xff] %vm1755_vm11, %v1690_v51  ;;  %1430 = vrot.lane.b32.xlu1 %v7325_v18, %s4240_s13 }
 0x2a9   : > { %v1399_v57 = vpop.permute.xlu1 %1398  ;;  %v1425_v16 = vpop.permute.xlu0 %1424 }
 0x2aa   : > { %1491 = vst.msk [vmem:[#allocation3 + $0x20] sm:$0xff] %vm1486_vm9, %v1399_v57  ;;  %1504 = vst.msk [vmem:[#allocation3 + $0x88] sm:$0xff] %vm1486_vm9, %v1425_v16 }
 0x2ab   : > { %1565 = vrot.lane.b32.xlu1 %v7297_v27, %s4241_s14 }
 0x2ad   : > { %v1403_v63 = vpop.permute.xlu1 %1402  ;;  %v1560_v32 = vpop.permute.xlu0 %1559 }
 0x2ae   : > { %1493 = vst.msk [vmem:[#allocation3 + $0x30] sm:$0xff] %vm1486_vm9, %v1403_v63  ;;  %v1803_v57 = vld [vmem:[#allocation3 + $0x78] sm:$0xff] }
 0x2af   : > { %1639 = vst.msk [vmem:[#allocation3 + $0x88] sm:$0xff] %vm1621_vm10, %v1560_v32  ;;  %1699 = vrot.lane.b32.xlu1 %v5007_v30, %s4242_s15 }
 0x2b1   : > { %v1407_v53 = vpop.permute.xlu1 %1406  ;;  %v1694_v29 = vpop.permute.xlu0 %1693 }
 0x2b2   : > { %1495 = vst.msk [vmem:[#allocation3 + $0x40] sm:$0xff] %vm1486_vm9, %v1407_v53 }
 0x2b3   : > { %1773 = vst.msk [vmem:[#allocation3 + $0x88] sm:$0xff] %vm1755_vm11, %v1694_v29  ;;  %1434 = vrot.lane.b32.xlu1 %v7326_v25, %s4240_s13 }
 0x2b5   : > { %v1411_v44 = vpop.permute.xlu1 %1410  ;;  %v1429_v27 = vpop.permute.xlu0 %1428 }
 0x2b6   : > { %1497 = vst.msk [vmem:[#allocation3 + $0x50] sm:$0xff] %vm1486_vm9, %v1411_v44  ;;  %1506 = vst.msk [vmem:[#allocation3 + $0x98] sm:$0xff] %vm1486_vm9, %v1429_v27  ;;  %v485_v27 = vld [vmem:[#allocation2 + $0x198] sm:$0xff] }
 0x2b7   : > { %1569 = vrot.lane.b32.xlu1 %v7298_v28, %s4241_s14 }
 0x2b9   : > { %v1526_v13 = vpop.permute.xlu1 %1525  ;;  %v1564_v30 = vpop.permute.xlu0 %1563 }
 0x2ba   : > { %1622 = vst.msk [vmem:[#allocation3] sm:$0xff] %vm1621_vm10, %v1526_v13  ;;  %1641 = vst.msk [vmem:[#allocation3 + $0x98] sm:$0xff] %vm1621_vm10, %v1564_v30  ;;  %v1805_v29 = vld [vmem:[#allocation3 + $0x88] sm:$0xff]  ;;  %v486_v13 = vld [vmem:[#allocation2 + $0x1a0] sm:$0xff] }
 0x2bb   : > { %1703 = vrot.lane.b32.xlu1 %v5019_v22, %s4242_s15  ;;  %1452 = vrot.lane.b32.xlu0 %v486_v13, %s4240_s13 }
 0x2bd   : > { %v1660_v23 = vpop.permute.xlu1 %1659  ;;  %v1698_v8 = vpop.permute.xlu0 %1697 }
 0x2be   : > { %1756 = vst.msk [vmem:[#allocation3] sm:$0xff] %vm1755_vm11, %v1660_v23  ;;  %1775 = vst.msk [vmem:[#allocation3 + $0x98] sm:$0xff] %vm1755_vm11, %v1698_v8  ;;  %v487_v8 = vld [vmem:[#allocation2 + $0x1a8] sm:$0x3] }
 0x2bf   : > { %1438 = vrot.lane.b32.xlu1 %v7327_v10, %s4240_s13 }
 0x2c1   : > { %v1530_v46 = vpop.permute.xlu1 %1529  ;;  %v1433_v28 = vpop.permute.xlu0 %1432 }
 0x2c2   : > { %1624 = vst.msk [vmem:[#allocation3 + $0x10] sm:$0xff] %vm1621_vm10, %v1530_v46  ;;  %v1520_v46 = vrot.slane %v485_v27, 1 }
 0x2c3   : > { %1508 = vst.msk [vmem:[#allocation3 + $0xa8] sm:$0xff] %vm1486_vm9, %v1433_v28  ;;  %1573 = vrot.lane.b32.xlu1 %v7299_v38, %s4241_s14  ;;  %v7328_v38 = vld [vmem:[#allocation39_spill] sm:$0xff]  ;;  %v1521_v28 = vrot.slane %v486_v13, 1 }
 0x2c5   : > { %v1664_v22 = vpop.permute.xlu1 %1663  ;;  %v1568_v35 = vpop.permute.xlu0 %1567  ;;  %v1788_v33 = vld [vmem:[#allocation3] sm:$0xff]  ;;  %v1807_v10 = vld [vmem:[#allocation3 + $0x98] sm:$0xff] }
 0x2c6   : > { %1758 = vst.msk [vmem:[#allocation3 + $0x10] sm:$0xff] %vm1755_vm11, %v1664_v22  ;;  %4090 = vmatprep.mubr.msk.f32.mxu0 %vm1829_vm12, %v1788_v33  ;;  %v1523_v22 = vrot.slane %v487_v8, 1 }
 0x2c7   : > { %1643 = vst.msk [vmem:[#allocation3 + $0xa8] sm:$0xff] %vm1621_vm10, %v1568_v35  ;;  %1707 = vrot.lane.b32.xlu1 %v5031_v40, %s4242_s15  ;;  %4091 = vmatmul.mubr.msk.f32.vlgmr.msra.gmra.mrb[0].mxu0 %vm1829_vm12, %v1789_v34  ;;  %v1791_v40 = vld [vmem:[#allocation3 + $0x18] sm:$0xff]  ;;  %v1522_v35 = vsel %vm568_vm2, %v1520_v46, %v1521_v28 }
 0x2c8   : > { %v1524_v33 = vsel %vm568_vm2, %v1521_v28, %v1523_v22 }
 0x2c9   : > { %v1534_v58 = vpop.permute.xlu1 %1533  ;;  %v1702_v21 = vpop.permute.xlu0 %1701  ;;  %1587 = vrot.lane.b32.xlu0 %v1524_v33, %s4241_s14 }
 0x2ca   : > { %1626 = vst.msk [vmem:[#allocation3 + $0x20] sm:$0xff] %vm1621_vm10, %v1534_v58  ;;  %v1654_v58 = vrot.slane %v485_v27, 2 }
 0x2cb   : > { %1777 = vst.msk [vmem:[#allocation3 + $0xa8] sm:$0xff] %vm1755_vm11, %v1702_v21  ;;  %1442 = vrot.lane.b32.xlu1 %v7328_v38, %s4240_s13  ;;  %v1655_v21 = vrot.slane %v486_v13, 2  ;;  %v1657_v38 = vrot.slane %v487_v8, 2 }
 0x2cd   : > { %v1668_v2 = vpop.permute.xlu1 %1667  ;;  %v1437_v45 = vpop.permute.xlu0 %1436  ;;  %v1790_v54 = vld [vmem:[#allocation3 + $0x10] sm:$0xff] }
 0x2ce   : > { %1760 = vst.msk [vmem:[#allocation3 + $0x20] sm:$0xff] %vm1755_vm11, %v1668_v2  ;;  %4093 = vmatprep.mubr.msk.f32.mxu0 %vm1829_vm12, %v1790_v54  ;;  %v1656_v2 = vsel %vm778_vm4, %v1654_v58, %v1655_v21 }
 0x2cf   : > { %1510 = vst.msk [vmem:[#allocation3 + $0xb8] sm:$0xff] %vm1486_vm9, %v1437_v45  ;;  %1577 = vrot.lane.b32.xlu1 %v7329_v12, %s4241_s14  ;;  %4094 = vmatmul.mubr.msk.f32.gmra.mrb[2].mxu0 %vm1829_vm12, %v1791_v40  ;;  %v1658_v45 = vsel %vm778_vm4, %v1655_v21, %v1657_v38  ;;  %v5671_v40 = vld [vmem:[#allocation2] sm:$0xff]  ;;  %v5673_v12 = vld [vmem:[#allocation2 + $0x8] sm:$0xff] }
 0x2d0   : > { %1721 = vrot.lane.b32.xlu0 %v1658_v45, %s4242_s15  ;;  %2347 = vst.msk [vmem:[#allocation3] sm:$0xff] %vm345_vm0, %v5671_v40  ;;  %2348 = vst.msk [vmem:[#allocation3 + $0x8] sm:$0xff] %vm345_vm0, %v5673_v12 }
 0x2d1   : > { %v1538_v52 = vpop.permute.xlu1 %1537  ;;  %v1572_v6 = vpop.permute.xlu0 %1571 }
 0x2d2   : > { %1628 = vst.msk [vmem:[#allocation3 + $0x30] sm:$0xff] %vm1621_vm10, %v1538_v52  ;;  %1645 = vst.msk [vmem:[#allocation3 + $0xb8] sm:$0xff] %vm1621_vm10, %v1572_v6  ;;  %v5675_v52 = vld [vmem:[#allocation2 + $0x10] sm:$0x3]  ;;  %v2427_v6 = vrot.slane %v5671_v40, 1 }
 0x2d3   : > { %1711 = vrot.lane.b32.xlu1 %v5042_v43, %s4242_s15 }
 0x2d5   : > { %v1672_v48 = vpop.permute.xlu1 %1671  ;;  %v1706_v56 = vpop.permute.xlu0 %1705  ;;  %v1792_v55 = vld [vmem:[#allocation3 + $0x20] sm:$0xff] }
 0x2d6   : > { %1762 = vst.msk [vmem:[#allocation3 + $0x30] sm:$0xff] %vm1755_vm11, %v1672_v48  ;;  %1779 = vst.msk [vmem:[#allocation3 + $0xb8] sm:$0xff] %vm1755_vm11, %v1706_v56  ;;  %4096 = vmatprep.mubr.msk.f32.mxu0 %vm1829_vm12, %v1792_v55  ;;  %v2428_v48 = vrot.slane %v5673_v12, 1  ;;  %v2430_v56 = vrot.slane %v5675_v52, 1 }
 0x2d7   : > { %1446 = vrot.lane.b32.xlu1 %v5145_v0, %s4240_s13  ;;  %4097 = vmatmul.mubr.msk.f32.gmra.mrb[4].mxu0 %vm1829_vm12, %v1793_v37  ;;  %v1795_v0 = vld [vmem:[#allocation3 + $0x38] sm:$0xff] }
 0x2d8   : > { %v2429_v55 = vsel %vm568_vm2, %v2427_v6, %v2428_v48  ;;  %v2431_v37 = vsel %vm568_vm2, %v2428_v48, %v2430_v56 }
 0x2d9   : > { %v1542_v20 = vpop.permute.xlu1 %1541  ;;  %v1441_v19 = vpop.permute.xlu0 %1440  ;;  %2509 = vrot.lane.b32.xlu0 %v2431_v37, %s4235_s8 }
 0x2da   : > { %1630 = vst.msk [vmem:[#allocation3 + $0x40] sm:$0xff] %vm1621_vm10, %v1542_v20 }
 0x2db   : > { %1512 = vst.msk [vmem:[#allocation3 + $0xc8] sm:$0xff] %vm1486_vm9, %v1441_v19  ;;  %1581 = vrot.lane.b32.xlu1 %v5256_v60, %s4241_s14 }
 0x2dd   : > { %v1676_v43 = vpop.permute.xlu1 %1675  ;;  %v1576_v9 = vpop.permute.xlu0 %1575  ;;  %v1794_v50 = vld [vmem:[#allocation3 + $0x30] sm:$0xff] }
 0x2de   : > { %1764 = vst.msk [vmem:[#allocation3 + $0x40] sm:$0xff] %vm1755_vm11, %v1676_v43  ;;  %4099 = vmatprep.mubr.msk.f32.mxu0 %vm1829_vm12, %v1794_v50  ;;  %v1809_v43 = vld [vmem:[#allocation3 + $0xa8] sm:$0xff] }
 0x2df   : > { %1647 = vst.msk [vmem:[#allocation3 + $0xc8] sm:$0xff] %vm1621_vm10, %v1576_v9  ;;  %1715 = vrot.lane.b32.xlu1 %v5358_v62, %s4242_s15  ;;  %4100 = vmatmul.mubr.msk.f32.gmra.mrb[6].mxu0 %vm1829_vm12, %v1795_v0 }
 0x2e1   : > { %v1546_v1 = vpop.permute.xlu1 %1545  ;;  %v1710_v11 = vpop.permute.xlu0 %1709 }
 0x2e2   : > { %1632 = vst.msk [vmem:[#allocation3 + $0x50] sm:$0xff] %vm1621_vm10, %v1546_v1 }
 0x2e3   : > { %1781 = vst.msk [vmem:[#allocation3 + $0xc8] sm:$0xff] %vm1755_vm11, %v1710_v11  ;;  %1450 = vrot.lane.b32.xlu1 %v485_v27, %s4240_s13  ;;  %v1811_v11 = vld [vmem:[#allocation3 + $0xb8] sm:$0xff] }
 0x2e5   : > { %v1680_v60 = vpop.permute.xlu1 %1679  ;;  %v1445_v42 = vpop.permute.xlu0 %1444  ;;  %v1796_v49 = vld [vmem:[#allocation3 + $0x40] sm:$0xff] }
 0x2e6   : > { %1766 = vst.msk [vmem:[#allocation3 + $0x50] sm:$0xff] %vm1755_vm11, %v1680_v60  ;;  %4102 = vmatprep.mubr.msk.f32.mxu0 %vm1829_vm12, %v1796_v49 }
 0x2e7   : > { %1514 = vst.msk [vmem:[#allocation3 + $0xd8] sm:$0xff] %vm1486_vm9, %v1445_v42  ;;  %4103 = vmatmul.mubr.msk.f32.gmra.mrb[8].mxu0 %vm1829_vm12, %v1797_v36  ;;  %1585 = vrot.lane.b32.xlu1 %v1522_v35, %s4241_s14 }
 0x2e9   : > { %v1415_v62 = vpop.permute.xlu1 %1414  ;;  %v1580_v14 = vpop.permute.xlu0 %1579 }
 0x2ea   : > { %1499 = vst.msk [vmem:[#allocation3 + $0x60] sm:$0xff] %vm1486_vm9, %v1415_v62  ;;  %v1813_v62 = vld [vmem:[#allocation3 + $0xc8] sm:$0xff] }
 0x2eb   : > { %1649 = vst.msk [vmem:[#allocation3 + $0xd8] sm:$0xff] %vm1621_vm10, %v1580_v14  ;;  %1719 = vrot.lane.b32.xlu1 %v1656_v2, %s4242_s15 }
 0x2ed   : > { %v1550_v41 = vpop.permute.xlu1 %1549  ;;  %v1714_v59 = vpop.permute.xlu0 %1713  ;;  %v1798_v17 = vld [vmem:[#allocation3 + $0x50] sm:$0xff] }
 0x2ee   : > { %1634 = vst.msk [vmem:[#allocation3 + $0x60] sm:$0xff] %vm1621_vm10, %v1550_v41  ;;  %4105 = vmatprep.mubr.msk.f32.mxu0 %vm1829_vm12, %v1798_v17 }
 0x2ef   : > { %1783 = vst.msk [vmem:[#allocation3 + $0xd8] sm:$0xff] %vm1755_vm11, %v1714_v59  ;;  %4106 = vmatmul.mubr.msk.f32.gmra.mrb[10].mxu0 %vm1829_vm12, %v1799_v31  ;;  %2507 = vrot.lane.b32.xlu1 %v2429_v55, %s4235_s8 }
 0x2f1   : > { %v1684_v61 = vpop.permute.xlu1 %1683  ;;  %v1449_v4 = vpop.permute.xlu0 %1448 }
 0x2f2   : > { %1768 = vst.msk [vmem:[#allocation3 + $0x60] sm:$0xff] %vm1755_vm11, %v1684_v61 }
 0x2f3   : > { %1516 = vst.msk [vmem:[#allocation3 + $0xe8] sm:$0xff] %vm1486_vm9, %v1449_v4 }
 0x2f5   : > { %v1419_v26 = vpop.permute.xlu1 %1418  ;;  %v1584_v7 = vpop.permute.xlu0 %1583 }
 0x2f6   : > { %1501 = vst.msk [vmem:[#allocation3 + $0x70] sm:$0xff] %vm1486_vm9, %v1419_v26  ;;  %v1815_v31 = vld [vmem:[#allocation3 + $0xd8] sm:$0xff] }
 0x2f7   : > { %1651 = vst.msk [vmem:[#allocation3 + $0xe8] sm:$0xff] %vm1621_vm10, %v1584_v7 }
 0x2f9   : > { %v1554_v47 = vpop.permute.xlu1 %1553  ;;  %v1718_v3 = vpop.permute.xlu0 %1717  ;;  %v1800_v24 = vld [vmem:[#allocation3 + $0x60] sm:$0xff] }
 0x2fa   : > { %1636 = vst.msk [vmem:[#allocation3 + $0x70] sm:$0xff] %vm1621_vm10, %v1554_v47  ;;  %4108 = vmatprep.mubr.msk.f32.mxu0 %vm1829_vm12, %v1800_v24 }
 0x2fb   : > { %1785 = vst.msk [vmem:[#allocation3 + $0xe8] sm:$0xff] %vm1755_vm11, %v1718_v3  ;;  %4109 = vmatmul.mubr.msk.f32.gmra.mrb[12].mxu0 %vm1829_vm12, %v1801_v39 }
 0x2fd   : > { %v1688_v5 = vpop.permute.xlu1 %1687 }
 0x2fe   : > { %1770 = vst.msk [vmem:[#allocation3 + $0x70] sm:$0xff] %vm1755_vm11, %v1688_v5 }
 0x301   : > { %v1423_v15 = vpop.permute.xlu1 %1422 }
 0x302   : > { %1503 = vst.msk [vmem:[#allocation3 + $0x80] sm:$0xff] %vm1486_vm9, %v1423_v15  ;;  %v1817_v26 = vld [vmem:[#allocation3 + $0xe8] sm:$0xff]  ;;  %v5717_v15 = vld [vmem:[%s7068_s2] ss:$0 sm:$0xff] }
 0x305   : > { %v1558_v51 = vpop.permute.xlu1 %1557  ;;  %v1802_v18 = vld [vmem:[#allocation3 + $0x70] sm:$0xff] }
 0x306   : > { %1638 = vst.msk [vmem:[#allocation3 + $0x80] sm:$0xff] %vm1621_vm10, %v1558_v51  ;;  %4111 = vmatprep.mubr.msk.f32.mxu0 %vm1829_vm12, %v1802_v18  ;;  %v5724_v18 = vld [vmem:[%s7069_s3] ss:$0 sm:$0xff] }
 0x307   : > { %4112 = vmatmul.mubr.msk.f32.gmra.mrb[14].mxu0 %vm1829_vm12, %v1803_v57 }
 0x309   : > { %v1692_v16 = vpop.permute.xlu1 %1691 }
 0x30a   : > { %1772 = vst.msk [vmem:[#allocation3 + $0x80] sm:$0xff] %vm1755_vm11, %v1692_v16 }
 0x30d   : > { %v1427_v63 = vpop.permute.xlu1 %1426 }
 0x30e   : > { %1505 = vst.msk [vmem:[#allocation3 + $0x90] sm:$0xff] %vm1486_vm9, %v1427_v63 }
 0x311   : > { %v1562_v32 = vpop.permute.xlu1 %1561  ;;  %v1804_v53 = vld [vmem:[#allocation3 + $0x80] sm:$0xff] }
 0x312   : > { %1640 = vst.msk [vmem:[#allocation3 + $0x90] sm:$0xff] %vm1621_vm10, %v1562_v32  ;;  %4114 = vmatprep.mubr.msk.f32.mxu0 %vm1829_vm12, %v1804_v53 }
 0x313   : > { %4115 = vmatmul.mubr.msk.f32.gmra.mrb[16].mxu0 %vm1829_vm12, %v1805_v29 }
 0x315   : > { %v1696_v25 = vpop.permute.xlu1 %1695 }
 0x316   : > { %1774 = vst.msk [vmem:[#allocation3 + $0x90] sm:$0xff] %vm1755_vm11, %v1696_v25 }
 0x319   : > { %v1431_v44 = vpop.permute.xlu1 %1430 }
 0x31a   : > { %1507 = vst.msk [vmem:[#allocation3 + $0xa0] sm:$0xff] %vm1486_vm9, %v1431_v44 }
 0x31d   : > { %v1566_v30 = vpop.permute.xlu1 %1565  ;;  %v1806_v23 = vld [vmem:[#allocation3 + $0x90] sm:$0xff] }
 0x31e   : > { %1642 = vst.msk [vmem:[#allocation3 + $0xa0] sm:$0xff] %vm1621_vm10, %v1566_v30  ;;  %4117 = vmatprep.mubr.msk.f32.mxu0 %vm1829_vm12, %v1806_v23 }
 0x31f   : > { %4118 = vmatmul.mubr.msk.f32.gmra.mrb[18].mxu0 %vm1829_vm12, %v1807_v10 }
 0x321   : > { %v1700_v34 = vpop.permute.xlu1 %1699 }
 0x322   : > { %1776 = vst.msk [vmem:[#allocation3 + $0xa0] sm:$0xff] %vm1755_vm11, %v1700_v34 }
 0x325   : > { %v1435_v54 = vpop.permute.xlu1 %1434 }
 0x326   : > { %1509 = vst.msk [vmem:[#allocation3 + $0xb0] sm:$0xff] %vm1486_vm9, %v1435_v54 }
 0x329   : > { %v1570_v20 = vpop.permute.xlu1 %1569  ;;  %v1808_v19 = vld [vmem:[#allocation3 + $0xa0] sm:$0xff] }
 0x32a   : > { %1644 = vst.msk [vmem:[#allocation3 + $0xb0] sm:$0xff] %vm1621_vm10, %v1570_v20  ;;  %4120 = vmatprep.mubr.msk.f32.mxu0 %vm1829_vm12, %v1808_v19 }
 0x32b   : > { %4121 = vmatmul.mubr.msk.f32.gmra.mrb[20].mxu0 %vm1829_vm12, %v1809_v43 }
 0x32d   : > { %v1704_v9 = vpop.permute.xlu1 %1703  ;;  %v1453_v47 = vpop.permute.xlu0 %1452 }
 0x32e   : > { %1778 = vst.msk [vmem:[#allocation3 + $0xb0] sm:$0xff] %vm1755_vm11, %v1704_v9 }
 0x32f   : > { %1518 = vst.msk [vmem:[#allocation3 + $0xf8] sm:$0xff] %vm1486_vm9, %v1453_v47 }
 0x331   : > { %v1439_v50 = vpop.permute.xlu1 %1438 }
 0x332   : > { %1511 = vst.msk [vmem:[#allocation3 + $0xc0] sm:$0xff] %vm1486_vm9, %v1439_v50 }
 0x335   : > { %v1574_v0 = vpop.permute.xlu1 %1573  ;;  %v1810_v1 = vld [vmem:[#allocation3 + $0xb0] sm:$0xff] }
 0x336   : > { %1646 = vst.msk [vmem:[#allocation3 + $0xc0] sm:$0xff] %vm1621_vm10, %v1574_v0  ;;  %4123 = vmatprep.mubr.msk.f32.mxu0 %vm1829_vm12, %v1810_v1 }
 0x337   : > { %4124 = vmatmul.mubr.msk.f32.gmra.mrb[22].mxu0 %vm1829_vm12, %v1811_v11 }
 0x339   : > { %v1708_v60 = vpop.permute.xlu1 %1707 }
 0x33a   : > { %1780 = vst.msk [vmem:[#allocation3 + $0xc0] sm:$0xff] %vm1755_vm11, %v1708_v60 }
 0x33b   : > { %v1588_v24 = vpop.permute.xlu0 %1587 }
 0x33c   : > { %1653 = vst.msk [vmem:[#allocation3 + $0xf8] sm:$0xff] %vm1621_vm10, %v1588_v24 }
 0x33d   : > { %v1443_v42 = vpop.permute.xlu1 %1442 }
 0x33e   : > { %1513 = vst.msk [vmem:[#allocation3 + $0xd0] sm:$0xff] %vm1486_vm9, %v1443_v42 }
 0x341   : > { %v1578_v49 = vpop.permute.xlu1 %1577  ;;  %v1812_v36 = vld [vmem:[#allocation3 + $0xc0] sm:$0xff] }
 0x342   : > { %1648 = vst.msk [vmem:[#allocation3 + $0xd0] sm:$0xff] %vm1621_vm10, %v1578_v49  ;;  %4126 = vmatprep.mubr.msk.f32.mxu0 %vm1829_vm12, %v1812_v36  ;;  %v1722_v5 = vpop.permute.xlu0 %1721 }
 0x343   : > { %4127 = vmatmul.mubr.msk.f32.gmra.mrb[24].mxu0 %vm1829_vm12, %v1813_v62  ;;  %1787 = vst.msk [vmem:[#allocation3 + $0xf8] sm:$0xff] %vm1755_vm11, %v1722_v5 }
 0x345   : > { %v1712_v14 = vpop.permute.xlu1 %1711 }
 0x346   : > { %1782 = vst.msk [vmem:[#allocation3 + $0xd0] sm:$0xff] %vm1755_vm11, %v1712_v14 }
 0x349   : > { %v1447_v41 = vpop.permute.xlu1 %1446 }
 0x34a   : > { %1515 = vst.msk [vmem:[#allocation3 + $0xe0] sm:$0xff] %vm1486_vm9, %v1447_v41 }
 0x34b   : > { %v2510_v53 = vpop.permute.xlu0 %2509 }
 0x34c   : > { %2604 = vst.msk [vmem:[#allocation3 + $0x8] sm:$0xff] %vm745_vm3, %v2510_v53 }
 0x34d   : > { %v1582_v59 = vpop.permute.xlu1 %1581  ;;  %v1814_v17 = vld [vmem:[#allocation3 + $0xd0] sm:$0xff] }
 0x34e   : > { %1650 = vst.msk [vmem:[#allocation3 + $0xe0] sm:$0xff] %vm1621_vm10, %v1582_v59  ;;  %4129 = vmatprep.mubr.msk.f32.mxu0 %vm1829_vm12, %v1814_v17 }
 0x34f   : > { %4130 = vmatmul.mubr.msk.f32.gmra.mrb[26].mxu0 %vm1829_vm12, %v1815_v31 }
 0x351   : > { %v1716_v61 = vpop.permute.xlu1 %1715 }
 0x352   : > { %1784 = vst.msk [vmem:[#allocation3 + $0xe0] sm:$0xff] %vm1755_vm11, %v1716_v61 }
 0x355   : > { %v1451_v7 = vpop.permute.xlu1 %1450 }
 0x356   : > { %1517 = vst.msk [vmem:[#allocation3 + $0xf0] sm:$0xff] %vm1486_vm9, %v1451_v7 }
 0x359   : > { %v1816_v4 = vld [vmem:[#allocation3 + $0xe0] sm:$0xff]  ;;  %v1586_v3 = vpop.permute.xlu1 %1585 }
 0x35a   : > { %4132 = vmatprep.mubr.msk.f32.mxu0 %vm1829_vm12, %v1816_v4  ;;  %1652 = vst.msk [vmem:[#allocation3 + $0xf0] sm:$0xff] %vm1621_vm10, %v1586_v3 }
 0x35b   : > { %4133 = vmatmul.mubr.msk.f32.gmra.mrb[28].mxu0 %vm1829_vm12, %v1817_v26 }
 0x35d   : > { %v1720_v39 = vpop.permute.xlu1 %1719 }
 0x35e   : > { %1786 = vst.msk [vmem:[#allocation3 + $0xf0] sm:$0xff] %vm1755_vm11, %v1720_v39 }
 0x361   : > { %v2508_v63 = vpop.permute.xlu1 %2507 }
 0x362   : > { %2603 = vst.msk [vmem:[#allocation3] sm:$0xff] %vm745_vm3, %v2508_v63 }
 0x365   : > { %v1818_v53 = vld [vmem:[#allocation3 + $0xf0] sm:$0xff] }
 0x366   : > { %4135 = vmatprep.mubr.msk.f32.mxu0 %vm1829_vm12, %v1818_v53 }
 0x39a   : > { %v4092_v51 = vpop.f32.mrb[0].mxu0 }
 0x39b   : > { %v2159_v57 = vmul.f32 %v4092_v51, %v5717_v15  ;;  %v1992_v16 = vpop.f32.mrb[1].mxu0 }
 0x39c   : > { %v2158_v32 = vmul.f32 %v5717_v15, %v1992_v16 }
 0x39d   : > { %v2198_v29 = vadd.f32 %v5724_v18, %v2159_v57 }
 0x39e   : > { %v2197_v25 = vadd.f32 %v5724_v18, %v2158_v32 }
 0x39f   : > { %v2230_v44 = vmax.f32 %v2198_v29, 0.0 }
 0x3a0   : > { %v2229_v27 = vmax.f32 %v2197_v25, 0.0  ;;  %v1819_v25 = vld [vmem:[#allocation3 + $0xf8] sm:$0xff] }
 0x3a1   : > { %2262 = vst.msk [vmem:[#allocation2 + $0x21] sm:$0xff] %vm345_vm0, %v2230_v44  ;;  %4136 = vmatmul.mubr.msk.f32.gmra.mrb[30].mxu0 %vm1829_vm12, %v1819_v25 }
 0x3a2   : > { %2261 = vst.msk [vmem:[#allocation2 + $0x19] sm:$0xff] %vm345_vm0, %v2229_v27  ;;  %v4095_v13 = vpop.f32.mrb[2].mxu0 }
 0x3a3   : > { %v2161_v30 = vmul.f32 %v4095_v13, %v5717_v15  ;;  %v2002_v23 = vpop.f32.mrb[3].mxu0 }
 0x3a4   : > { %v2160_v8 = vmul.f32 %v5717_v15, %v2002_v23 }
 0x3a5   : > { %v2200_v10 = vadd.f32 %v5724_v18, %v2161_v30 }
 0x3a6   : > { %v2199_v46 = vadd.f32 %v5724_v18, %v2160_v8 }
 0x3a7   : > { %v2232_v28 = vmax.f32 %v2200_v10, 0.0 }
 0x3a8   : > { %v2231_v22 = vmax.f32 %v2199_v46, 0.0  ;;  %v5738_v35 = vld [vmem:[#allocation2 + $0x28] sm:$0x3] }
 0x3a9   : > { %2264 = vst.msk [vmem:[#allocation2 + $0x39] sm:$0xff] %vm345_vm0, %v2232_v28  ;;  %v5741_v33 = vld [vmem:[#allocation2 + $0x20] sm:$0xff]  ;;  %v2435_v34 = vrot.slane %v5738_v35, 1  ;;  %v5744_v58 = vld [vmem:[#allocation2 + $0x18] sm:$0xff] }
 0x3aa   : > { %2263 = vst.msk [vmem:[#allocation2 + $0x31] sm:$0xff] %vm345_vm0, %v2231_v22  ;;  %v4098_v21 = vpop.f32.mrb[4].mxu0  ;;  %v2433_v38 = vrot.slane %v5741_v33, 1  ;;  %2350 = vst.msk [vmem:[#allocation3 + $0x18] sm:$0xff] %vm345_vm0, %v5741_v33  ;;  %v2432_v2 = vrot.slane %v5744_v58, 1 }
 0x3ab   : > { %2349 = vst.msk [vmem:[#allocation3 + $0x10] sm:$0xff] %vm345_vm0, %v5744_v58  ;;  %v2163_v45 = vmul.f32 %v4098_v21, %v5717_v15  ;;  %v2012_v54 = vpop.f32.mrb[5].mxu0 }
 0x3ac   : > { %v2162_v6 = vmul.f32 %v5717_v15, %v2012_v54  ;;  %v5756_v48 = vsel %vm568_vm2, %v2433_v38, %v2435_v34  ;;  %v5759_v56 = vsel %vm568_vm2, %v2432_v2, %v2433_v38 }
 0x3ad   : > { %v2202_v55 = vadd.f32 %v5724_v18, %v2163_v45  ;;  %2513 = vrot.lane.b32.xlu0 %v5756_v48, %s4235_s8  ;;  %2511 = vrot.lane.b32.xlu1 %v5759_v56, %s4235_s8 }
 0x3ae   : > { %v2201_v37 = vadd.f32 %v5724_v18, %v2162_v6 }
 0x3af   : > { %v2234_v20 = vmax.f32 %v2202_v55, 0.0 }
 0x3b0   : > { %v2233_v19 = vmax.f32 %v2201_v37, 0.0  ;;  %v5767_v43 = vld [vmem:[#allocation2 + $0x40] sm:$0x3] }
 0x3b1   : > { %2266 = vst.msk [vmem:[#allocation2 + $0x51] sm:$0xff] %vm345_vm0, %v2234_v20  ;;  %v5770_v9 = vld [vmem:[#allocation2 + $0x38] sm:$0xff]  ;;  %v2440_v50 = vrot.slane %v5767_v43, 1  ;;  %v5773_v0 = vld [vmem:[#allocation2 + $0x30] sm:$0xff] }
 0x3b2   : > { %2265 = vst.msk [vmem:[#allocation2 + $0x49] sm:$0xff] %vm345_vm0, %v2233_v19  ;;  %v4101_v1 = vpop.f32.mrb[6].mxu0  ;;  %v2438_v11 = vrot.slane %v5770_v9, 1  ;;  %2352 = vst.msk [vmem:[#allocation3 + $0x28] sm:$0xff] %vm345_vm0, %v5770_v9  ;;  %v2437_v60 = vrot.slane %v5773_v0, 1 }
 0x3b3   : > { %2351 = vst.msk [vmem:[#allocation3 + $0x20] sm:$0xff] %vm345_vm0, %v5773_v0  ;;  %v2165_v42 = vmul.f32 %v4101_v1, %v5717_v15  ;;  %v2022_v49 = vpop.f32.mrb[7].mxu0 }
 0x3b4   : > { %v2164_v36 = vmul.f32 %v5717_v15, %v2022_v49  ;;  %v5785_v62 = vsel %vm568_vm2, %v2438_v11, %v2440_v50  ;;  %v5788_v14 = vsel %vm568_vm2, %v2437_v60, %v2438_v11 }
 0x3b5   : > { %7330 = vst [vmem:[#allocation4_spill] sm:$0xff] %v5785_v62  ;;  %v2204_v41 = vadd.f32 %v5724_v18, %v2165_v42  ;;  %2517 = vrot.lane.b32.xlu0 %v5785_v62, %s4235_s8  ;;  %2515 = vrot.lane.b32.xlu1 %v5788_v14, %s4235_s8 }
 0x3b6   : > { %v2203_v59 = vadd.f32 %v5724_v18, %v2164_v36 }
 0x3b7   : > { %v2236_v17 = vmax.f32 %v2204_v41, 0.0 }
 0x3b8   : > { %v2235_v31 = vmax.f32 %v2203_v59, 0.0  ;;  %v5796_v61 = vld [vmem:[#allocation2 + $0x58] sm:$0x3] }
 0x3b9   : > { %2268 = vst.msk [vmem:[#allocation2 + $0x69] sm:$0xff] %vm345_vm0, %v2236_v17  ;;  %v5799_v4 = vld [vmem:[#allocation2 + $0x50] sm:$0xff]  ;;  %v2445_v26 = vrot.slane %v5796_v61, 1  ;;  %v5802_v7 = vld [vmem:[#allocation2 + $0x48] sm:$0xff] }
 0x3ba   : > { %2267 = vst.msk [vmem:[#allocation2 + $0x61] sm:$0xff] %vm345_vm0, %v2235_v31  ;;  %v4104_v47 = vpop.f32.mrb[8].mxu0  ;;  %v2443_v3 = vrot.slane %v5799_v4, 1  ;;  %2354 = vst.msk [vmem:[#allocation3 + $0x38] sm:$0xff] %vm345_vm0, %v5799_v4  ;;  %v2442_v24 = vrot.slane %v5802_v7, 1 }
 0x3bb   : > { %2353 = vst.msk [vmem:[#allocation3 + $0x30] sm:$0xff] %vm345_vm0, %v5802_v7  ;;  %v2167_v39 = vmul.f32 %v4104_v47, %v5717_v15  ;;  %v2032_v5 = vpop.f32.mrb[9].mxu0 }
 0x3bc   : > { %v2166_v51 = vmul.f32 %v5717_v15, %v2032_v5  ;;  %v5814_v57 = vsel %vm568_vm2, %v2443_v3, %v2445_v26  ;;  %v5817_v16 = vsel %vm568_vm2, %v2442_v24, %v2443_v3 }
 0x3bd   : > { %7331 = vst [vmem:[#allocation18_spill] sm:$0xff] %v5814_v57  ;;  %7332 = vst [vmem:[#allocation5_spill] sm:$0xff] %v5817_v16  ;;  %v2206_v63 = vadd.f32 %v5724_v18, %v2167_v39  ;;  %2521 = vrot.lane.b32.xlu0 %v5814_v57, %s4235_s8  ;;  %2519 = vrot.lane.b32.xlu1 %v5817_v16, %s4235_s8 }
 0x3be   : > { %v2205_v32 = vadd.f32 %v5724_v18, %v2166_v51 }
 0x3bf   : > { %v2238_v29 = vmax.f32 %v2206_v63, 0.0 }
 0x3c0   : > { %v2237_v44 = vmax.f32 %v2205_v32, 0.0  ;;  %v5826_v27 = vld [vmem:[#allocation2 + $0x70] sm:$0x3] }
 0x3c1   : > { %2270 = vst.msk [vmem:[#allocation2 + $0x81] sm:$0xff] %vm345_vm0, %v2238_v29  ;;  %v5830_v13 = vld [vmem:[#allocation2 + $0x68] sm:$0xff]  ;;  %v2450_v30 = vrot.slane %v5826_v27, 1  ;;  %v5833_v23 = vld [vmem:[#allocation2 + $0x60] sm:$0xff] }
 0x3c2   : > { %2269 = vst.msk [vmem:[#allocation2 + $0x79] sm:$0xff] %vm345_vm0, %v2237_v44  ;;  %v4107_v8 = vpop.f32.mrb[10].mxu0  ;;  %v2448_v10 = vrot.slane %v5830_v13, 1  ;;  %2356 = vst.msk [vmem:[#allocation3 + $0x48] sm:$0xff] %vm345_vm0, %v5830_v13  ;;  %v2447_v46 = vrot.slane %v5833_v23, 1 }
 0x3c3   : > { %2355 = vst.msk [vmem:[#allocation3 + $0x40] sm:$0xff] %vm345_vm0, %v5833_v23  ;;  %v2169_v28 = vmul.f32 %v4107_v8, %v5717_v15  ;;  %v2042_v22 = vpop.f32.mrb[11].mxu0 }
 0x3c4   : > { %v2168_v34 = vmul.f32 %v5717_v15, %v2042_v22  ;;  %v5845_v21 = vsel %vm568_vm2, %v2448_v10, %v2450_v30  ;;  %v5848_v38 = vsel %vm568_vm2, %v2447_v46, %v2448_v10 }
 0x3c5   : > { %7333 = vst [vmem:[#allocation19_spill] sm:$0xff] %v5845_v21  ;;  %7334 = vst [vmem:[#allocation6_spill] sm:$0xff] %v5848_v38  ;;  %v2208_v2 = vadd.f32 %v5724_v18, %v2169_v28  ;;  %2525 = vrot.lane.b32.xlu0 %v5845_v21, %s4235_s8  ;;  %2523 = vrot.lane.b32.xlu1 %v5848_v38, %s4235_s8 }
 0x3c6   : > { %v2207_v45 = vadd.f32 %v5724_v18, %v2168_v34 }
 0x3c7   : > { %v2240_v54 = vmax.f32 %v2208_v2, 0.0 }
 0x3c8   : > { %v2239_v6 = vmax.f32 %v2207_v45, 0.0  ;;  %v5856_v55 = vld [vmem:[#allocation2 + $0x88] sm:$0x3] }
 0x3c9   : > { %2272 = vst.msk [vmem:[#allocation2 + $0x99] sm:$0xff] %vm345_vm0, %v2240_v54  ;;  %v5859_v37 = vld [vmem:[#allocation2 + $0x80] sm:$0xff]  ;;  %v2455_v20 = vrot.slane %v5856_v55, 1  ;;  %v5862_v19 = vld [vmem:[#allocation2 + $0x78] sm:$0xff] }
 0x3ca   : > { %2271 = vst.msk [vmem:[#allocation2 + $0x91] sm:$0xff] %vm345_vm0, %v2239_v6  ;;  %v2453_v50 = vrot.slane %v5859_v37, 1  ;;  %2358 = vst.msk [vmem:[#allocation3 + $0x58] sm:$0xff] %vm345_vm0, %v5859_v37  ;;  %v2452_v1 = vrot.slane %v5862_v19, 1 }
 0x3cb   : > { %2357 = vst.msk [vmem:[#allocation3 + $0x50] sm:$0xff] %vm345_vm0, %v5862_v19 }
 0x3cc   : > { %v5872_v11 = vsel %vm568_vm2, %v2453_v50, %v2455_v20  ;;  %v5875_v60 = vsel %vm568_vm2, %v2452_v1, %v2453_v50 }
 0x3cd   : > { %7335 = vst [vmem:[#allocation22_spill] sm:$0xff] %v5872_v11  ;;  %7336 = vst [vmem:[#allocation7_spill] sm:$0xff] %v5875_v60  ;;  %2529 = vrot.lane.b32.xlu0 %v5872_v11, %s4235_s8  ;;  %2527 = vrot.lane.b32.xlu1 %v5875_v60, %s4235_s8 }
 0x3ce   : > { %v4110_v42 = vpop.f32.mrb[12].mxu0 }
 0x3cf   : > { %v2171_v49 = vmul.f32 %v4110_v42, %v5717_v15  ;;  %v2052_v36 = vpop.f32.mrb[13].mxu0 }
 0x3d0   : > { %v2170_v41 = vmul.f32 %v5717_v15, %v2052_v36  ;;  %v5883_v59 = vld [vmem:[#allocation2 + $0xa0] sm:$0x3] }
 0x3d1   : > { %v2210_v17 = vadd.f32 %v5724_v18, %v2171_v49  ;;  %v5886_v31 = vld [vmem:[#allocation2 + $0x98] sm:$0xff]  ;;  %v2460_v26 = vrot.slane %v5883_v59, 1  ;;  %v5889_v47 = vld [vmem:[#allocation2 + $0x90] sm:$0xff] }
 0x3d2   : > { %v2209_v3 = vadd.f32 %v5724_v18, %v2170_v41  ;;  %v2458_v24 = vrot.slane %v5886_v31, 1  ;;  %2360 = vst.msk [vmem:[#allocation3 + $0x68] sm:$0xff] %vm345_vm0, %v5886_v31  ;;  %v2457_v39 = vrot.slane %v5889_v47, 1  ;;  %2359 = vst.msk [vmem:[#allocation3 + $0x60] sm:$0xff] %vm345_vm0, %v5889_v47 }
 0x3d3   : > { %v2242_v5 = vmax.f32 %v2210_v17, 0.0 }
 0x3d4   : > { %v2241_v51 = vmax.f32 %v2209_v3, 0.0  ;;  %v5899_v63 = vsel %vm568_vm2, %v2458_v24, %v2460_v26  ;;  %v5902_v32 = vsel %vm568_vm2, %v2457_v39, %v2458_v24 }
 0x3d5   : > { %7337 = vst [vmem:[#allocation24_spill] sm:$0xff] %v5899_v63  ;;  %7338 = vst [vmem:[#allocation8_spill] sm:$0xff] %v5902_v32  ;;  %2533 = vrot.lane.b32.xlu0 %v5899_v63, %s4235_s8  ;;  %2531 = vrot.lane.b32.xlu1 %v5902_v32, %s4235_s8 }
 0x3d6   : > { %2274 = vst.msk [vmem:[#allocation2 + $0xb1] sm:$0xff] %vm345_vm0, %v2242_v5  ;;  %2273 = vst.msk [vmem:[#allocation2 + $0xa9] sm:$0xff] %vm345_vm0, %v2241_v51 }
 0x3da   : > { %v4113_v53 = vpop.f32.mrb[14].mxu0 }
 0x3db   : > { %v2173_v29 = vmul.f32 %v4113_v53, %v5717_v15  ;;  %v2062_v25 = vpop.f32.mrb[15].mxu0 }
 0x3dc   : > { %v2172_v44 = vmul.f32 %v5717_v15, %v2062_v25 }
 0x3dd   : > { %v5912_v30 = vld [vmem:[#allocation2 + $0xb8] sm:$0x3]  ;;  %v2212_v8 = vadd.f32 %v5724_v18, %v2173_v29  ;;  %v5915_v10 = vld [vmem:[#allocation2 + $0xb0] sm:$0xff]  ;;  %v5918_v28 = vld [vmem:[#allocation2 + $0xa8] sm:$0xff] }
 0x3de   : > { %v2465_v46 = vrot.slane %v5912_v30, 1  ;;  %v2211_v22 = vadd.f32 %v5724_v18, %v2172_v44  ;;  %v2463_v34 = vrot.slane %v5915_v10, 1  ;;  %2362 = vst.msk [vmem:[#allocation3 + $0x78] sm:$0xff] %vm345_vm0, %v5915_v10  ;;  %v2462_v2 = vrot.slane %v5918_v28, 1  ;;  %2361 = vst.msk [vmem:[#allocation3 + $0x70] sm:$0xff] %vm345_vm0, %v5918_v28 }
 0x3df   : > { %v2244_v45 = vmax.f32 %v2212_v8, 0.0 }
 0x3e0   : > { %v2243_v54 = vmax.f32 %v2211_v22, 0.0  ;;  %v5928_v6 = vsel %vm568_vm2, %v2463_v34, %v2465_v46  ;;  %v5931_v20 = vsel %vm568_vm2, %v2462_v2, %v2463_v34 }
 0x3e1   : > { %7339 = vst [vmem:[#allocation27_spill] sm:$0xff] %v5928_v6  ;;  %7340 = vst [vmem:[#allocation29_spill] sm:$0xff] %v5931_v20  ;;  %2537 = vrot.lane.b32.xlu0 %v5928_v6, %s4235_s8  ;;  %2535 = vrot.lane.b32.xlu1 %v5931_v20, %s4235_s8 }
 0x3e2   : > { %2276 = vst.msk [vmem:[#allocation2 + $0xc9] sm:$0xff] %vm345_vm0, %v2244_v45  ;;  %2275 = vst.msk [vmem:[#allocation2 + $0xc1] sm:$0xff] %vm345_vm0, %v2243_v54 }
 0x3e6   : > { %v4116_v50 = vpop.f32.mrb[16].mxu0 }
 0x3e7   : > { %v2175_v1 = vmul.f32 %v4116_v50, %v5717_v15  ;;  %v2072_v42 = vpop.f32.mrb[17].mxu0 }
 0x3e8   : > { %v2174_v49 = vmul.f32 %v5717_v15, %v2072_v42 }
 0x3e9   : > { %v5941_v36 = vld [vmem:[#allocation2 + $0xd0] sm:$0x3]  ;;  %v2214_v41 = vadd.f32 %v5724_v18, %v2175_v1  ;;  %v5944_v17 = vld [vmem:[#allocation2 + $0xc8] sm:$0xff]  ;;  %v5947_v3 = vld [vmem:[#allocation2 + $0xc0] sm:$0xff] }
 0x3ea   : > { %v2470_v26 = vrot.slane %v5941_v36, 1  ;;  %v2213_v24 = vadd.f32 %v5724_v18, %v2174_v49  ;;  %v2468_v39 = vrot.slane %v5944_v17, 1  ;;  %2364 = vst.msk [vmem:[#allocation3 + $0x88] sm:$0xff] %vm345_vm0, %v5944_v17  ;;  %v2467_v5 = vrot.slane %v5947_v3, 1  ;;  %2363 = vst.msk [vmem:[#allocation3 + $0x80] sm:$0xff] %vm345_vm0, %v5947_v3 }
 0x3eb   : > { %v2246_v51 = vmax.f32 %v2214_v41, 0.0 }
 0x3ec   : > { %v2245_v53 = vmax.f32 %v2213_v24, 0.0  ;;  %v5957_v29 = vsel %vm568_vm2, %v2468_v39, %v2470_v26  ;;  %v5960_v25 = vsel %vm568_vm2, %v2467_v5, %v2468_v39 }
 0x3ed   : > { %7341 = vst [vmem:[#allocation37_spill] sm:$0xff] %v5957_v29  ;;  %7342 = vst [vmem:[#allocation20_spill] sm:$0xff] %v5960_v25  ;;  %2541 = vrot.lane.b32.xlu0 %v5957_v29, %s4235_s8  ;;  %2539 = vrot.lane.b32.xlu1 %v5960_v25, %s4235_s8 }
 0x3ee   : > { %2278 = vst.msk [vmem:[#allocation2 + $0xe1] sm:$0xff] %vm345_vm0, %v2246_v51  ;;  %2277 = vst.msk [vmem:[#allocation2 + $0xd9] sm:$0xff] %vm345_vm0, %v2245_v53 }
 0x3f2   : > { %v4119_v44 = vpop.f32.mrb[18].mxu0 }
 0x3f3   : > { %v2177_v8 = vmul.f32 %v4119_v44, %v5717_v15  ;;  %v2082_v46 = vpop.f32.mrb[19].mxu0 }
 0x3f4   : > { %v2176_v22 = vmul.f32 %v5717_v15, %v2082_v46 }
 0x3f5   : > { %v5970_v34 = vld [vmem:[#allocation2 + $0xe8] sm:$0x3]  ;;  %v2216_v2 = vadd.f32 %v5724_v18, %v2177_v8  ;;  %v5973_v45 = vld [vmem:[#allocation2 + $0xe0] sm:$0xff]  ;;  %v5976_v50 = vld [vmem:[#allocation2 + $0xd8] sm:$0xff] }
 0x3f6   : > { %v2475_v54 = vrot.slane %v5970_v34, 1  ;;  %v2215_v1 = vadd.f32 %v5724_v18, %v2176_v22  ;;  %v2473_v42 = vrot.slane %v5973_v45, 1  ;;  %2366 = vst.msk [vmem:[#allocation3 + $0x98] sm:$0xff] %vm345_vm0, %v5973_v45  ;;  %v2472_v49 = vrot.slane %v5976_v50, 1  ;;  %2365 = vst.msk [vmem:[#allocation3 + $0x90] sm:$0xff] %vm345_vm0, %v5976_v50 }
 0x3f7   : > { %v2248_v41 = vmax.f32 %v2216_v2, 0.0 }
 0x3f8   : > { %v2247_v26 = vmax.f32 %v2215_v1, 0.0  ;;  %v5986_v24 = vsel %vm568_vm2, %v2473_v42, %v2475_v54  ;;  %v5989_v39 = vsel %vm568_vm2, %v2472_v49, %v2473_v42 }
 0x3f9   : > { %2280 = vst.msk [vmem:[#allocation2 + $0xf9] sm:$0xff] %vm345_vm0, %v2248_v41  ;;  %2545 = vrot.lane.b32.xlu0 %v5986_v24, %s4235_s8  ;;  %2543 = vrot.lane.b32.xlu1 %v5989_v39, %s4235_s8 }
 0x3fa   : > { %2279 = vst.msk [vmem:[#allocation2 + $0xf1] sm:$0xff] %vm345_vm0, %v2247_v26 }
 0x3fe   : > { %v4122_v5 = vpop.f32.mrb[20].mxu0 }
 0x3ff   : > { %v2179_v51 = vmul.f32 %v4122_v5, %v5717_v15  ;;  %v2092_v53 = vpop.f32.mrb[21].mxu0 }
 0x400   : > { %v2178_v44 = vmul.f32 %v5717_v15, %v2092_v53  ;;  %v5999_v8 = vld [vmem:[#allocation2 + $0x100] sm:$0x3] }
 0x401   : > { %v2218_v46 = vadd.f32 %v5724_v18, %v2179_v51  ;;  %v6002_v22 = vld [vmem:[#allocation2 + $0xf8] sm:$0xff]  ;;  %v2480_v2 = vrot.slane %v5999_v8, 1  ;;  %v6005_v54 = vld [vmem:[#allocation2 + $0xf0] sm:$0xff] }
 0x402   : > { %v2217_v1 = vadd.f32 %v5724_v18, %v2178_v44  ;;  %v2478_v42 = vrot.slane %v6002_v22, 1  ;;  %2368 = vst.msk [vmem:[#allocation3 + $0xa8] sm:$0xff] %vm345_vm0, %v6002_v22  ;;  %v2477_v49 = vrot.slane %v6005_v54, 1  ;;  %2367 = vst.msk [vmem:[#allocation3 + $0xa0] sm:$0xff] %vm345_vm0, %v6005_v54 }
 0x403   : > { %v2250_v41 = vmax.f32 %v2218_v46, 0.0 }
 0x404   : > { %v2249_v26 = vmax.f32 %v2217_v1, 0.0  ;;  %v6015_v5 = vsel %vm568_vm2, %v2478_v42, %v2480_v2  ;;  %v6018_v51 = vsel %vm568_vm2, %v2477_v49, %v2478_v42 }
 0x405   : > { %2282 = vst.msk [vmem:[#allocation2 + $0x111] sm:$0xff] %vm345_vm0, %v2250_v41  ;;  %2549 = vrot.lane.b32.xlu0 %v6015_v5, %s4235_s8  ;;  %2547 = vrot.lane.b32.xlu1 %v6018_v51, %s4235_s8 }
 0x406   : > { %2281 = vst.msk [vmem:[#allocation2 + $0x109] sm:$0xff] %vm345_vm0, %v2249_v26 }
 0x40a   : > { %v4125_v53 = vpop.f32.mrb[22].mxu0 }
 0x40b   : > { %v2181_v44 = vmul.f32 %v4125_v53, %v5717_v15  ;;  %v2102_v46 = vpop.f32.mrb[23].mxu0 }
 0x40c   : > { %v2180_v2 = vmul.f32 %v5717_v15, %v2102_v46  ;;  %v6028_v1 = vld [vmem:[#allocation2 + $0x118] sm:$0x3] }
 0x40d   : > { %v2220_v42 = vadd.f32 %v5724_v18, %v2181_v44  ;;  %v6031_v49 = vld [vmem:[#allocation2 + $0x110] sm:$0xff]  ;;  %v2485_v41 = vrot.slane %v6028_v1, 1  ;;  %v6034_v29 = vld [vmem:[#allocation2 + $0x108] sm:$0xff] }
 0x40e   : > { %v2219_v25 = vadd.f32 %v5724_v18, %v2180_v2  ;;  %v2483_v26 = vrot.slane %v6031_v49, 1  ;;  %2370 = vst.msk [vmem:[#allocation3 + $0xb8] sm:$0xff] %vm345_vm0, %v6031_v49  ;;  %v2482_v53 = vrot.slane %v6034_v29, 1  ;;  %2369 = vst.msk [vmem:[#allocation3 + $0xb0] sm:$0xff] %vm345_vm0, %v6034_v29 }
 0x40f   : > { %v2252_v46 = vmax.f32 %v2220_v42, 0.0 }
 0x410   : > { %v2251_v44 = vmax.f32 %v2219_v25, 0.0  ;;  %v6044_v6 = vsel %vm568_vm2, %v2483_v26, %v2485_v41  ;;  %v6047_v20 = vsel %vm568_vm2, %v2482_v53, %v2483_v26 }
 0x411   : > { %7343 = vst [vmem:[#allocation25_spill] sm:$0xff] %v6044_v6  ;;  %7344 = vst [vmem:[#allocation30_spill] sm:$0xff] %v6047_v20  ;;  %2553 = vrot.lane.b32.xlu0 %v6044_v6, %s4235_s8  ;;  %2551 = vrot.lane.b32.xlu1 %v6047_v20, %s4235_s8 }
 0x412   : > { %2284 = vst.msk [vmem:[#allocation2 + $0x129] sm:$0xff] %vm345_vm0, %v2252_v46  ;;  %2283 = vst.msk [vmem:[#allocation2 + $0x121] sm:$0xff] %vm345_vm0, %v2251_v44 }
 0x416   : > { %v4128_v2 = vpop.f32.mrb[24].mxu0 }
 0x417   : > { %v2183_v42 = vmul.f32 %v4128_v2, %v5717_v15  ;;  %v2112_v25 = vpop.f32.mrb[25].mxu0 }
 0x418   : > { %v2182_v41 = vmul.f32 %v5717_v15, %v2112_v25 }
 0x419   : > { %v6057_v63 = vld [vmem:[#allocation2 + $0x130] sm:$0x3]  ;;  %v2222_v26 = vadd.f32 %v5724_v18, %v2183_v42  ;;  %v6060_v53 = vld [vmem:[#allocation2 + $0x128] sm:$0xff]  ;;  %v6063_v32 = vld [vmem:[#allocation2 + $0x120] sm:$0xff] }
 0x41a   : > { %v2490_v46 = vrot.slane %v6057_v63, 1  ;;  %v2221_v11 = vadd.f32 %v5724_v18, %v2182_v41  ;;  %v2488_v44 = vrot.slane %v6060_v53, 1  ;;  %2372 = vst.msk [vmem:[#allocation3 + $0xc8] sm:$0xff] %vm345_vm0, %v6060_v53  ;;  %v2487_v2 = vrot.slane %v6063_v32, 1  ;;  %2371 = vst.msk [vmem:[#allocation3 + $0xc0] sm:$0xff] %vm345_vm0, %v6063_v32 }
 0x41b   : > { %v2254_v25 = vmax.f32 %v2222_v26, 0.0 }
 0x41c   : > { %v2253_v42 = vmax.f32 %v2221_v11, 0.0  ;;  %v6073_v60 = vsel %vm568_vm2, %v2488_v44, %v2490_v46  ;;  %v6076_v21 = vsel %vm568_vm2, %v2487_v2, %v2488_v44 }
 0x41d   : > { %7345 = vst [vmem:[#allocation34_spill] sm:$0xff] %v6073_v60  ;;  %7346 = vst [vmem:[#allocation38_spill] sm:$0xff] %v6076_v21  ;;  %2557 = vrot.lane.b32.xlu0 %v6073_v60, %s4235_s8  ;;  %2555 = vrot.lane.b32.xlu1 %v6076_v21, %s4235_s8 }
 0x41e   : > { %2286 = vst.msk [vmem:[#allocation2 + $0x141] sm:$0xff] %vm345_vm0, %v2254_v25  ;;  %2285 = vst.msk [vmem:[#allocation2 + $0x139] sm:$0xff] %vm345_vm0, %v2253_v42 }
 0x41f   : > { %v2512_v41 = vpop.permute.xlu1 %2511  ;;  %v2514_v38 = vpop.permute.xlu0 %2513 }
 0x420   : > { %2605 = vst.msk [vmem:[#allocation3 + $0x10] sm:$0xff] %vm745_vm3, %v2512_v41  ;;  %2606 = vst.msk [vmem:[#allocation3 + $0x18] sm:$0xff] %vm745_vm3, %v2514_v38 }
 0x422   : > { %v4131_v11 = vpop.f32.mrb[26].mxu0 }
 0x423   : > { %v2185_v26 = vmul.f32 %v4131_v11, %v5717_v15  ;;  %v2122_v46 = vpop.f32.mrb[27].mxu0 }
 0x424   : > { %v2184_v44 = vmul.f32 %v5717_v15, %v2122_v46 }
 0x425   : > { %v6088_v2 = vld [vmem:[#allocation2 + $0x148] sm:$0x3]  ;;  %v2224_v25 = vadd.f32 %v5724_v18, %v2185_v26  ;;  %v6091_v60 = vld [vmem:[#allocation2 + $0x140] sm:$0xff]  ;;  %v6094_v21 = vld [vmem:[#allocation2 + $0x138] sm:$0xff] }
 0x426   : > { %v2495_v42 = vrot.slane %v6088_v2, 1  ;;  %v2223_v41 = vadd.f32 %v5724_v18, %v2184_v44  ;;  %v2493_v38 = vrot.slane %v6091_v60, 1  ;;  %2374 = vst.msk [vmem:[#allocation3 + $0xd8] sm:$0xff] %vm345_vm0, %v6091_v60  ;;  %v2492_v11 = vrot.slane %v6094_v21, 1  ;;  %2373 = vst.msk [vmem:[#allocation3 + $0xd0] sm:$0xff] %vm345_vm0, %v6094_v21 }
 0x427   : > { %v2256_v46 = vmax.f32 %v2224_v25, 0.0  ;;  %v2516_v26 = vpop.permute.xlu1 %2515  ;;  %v2518_v57 = vpop.permute.xlu0 %2517 }
 0x428   : > { %v2255_v16 = vmax.f32 %v2223_v41, 0.0  ;;  %2607 = vst.msk [vmem:[#allocation3 + $0x20] sm:$0xff] %vm745_vm3, %v2516_v26  ;;  %2608 = vst.msk [vmem:[#allocation3 + $0x28] sm:$0xff] %vm745_vm3, %v2518_v57  ;;  %v6106_v44 = vsel %vm568_vm2, %v2493_v38, %v2495_v42  ;;  %v6109_v6 = vsel %vm568_vm2, %v2492_v11, %v2493_v38 }
 0x429   : > { %7347 = vst [vmem:[#allocation44_spill] sm:$0xff] %v6106_v44  ;;  %7348 = vst [vmem:[#allocation45_spill] sm:$0xff] %v6109_v6  ;;  %2561 = vrot.lane.b32.xlu0 %v6106_v44, %s4235_s8  ;;  %2559 = vrot.lane.b32.xlu1 %v6109_v6, %s4235_s8 }
 0x42a   : > { %2288 = vst.msk [vmem:[#allocation2 + $0x159] sm:$0xff] %vm345_vm0, %v2256_v46  ;;  %2287 = vst.msk [vmem:[#allocation2 + $0x151] sm:$0xff] %vm345_vm0, %v2255_v16 }
 0x42e   : > { %v4134_v25 = vpop.f32.mrb[28].mxu0 }
 0x42f   : > { %v2187_v41 = vmul.f32 %v4134_v25, %v5717_v15  ;;  %v2520_v57 = vpop.permute.xlu1 %2519  ;;  %v2132_v26 = vpop.f32.mrb[29].mxu0 }
 0x430   : > { %2609 = vst.msk [vmem:[#allocation3 + $0x30] sm:$0xff] %vm745_vm3, %v2520_v57  ;;  %v2186_v42 = vmul.f32 %v5717_v15, %v2132_v26  ;;  %v2522_v38 = vpop.permute.xlu0 %2521 }
 0x431   : > { %v6120_v11 = vld [vmem:[#allocation2 + $0x160] sm:$0x3]  ;;  %v2226_v46 = vadd.f32 %v5724_v18, %v2187_v41  ;;  %2610 = vst.msk [vmem:[#allocation3 + $0x38] sm:$0xff] %vm745_vm3, %v2522_v38  ;;  %v6124_v44 = vld [vmem:[#allocation2 + $0x158] sm:$0xff]  ;;  %v6127_v6 = vld [vmem:[#allocation2 + $0x150] sm:$0xff] }
 0x432   : > { %v2500_v16 = vrot.slane %v6120_v11, 1  ;;  %v2225_v25 = vadd.f32 %v5724_v18, %v2186_v42  ;;  %v2498_v20 = vrot.slane %v6124_v44, 1  ;;  %2376 = vst.msk [vmem:[#allocation3 + $0xe8] sm:$0xff] %vm345_vm0, %v6124_v44  ;;  %v2497_v15 = vrot.slane %v6127_v6, 1  ;;  %2375 = vst.msk [vmem:[#allocation3 + $0xe0] sm:$0xff] %vm345_vm0, %v6127_v6 }
 0x433   : > { %v2258_v41 = vmax.f32 %v2226_v46, 0.0 }
 0x434   : > { %v2257_v57 = vmax.f32 %v2225_v25, 0.0  ;;  %v6137_v26 = vsel %vm568_vm2, %v2498_v20, %v2500_v16  ;;  %v6140_v38 = vsel %vm568_vm2, %v2497_v15, %v2498_v20  ;;  %v2636_v15 = vrot.slane %v5673_v12, 2 }
 0x435   : > { %7349 = vst [vmem:[#allocation46_spill] sm:$0xff] %v6137_v26  ;;  %7350 = vst [vmem:[#allocation47_spill] sm:$0xff] %v6140_v38  ;;  %2565 = vrot.lane.b32.xlu0 %v6137_v26, %s4235_s8  ;;  %2563 = vrot.lane.b32.xlu1 %v6140_v38, %s4235_s8  ;;  %v2638_v26 = vrot.slane %v5675_v52, 2 }
 0x436   : > { %2290 = vst.msk [vmem:[#allocation2 + $0x171] sm:$0xff] %vm345_vm0, %v2258_v41  ;;  %2289 = vst.msk [vmem:[#allocation2 + $0x169] sm:$0xff] %vm345_vm0, %v2257_v57 }
 0x437   : > { %v2524_v18 = vpop.permute.xlu1 %2523  ;;  %v2526_v42 = vpop.permute.xlu0 %2525 }
 0x438   : > { %2611 = vst.msk [vmem:[#allocation3 + $0x40] sm:$0xff] %vm745_vm3, %v2524_v18  ;;  %2612 = vst.msk [vmem:[#allocation3 + $0x48] sm:$0xff] %vm745_vm3, %v2526_v42  ;;  %v2635_v18 = vrot.slane %v5671_v40, 2  ;;  %v2639_v40 = vsel %vm778_vm4, %v2636_v15, %v2638_v26 }
 0x43a   : > { %v2637_v52 = vsel %vm778_vm4, %v2635_v18, %v2636_v15  ;;  %v2645_v15 = vrot.slane %v5773_v0, 2 }
 0x43d   : > { %v6150_v46 = vld [vmem:[#allocation2 + $0x178] sm:$0x3]  ;;  %v6152_v20 = vld [vmem:[#allocation2 + $0x170] sm:$0xff]  ;;  %v6155_v25 = vld [vmem:[#allocation2 + $0x168] sm:$0xff] }
 0x43e   : > { %v2505_v16 = vrot.slane %v6150_v46, 1  ;;  %v2503_v41 = vrot.slane %v6152_v20, 1  ;;  %v2502_v57 = vrot.slane %v6155_v25, 1  ;;  %2377 = vst.msk [vmem:[#allocation3 + $0xf0] sm:$0xff] %vm345_vm0, %v6155_v25  ;;  %2378 = vst.msk [vmem:[#allocation3 + $0xf8] sm:$0xff] %vm345_vm0, %v6152_v20 }
 0x43f   : > { %v2528_v42 = vpop.permute.xlu1 %2527  ;;  %v2530_v38 = vpop.permute.xlu0 %2529 }
 0x440   : > { %2613 = vst.msk [vmem:[#allocation3 + $0x50] sm:$0xff] %vm745_vm3, %v2528_v42  ;;  %2614 = vst.msk [vmem:[#allocation3 + $0x58] sm:$0xff] %vm745_vm3, %v2530_v38  ;;  %v6169_v12 = vsel %vm568_vm2, %v2503_v41, %v2505_v16  ;;  %v6172_v62 = vsel %vm568_vm2, %v2502_v57, %v2503_v41  ;;  %v2641_v42 = vrot.slane %v5741_v33, 2  ;;  %v2643_v38 = vrot.slane %v5738_v35, 2 }
 0x441   : > { %7351 = vst [vmem:[#allocation12_spill] sm:$0xff] %v6169_v12  ;;  %7352 = vst [vmem:[#allocation15_spill] sm:$0xff] %v6172_v62  ;;  %2569 = vrot.lane.b32.xlu0 %v6169_v12, %s4235_s8  ;;  %2567 = vrot.lane.b32.xlu1 %v6172_v62, %s4235_s8  ;;  %v2640_v16 = vrot.slane %v5744_v58, 2  ;;  %v2646_v12 = vrot.slane %v5770_v9, 2  ;;  %v2648_v62 = vrot.slane %v5767_v43, 2 }
 0x442   : > { %v6190_v26 = vsel %vm778_vm4, %v2641_v42, %v2643_v38  ;;  %v2656_v38 = vrot.slane %v5830_v13, 2 }
 0x443   : > { %v6193_v35 = vsel %vm778_vm4, %v2640_v16, %v2641_v42  ;;  %v6201_v43 = vsel %vm778_vm4, %v2646_v12, %v2648_v62  ;;  %v6204_v18 = vsel %vm778_vm4, %v2645_v15, %v2646_v12  ;;  %v2650_v42 = vrot.slane %v5802_v7, 2 }
 0x444   : > { %v2658_v62 = vrot.slane %v5826_v27, 2 }
 0x445   : > { %2717 = vrot.lane.b32.xlu0 %v2639_v40, %s4236_s9  ;;  %2715 = vrot.lane.b32.xlu1 %v2637_v52, %s4236_s9  ;;  %v2651_v40 = vrot.slane %v5799_v4, 2  ;;  %v2653_v52 = vrot.slane %v5796_v61, 2  ;;  %v2655_v61 = vrot.slane %v5833_v23, 2 }
 0x446   : > { %v6227_v15 = vsel %vm778_vm4, %v2656_v38, %v2658_v62  ;;  %v2666_v62 = vrot.slane %v5886_v31, 2 }
 0x447   : > { %v2532_v41 = vpop.permute.xlu1 %2531  ;;  %v2534_v57 = vpop.permute.xlu0 %2533  ;;  %v6216_v16 = vsel %vm778_vm4, %v2651_v40, %v2653_v52  ;;  %v6219_v12 = vsel %vm778_vm4, %v2650_v42, %v2651_v40  ;;  %7353 = vst [vmem:[#allocation23_spill] sm:$0xff] %v6227_v15  ;;  %v6232_v27 = vsel %vm778_vm4, %v2655_v61, %v2656_v38  ;;  %v2661_v40 = vrot.slane %v5859_v37, 2 }
 0x448   : > { %2615 = vst.msk [vmem:[#allocation3 + $0x60] sm:$0xff] %vm745_vm3, %v2532_v41  ;;  %2616 = vst.msk [vmem:[#allocation3 + $0x68] sm:$0xff] %vm745_vm3, %v2534_v57  ;;  %v2663_v52 = vrot.slane %v5856_v55, 2  ;;  %v2660_v42 = vrot.slane %v5862_v19, 2  ;;  %v2665_v55 = vrot.slane %v5889_v47, 2 }
 0x449   : > { %2721 = vrot.lane.b32.xlu0 %v6190_v26, %s4236_s9  ;;  %2719 = vrot.lane.b32.xlu1 %v6193_v35, %s4236_s9 }
 0x44a   : > { %v6247_v38 = vsel %vm778_vm4, %v2660_v42, %v2661_v40 }
 0x44b   : > { %7355 = vst [vmem:[#allocation32_spill] sm:$0xff] %v6247_v38 }
 0x44d   : > { %2725 = vrot.lane.b32.xlu0 %v6201_v43, %s4236_s9  ;;  %2723 = vrot.lane.b32.xlu1 %v6204_v18, %s4236_s9 }
 0x451   : > { %2729 = vrot.lane.b32.xlu0 %v6216_v16, %s4236_s9  ;;  %2727 = vrot.lane.b32.xlu1 %v6219_v12, %s4236_s9 }
 0x453   : > { %v2536_v41 = vpop.permute.xlu1 %2535  ;;  %v2538_v57 = vpop.permute.xlu0 %2537 }
 0x454   : > { %2617 = vst.msk [vmem:[#allocation3 + $0x70] sm:$0xff] %vm745_vm3, %v2536_v41  ;;  %2618 = vst.msk [vmem:[#allocation3 + $0x78] sm:$0xff] %vm745_vm3, %v2538_v57  ;;  %v2668_v41 = vrot.slane %v5883_v59, 2  ;;  %v6244_v57 = vsel %vm778_vm4, %v2661_v40, %v2663_v52  ;;  %v2671_v59 = vrot.slane %v5915_v10, 2  ;;  %v2673_v52 = vrot.slane %v5912_v30, 2 }
 0x455   : > { %2733 = vrot.lane.b32.xlu0 %v6227_v15, %s4236_s9  ;;  %2731 = vrot.lane.b32.xlu1 %v6232_v27, %s4236_s9  ;;  %7354 = vst [vmem:[#allocation28_spill] sm:$0xff] %v6244_v57  ;;  %v6258_v15 = vsel %vm778_vm4, %v2665_v55, %v2666_v62  ;;  %v2670_v40 = vrot.slane %v5918_v28, 2  ;;  %v2675_v55 = vrot.slane %v5947_v3, 2 }
 0x456   : > { %v6255_v61 = vsel %vm778_vm4, %v2666_v62, %v2668_v41  ;;  %7357 = vst [vmem:[#allocation9_spill] sm:$0xff] %v6258_v15  ;;  %v2676_v41 = vrot.slane %v5944_v17, 2  ;;  %v6272_v30 = vsel %vm778_vm4, %v2671_v59, %v2673_v52  ;;  %v2683_v52 = vrot.slane %v5970_v34, 2 }
 0x457   : > { %7356 = vst [vmem:[#allocation33_spill] sm:$0xff] %v6255_v61  ;;  %7358 = vst [vmem:[#allocation36_spill] sm:$0xff] %v6272_v30  ;;  %v6275_v62 = vsel %vm778_vm4, %v2670_v40, %v2671_v59  ;;  %v2680_v59 = vrot.slane %v5976_v50, 2  ;;  %v2686_v40 = vrot.slane %v6002_v22, 2  ;;  %v2685_v34 = vrot.slane %v6005_v54, 2 }
 0x458   : > { %7359 = vst [vmem:[#allocation40_spill] sm:$0xff] %v6275_v62 }
 0x459   : > { %2737 = vrot.lane.b32.xlu0 %v6244_v57, %s4236_s9  ;;  %2735 = vrot.lane.b32.xlu1 %v6247_v38, %s4236_s9  ;;  %v2678_v38 = vrot.slane %v5941_v36, 2 }
 0x45b   : > { %v6283_v36 = vsel %vm778_vm4, %v2676_v41, %v2678_v38  ;;  %v2688_v38 = vrot.slane %v5999_v8, 2  ;;  %v6314_v8 = vsel %vm778_vm4, %v2685_v34, %v2686_v40 }
 0x45c   : > { %7360 = vst [vmem:[#allocation10_spill] sm:$0xff] %v6283_v36 }
 0x45d   : > { %2741 = vrot.lane.b32.xlu0 %v6255_v61, %s4236_s9  ;;  %2739 = vrot.lane.b32.xlu1 %v6258_v15, %s4236_s9  ;;  %v2708_v15 = vrot.slane %v6120_v11, 2 }
 0x45f   : > { %v2540_v42 = vpop.permute.xlu1 %2539  ;;  %v2542_v57 = vpop.permute.xlu0 %2541 }
 0x460   : > { %2619 = vst.msk [vmem:[#allocation3 + $0x80] sm:$0xff] %vm745_vm3, %v2540_v42  ;;  %2620 = vst.msk [vmem:[#allocation3 + $0x88] sm:$0xff] %vm745_vm3, %v2542_v57  ;;  %v6286_v42 = vsel %vm778_vm4, %v2675_v55, %v2676_v41  ;;  %v2681_v57 = vrot.slane %v5973_v45, 2 }
 0x461   : > { %2745 = vrot.lane.b32.xlu0 %v6272_v30, %s4236_s9  ;;  %2743 = vrot.lane.b32.xlu1 %v6275_v62, %s4236_s9  ;;  %7361 = vst [vmem:[#allocation41_spill] sm:$0xff] %v6286_v42 }
 0x462   : > { %v6298_v30 = vsel %vm778_vm4, %v2681_v57, %v2683_v52  ;;  %v6301_v41 = vsel %vm778_vm4, %v2680_v59, %v2681_v57  ;;  %v2691_v57 = vrot.slane %v6031_v49, 2  ;;  %v2693_v52 = vrot.slane %v6028_v1, 2 }
 0x463   : > { %v2690_v59 = vrot.slane %v6034_v29, 2  ;;  %v2695_v1 = vrot.slane %v6063_v32, 2 }
 0x465   : > { %2749 = vrot.lane.b32.xlu0 %v6283_v36, %s4236_s9  ;;  %2747 = vrot.lane.b32.xlu1 %v6286_v42, %s4236_s9  ;;  %v6309_v42 = vsel %vm778_vm4, %v2686_v40, %v2688_v38  ;;  %v2696_v38 = vrot.slane %v6060_v53, 2  ;;  %v6329_v40 = vsel %vm778_vm4, %v2690_v59, %v2691_v57 }
 0x467   : > { %v6340_v62 = vsel %vm778_vm4, %v2695_v1, %v2696_v38  ;;  %v2705_v1 = vrot.slane %v6127_v6, 2 }
 0x469   : > { %2753 = vrot.lane.b32.xlu0 %v6298_v30, %s4236_s9  ;;  %2751 = vrot.lane.b32.xlu1 %v6301_v41, %s4236_s9 }
 0x46b   : > { %v2544_v55 = vpop.permute.xlu1 %2543  ;;  %v2546_v36 = vpop.permute.xlu0 %2545 }
 0x46c   : > { %2621 = vst.msk [vmem:[#allocation3 + $0x90] sm:$0xff] %vm745_vm3, %v2544_v55  ;;  %2622 = vst.msk [vmem:[#allocation3 + $0x98] sm:$0xff] %vm745_vm3, %v2546_v36  ;;  %v2698_v55 = vrot.slane %v6057_v63, 2  ;;  %v6326_v36 = vsel %vm778_vm4, %v2691_v57, %v2693_v52  ;;  %v2701_v63 = vrot.slane %v6091_v60, 2  ;;  %v2703_v52 = vrot.slane %v6088_v2, 2 }
 0x46d   : > { %2757 = vrot.lane.b32.xlu0 %v6309_v42, %s4236_s9  ;;  %2755 = vrot.lane.b32.xlu1 %v6314_v8, %s4236_s9  ;;  %v2700_v57 = vrot.slane %v6094_v21, 2 }
 0x46e   : > { %v6337_v34 = vsel %vm778_vm4, %v2696_v38, %v2698_v55  ;;  %v2706_v55 = vrot.slane %v6124_v44, 2  ;;  %v6354_v2 = vsel %vm778_vm4, %v2701_v63, %v2703_v52  ;;  %v2713_v52 = vrot.slane %v6150_v46, 2 }
 0x46f   : > { %v6357_v38 = vsel %vm778_vm4, %v2700_v57, %v2701_v63  ;;  %v2710_v63 = vrot.slane %v6155_v25, 2 }
 0x470   : > { %v6365_v11 = vsel %vm778_vm4, %v2706_v55, %v2708_v15 }
 0x471   : > { %2761 = vrot.lane.b32.xlu0 %v6326_v36, %s4236_s9  ;;  %2759 = vrot.lane.b32.xlu1 %v6329_v40, %s4236_s9 }
 0x475   : > { %2765 = vrot.lane.b32.xlu0 %v6337_v34, %s4236_s9  ;;  %2763 = vrot.lane.b32.xlu1 %v6340_v62, %s4236_s9 }
 0x477   : > { %v2548_v59 = vpop.permute.xlu1 %2547  ;;  %v2550_v61 = vpop.permute.xlu0 %2549 }
 0x478   : > { %2623 = vst.msk [vmem:[#allocation3 + $0xa0] sm:$0xff] %vm745_vm3, %v2548_v59  ;;  %2624 = vst.msk [vmem:[#allocation3 + $0xa8] sm:$0xff] %vm745_vm3, %v2550_v61  ;;  %v6368_v59 = vsel %vm778_vm4, %v2705_v1, %v2706_v55  ;;  %v2711_v61 = vrot.slane %v6152_v20, 2 }
 0x479   : > { %2769 = vrot.lane.b32.xlu0 %v6354_v2, %s4236_s9  ;;  %2767 = vrot.lane.b32.xlu1 %v6357_v38, %s4236_s9 }
 0x47a   : > { %v6378_v57 = vsel %vm778_vm4, %v2711_v61, %v2713_v52  ;;  %v6381_v15 = vsel %vm778_vm4, %v2710_v63, %v2711_v61 }
 0x47d   : > { %2773 = vrot.lane.b32.xlu0 %v6365_v11, %s4236_s9  ;;  %2771 = vrot.lane.b32.xlu1 %v6368_v59, %s4236_s9 }
 0x481   : > { %2777 = vrot.lane.b32.xlu0 %v6378_v57, %s4236_s9  ;;  %2775 = vrot.lane.b32.xlu1 %v6381_v15, %s4236_s9 }
 0x483   : > { %v2552_v46 = vpop.permute.xlu1 %2551  ;;  %v2554_v55 = vpop.permute.xlu0 %2553 }
 0x484   : > { %2625 = vst.msk [vmem:[#allocation3 + $0xb0] sm:$0xff] %vm745_vm3, %v2552_v46  ;;  %2626 = vst.msk [vmem:[#allocation3 + $0xb8] sm:$0xff] %vm745_vm3, %v2554_v55 }
 0x485   : > { %2847 = vrot.lane.b32.xlu0 %v5741_v33, %s4237_s10  ;;  %2845 = vrot.lane.b32.xlu1 %v5744_v58, %s4237_s10 }
 0x489   : > { %2851 = vrot.lane.b32.xlu0 %v5770_v9, %s4237_s10  ;;  %2849 = vrot.lane.b32.xlu1 %v5773_v0, %s4237_s10 }
 0x48d   : > { %2855 = vrot.lane.b32.xlu0 %v5799_v4, %s4237_s10  ;;  %2853 = vrot.lane.b32.xlu1 %v5802_v7, %s4237_s10 }
 0x48f   : > { %v2556_v1 = vpop.permute.xlu1 %2555  ;;  %v2558_v61 = vpop.permute.xlu0 %2557 }
 0x490   : > { %2627 = vst.msk [vmem:[#allocation3 + $0xc0] sm:$0xff] %vm745_vm3, %v2556_v1  ;;  %2628 = vst.msk [vmem:[#allocation3 + $0xc8] sm:$0xff] %vm745_vm3, %v2558_v61 }
 0x491   : > { %2859 = vrot.lane.b32.xlu0 %v5830_v13, %s4237_s10  ;;  %2857 = vrot.lane.b32.xlu1 %v5833_v23, %s4237_s10 }
 0x495   : > { %2863 = vrot.lane.b32.xlu0 %v5859_v37, %s4237_s10  ;;  %2861 = vrot.lane.b32.xlu1 %v5862_v19, %s4237_s10 }
 0x499   : > { %2867 = vrot.lane.b32.xlu0 %v5886_v31, %s4237_s10  ;;  %2865 = vrot.lane.b32.xlu1 %v5889_v47, %s4237_s10 }
 0x49b   : > { %v2560_v33 = vpop.permute.xlu1 %2559  ;;  %v2562_v58 = vpop.permute.xlu0 %2561 }
 0x49c   : > { %2629 = vst.msk [vmem:[#allocation3 + $0xd0] sm:$0xff] %vm745_vm3, %v2560_v33  ;;  %2630 = vst.msk [vmem:[#allocation3 + $0xd8] sm:$0xff] %vm745_vm3, %v2562_v58 }
 0x49d   : > { %2871 = vrot.lane.b32.xlu0 %v5915_v10, %s4237_s10  ;;  %2869 = vrot.lane.b32.xlu1 %v5918_v28, %s4237_s10 }
 0x4a1   : > { %2875 = vrot.lane.b32.xlu0 %v5944_v17, %s4237_s10  ;;  %2873 = vrot.lane.b32.xlu1 %v5947_v3, %s4237_s10 }
 0x4a5   : > { %2879 = vrot.lane.b32.xlu0 %v5973_v45, %s4237_s10  ;;  %2877 = vrot.lane.b32.xlu1 %v5976_v50, %s4237_s10 }
 0x4a7   : > { %v2564_v52 = vpop.permute.xlu1 %2563  ;;  %v2566_v63 = vpop.permute.xlu0 %2565 }
 0x4a8   : > { %2631 = vst.msk [vmem:[#allocation3 + $0xe0] sm:$0xff] %vm745_vm3, %v2564_v52  ;;  %2632 = vst.msk [vmem:[#allocation3 + $0xe8] sm:$0xff] %vm745_vm3, %v2566_v63 }
 0x4a9   : > { %3013 = vrot.lane.b32.xlu0 %v5986_v24, %s4238_s11  ;;  %3011 = vrot.lane.b32.xlu1 %v5989_v39, %s4238_s11 }
 0x4ad   : > { %2981 = vrot.lane.b32.xlu0 %v5756_v48, %s4238_s11  ;;  %2979 = vrot.lane.b32.xlu1 %v5759_v56, %s4238_s11 }
 0x4b1   : > { %3146 = vrot.lane.b32.xlu0 %v6298_v30, %s4239_s12  ;;  %3144 = vrot.lane.b32.xlu1 %v6301_v41, %s4239_s12 }
 0x4b3   : > { %v2568_v46 = vpop.permute.xlu1 %2567  ;;  %v2570_v55 = vpop.permute.xlu0 %2569 }
 0x4b4   : > { %2633 = vst.msk [vmem:[#allocation3 + $0xf0] sm:$0xff] %vm745_vm3, %v2568_v46  ;;  %2634 = vst.msk [vmem:[#allocation3 + $0xf8] sm:$0xff] %vm745_vm3, %v2570_v55  ;;  %v4137_v55 = vpop.f32.mrb[30].mxu0 }
 0x4b5   : > { %3114 = vrot.lane.b32.xlu0 %v6190_v26, %s4239_s12  ;;  %3112 = vrot.lane.b32.xlu1 %v6193_v35, %s4239_s12 }
 0x4b7   : > { %v2716_v48 = vpop.permute.xlu1 %2715  ;;  %v2718_v56 = vpop.permute.xlu0 %2717 }
 0x4b8   : > { %2811 = vst.msk [vmem:[#allocation3] sm:$0xff] %vm955_vm5, %v2716_v48  ;;  %2812 = vst.msk [vmem:[#allocation3 + $0x8] sm:$0xff] %vm955_vm5, %v2718_v56  ;;  %v4222_v48 = vld [vmem:[%s7068_s2] ss:$0 sm:$0xff] }
 0x4b9   : > { %3276 = vrot.lane.b32.xlu0 %v6002_v22, %s4240_s13  ;;  %3274 = vrot.lane.b32.xlu1 %v6005_v54, %s4240_s13  ;;  %v2189_v56 = vmul.f32 %v4222_v48, %v4137_v55 }
 0x4bb   : > { %v2720_v1 = vpop.permute.xlu1 %2719  ;;  %v2722_v61 = vpop.permute.xlu0 %2721 }
 0x4bc   : > { %2813 = vst.msk [vmem:[#allocation3 + $0x10] sm:$0xff] %vm955_vm5, %v2720_v1  ;;  %2814 = vst.msk [vmem:[#allocation3 + $0x18] sm:$0xff] %vm955_vm5, %v2722_v61 }
 0x4bd   : > { %3242 = vrot.lane.b32.xlu1 %v5773_v0, %s4240_s13  ;;  %3244 = vrot.lane.b32.xlu0 %v5770_v9, %s4240_s13  ;;  %v7362_v9 = vld [vmem:[#allocation4_spill] sm:$0xff] }
 0x4bf   : > { %v2724_v26 = vpop.permute.xlu1 %2723  ;;  %v2726_v35 = vpop.permute.xlu0 %2725 }
 0x4c0   : > { %2815 = vst.msk [vmem:[#allocation3 + $0x20] sm:$0xff] %vm955_vm5, %v2724_v26  ;;  %2816 = vst.msk [vmem:[#allocation3 + $0x28] sm:$0xff] %vm955_vm5, %v2726_v35  ;;  %v4223_v26 = vld [vmem:[%s7069_s3] ss:$0 sm:$0xff] }
 0x4c1   : > { %3408 = vrot.lane.b32.xlu1 %v6018_v51, %s4241_s14  ;;  %3410 = vrot.lane.b32.xlu0 %v6015_v5, %s4241_s14  ;;  %v2228_v35 = vadd.f32 %v4223_v26, %v2189_v56 }
 0x4c3   : > { %v2728_v33 = vpop.permute.xlu1 %2727  ;;  %v2730_v58 = vpop.permute.xlu0 %2729 }
 0x4c4   : > { %2817 = vst.msk [vmem:[#allocation3 + $0x30] sm:$0xff] %vm955_vm5, %v2728_v33  ;;  %2818 = vst.msk [vmem:[#allocation3 + $0x38] sm:$0xff] %vm955_vm5, %v2730_v58  ;;  %v2142_v33 = vpop.f32.mrb[31].mxu0 }
 0x4c5   : > { %3376 = vrot.lane.b32.xlu1 %v5788_v14, %s4241_s14  ;;  %3378 = vrot.lane.b32.xlu0 %v7362_v9, %s4241_s14  ;;  %v2188_v58 = vmul.f32 %v4222_v48, %v2142_v33 }
 0x4c7   : > { %v2732_v0 = vpop.permute.xlu1 %2731  ;;  %v2734_v52 = vpop.permute.xlu0 %2733 }
 0x4c8   : > { %2819 = vst.msk [vmem:[#allocation3 + $0x40] sm:$0xff] %vm955_vm5, %v2732_v0  ;;  %2820 = vst.msk [vmem:[#allocation3 + $0x48] sm:$0xff] %vm955_vm5, %v2734_v52  ;;  %v2260_v0 = vmax.f32 %v2228_v35, 0.0 }
 0x4c9   : > { %3541 = vrot.lane.b32.xlu1 %v6314_v8, %s4242_s15  ;;  %3543 = vrot.lane.b32.xlu0 %v6309_v42, %s4242_s15 }
 0x4ca   : > { %2292 = vst.msk [vmem:[#allocation2 + $0x189] sm:$0xff] %vm345_vm0, %v2260_v0 }
 0x4cb   : > { %v2736_v63 = vpop.permute.xlu1 %2735  ;;  %v2738_v46 = vpop.permute.xlu0 %2737 }
 0x4cc   : > { %2821 = vst.msk [vmem:[#allocation3 + $0x50] sm:$0xff] %vm955_vm5, %v2736_v63  ;;  %2822 = vst.msk [vmem:[#allocation3 + $0x58] sm:$0xff] %vm955_vm5, %v2738_v46  ;;  %v2227_v46 = vadd.f32 %v4223_v26, %v2188_v58 }
 0x4cd   : > { %3509 = vrot.lane.b32.xlu1 %v6204_v18, %s4242_s15  ;;  %3511 = vrot.lane.b32.xlu0 %v6201_v43, %s4242_s15 }
 0x4cf   : > { %v2740_v1 = vpop.permute.xlu1 %2739  ;;  %v2742_v61 = vpop.permute.xlu0 %2741 }
 0x4d0   : > { %2823 = vst.msk [vmem:[#allocation3 + $0x60] sm:$0xff] %vm955_vm5, %v2740_v1  ;;  %2824 = vst.msk [vmem:[#allocation3 + $0x68] sm:$0xff] %vm955_vm5, %v2742_v61  ;;  %v7363_v1 = vld [vmem:[#allocation30_spill] sm:$0xff]  ;;  %v7364_v61 = vld [vmem:[#allocation25_spill] sm:$0xff] }
 0x4d1   : > { %2881 = vrot.lane.b32.xlu1 %v6005_v54, %s4237_s10  ;;  %2883 = vrot.lane.b32.xlu0 %v6002_v22, %s4237_s10  ;;  %v2259_v54 = vmax.f32 %v2227_v46, 0.0 }
 0x4d3   : > { %v2744_v52 = vpop.permute.xlu1 %2743  ;;  %v2746_v63 = vpop.permute.xlu0 %2745  ;;  %2291 = vst.msk [vmem:[#allocation2 + $0x181] sm:$0xff] %vm345_vm0, %v2259_v54 }
 0x4d4   : > { %2825 = vst.msk [vmem:[#allocation3 + $0x70] sm:$0xff] %vm955_vm5, %v2744_v52  ;;  %2826 = vst.msk [vmem:[#allocation3 + $0x78] sm:$0xff] %vm955_vm5, %v2746_v63 }
 0x4d5   : > { %3015 = vrot.lane.b32.xlu1 %v6018_v51, %s4238_s11  ;;  %3017 = vrot.lane.b32.xlu0 %v6015_v5, %s4238_s11 }
 0x4d7   : > { %v2748_v55 = vpop.permute.xlu1 %2747  ;;  %v2750_v22 = vpop.permute.xlu0 %2749 }
 0x4d8   : > { %2827 = vst.msk [vmem:[#allocation3 + $0x80] sm:$0xff] %vm955_vm5, %v2748_v55  ;;  %2828 = vst.msk [vmem:[#allocation3 + $0x88] sm:$0xff] %vm955_vm5, %v2750_v22 }
 0x4d9   : > { %2983 = vrot.lane.b32.xlu1 %v5788_v14, %s4238_s11  ;;  %2985 = vrot.lane.b32.xlu0 %v7362_v9, %s4238_s11 }
 0x4db   : > { %v2752_v48 = vpop.permute.xlu1 %2751  ;;  %v2754_v51 = vpop.permute.xlu0 %2753 }
 0x4dc   : > { %2829 = vst.msk [vmem:[#allocation3 + $0x90] sm:$0xff] %vm955_vm5, %v2752_v48  ;;  %2830 = vst.msk [vmem:[#allocation3 + $0x98] sm:$0xff] %vm955_vm5, %v2754_v51 }
 0x4dd   : > { %3148 = vrot.lane.b32.xlu1 %v6314_v8, %s4239_s12  ;;  %3150 = vrot.lane.b32.xlu0 %v6309_v42, %s4239_s12 }
 0x4df   : > { %v2756_v5 = vpop.permute.xlu1 %2755  ;;  %v2758_v56 = vpop.permute.xlu0 %2757 }
 0x4e0   : > { %2831 = vst.msk [vmem:[#allocation3 + $0xa0] sm:$0xff] %vm955_vm5, %v2756_v5  ;;  %2832 = vst.msk [vmem:[#allocation3 + $0xa8] sm:$0xff] %vm955_vm5, %v2758_v56 }
 0x4e1   : > { %3116 = vrot.lane.b32.xlu1 %v6204_v18, %s4239_s12  ;;  %3118 = vrot.lane.b32.xlu0 %v6201_v43, %s4239_s12 }
 0x4e3   : > { %v2760_v14 = vpop.permute.xlu1 %2759  ;;  %v2762_v9 = vpop.permute.xlu0 %2761 }
 0x4e4   : > { %2833 = vst.msk [vmem:[#allocation3 + $0xb0] sm:$0xff] %vm955_vm5, %v2760_v14  ;;  %2834 = vst.msk [vmem:[#allocation3 + $0xb8] sm:$0xff] %vm955_vm5, %v2762_v9  ;;  %v7367_v9 = vld [vmem:[#allocation38_spill] sm:$0xff] }
 0x4e5   : > { %3278 = vrot.lane.b32.xlu1 %v6034_v29, %s4240_s13  ;;  %3280 = vrot.lane.b32.xlu0 %v6031_v49, %s4240_s13 }
 0x4e7   : > { %v2764_v42 = vpop.permute.xlu1 %2763  ;;  %v2766_v8 = vpop.permute.xlu0 %2765 }
 0x4e8   : > { %2835 = vst.msk [vmem:[#allocation3 + $0xc0] sm:$0xff] %vm955_vm5, %v2764_v42  ;;  %2836 = vst.msk [vmem:[#allocation3 + $0xc8] sm:$0xff] %vm955_vm5, %v2766_v8  ;;  %v7368_v42 = vld [vmem:[#allocation34_spill] sm:$0xff] }
 0x4e9   : > { %3246 = vrot.lane.b32.xlu1 %v5802_v7, %s4240_s13  ;;  %3248 = vrot.lane.b32.xlu0 %v5799_v4, %s4240_s13  ;;  %v7365_v4 = vld [vmem:[#allocation5_spill] sm:$0xff]  ;;  %v7366_v7 = vld [vmem:[#allocation18_spill] sm:$0xff] }
 0x4eb   : > { %v2768_v43 = vpop.permute.xlu1 %2767  ;;  %v2770_v18 = vpop.permute.xlu0 %2769 }
 0x4ec   : > { %2837 = vst.msk [vmem:[#allocation3 + $0xd0] sm:$0xff] %vm955_vm5, %v2768_v43  ;;  %2838 = vst.msk [vmem:[#allocation3 + $0xd8] sm:$0xff] %vm955_vm5, %v2770_v18 }
 0x4ed   : > { %3412 = vrot.lane.b32.xlu1 %v7363_v1, %s4241_s14  ;;  %3414 = vrot.lane.b32.xlu0 %v7364_v61, %s4241_s14 }
 0x4ef   : > { %v2772_v26 = vpop.permute.xlu1 %2771  ;;  %v2774_v35 = vpop.permute.xlu0 %2773 }
 0x4f0   : > { %2839 = vst.msk [vmem:[#allocation3 + $0xe0] sm:$0xff] %vm955_vm5, %v2772_v26  ;;  %2840 = vst.msk [vmem:[#allocation3 + $0xe8] sm:$0xff] %vm955_vm5, %v2774_v35  ;;  %v7371_v35 = vld [vmem:[#allocation23_spill] sm:$0xff] }
 0x4f1   : > { %3380 = vrot.lane.b32.xlu1 %v7365_v4, %s4241_s14  ;;  %3382 = vrot.lane.b32.xlu0 %v7366_v7, %s4241_s14 }
 0x4f3   : > { %v2776_v33 = vpop.permute.xlu1 %2775  ;;  %v2778_v58 = vpop.permute.xlu0 %2777 }
 0x4f4   : > { %2841 = vst.msk [vmem:[#allocation3 + $0xf0] sm:$0xff] %vm955_vm5, %v2776_v33  ;;  %2842 = vst.msk [vmem:[#allocation3 + $0xf8] sm:$0xff] %vm955_vm5, %v2778_v58 }
 0x4f5   : > { %3545 = vrot.lane.b32.xlu1 %v6329_v40, %s4242_s15  ;;  %3547 = vrot.lane.b32.xlu0 %v6326_v36, %s4242_s15 }
 0x4f7   : > { %v2846_v0 = vpop.permute.xlu1 %2845  ;;  %v2848_v52 = vpop.permute.xlu0 %2847 }
 0x4f8   : > { %2941 = vst.msk [vmem:[#allocation3] sm:$0xff] %vm1086_vm6, %v2846_v0  ;;  %2942 = vst.msk [vmem:[#allocation3 + $0x8] sm:$0xff] %vm1086_vm6, %v2848_v52 }
 0x4f9   : > { %3513 = vrot.lane.b32.xlu1 %v6219_v12, %s4242_s15  ;;  %3515 = vrot.lane.b32.xlu0 %v6216_v16, %s4242_s15 }
 0x4fb   : > { %v2850_v63 = vpop.permute.xlu1 %2849  ;;  %v2852_v46 = vpop.permute.xlu0 %2851 }
 0x4fc   : > { %2943 = vst.msk [vmem:[#allocation3 + $0x10] sm:$0xff] %vm1086_vm6, %v2850_v63  ;;  %2944 = vst.msk [vmem:[#allocation3 + $0x18] sm:$0xff] %vm1086_vm6, %v2852_v46 }
 0x4fd   : > { %2885 = vrot.lane.b32.xlu1 %v6034_v29, %s4237_s10  ;;  %2887 = vrot.lane.b32.xlu0 %v6031_v49, %s4237_s10 }
 0x4ff   : > { %v2854_v54 = vpop.permute.xlu1 %2853  ;;  %v2856_v55 = vpop.permute.xlu0 %2855 }
 0x500   : > { %2945 = vst.msk [vmem:[#allocation3 + $0x20] sm:$0xff] %vm1086_vm6, %v2854_v54  ;;  %2946 = vst.msk [vmem:[#allocation3 + $0x28] sm:$0xff] %vm1086_vm6, %v2856_v55 }
 0x501   : > { %3019 = vrot.lane.b32.xlu1 %v7363_v1, %s4238_s11  ;;  %3021 = vrot.lane.b32.xlu0 %v7364_v61, %s4238_s11 }
 0x503   : > { %v2858_v22 = vpop.permute.xlu1 %2857  ;;  %v2860_v48 = vpop.permute.xlu0 %2859 }
 0x504   : > { %2947 = vst.msk [vmem:[#allocation3 + $0x30] sm:$0xff] %vm1086_vm6, %v2858_v22  ;;  %2948 = vst.msk [vmem:[#allocation3 + $0x38] sm:$0xff] %vm1086_vm6, %v2860_v48 }
 0x505   : > { %2987 = vrot.lane.b32.xlu1 %v7365_v4, %s4238_s11  ;;  %2989 = vrot.lane.b32.xlu0 %v7366_v7, %s4238_s11 }
 0x507   : > { %v2862_v29 = vpop.permute.xlu1 %2861  ;;  %v2864_v49 = vpop.permute.xlu0 %2863 }
 0x508   : > { %2949 = vst.msk [vmem:[#allocation3 + $0x40] sm:$0xff] %vm1086_vm6, %v2862_v29  ;;  %2950 = vst.msk [vmem:[#allocation3 + $0x48] sm:$0xff] %vm1086_vm6, %v2864_v49  ;;  %v4225_v49 = vld [vmem:[%s4346_s30 + $0x8] sm:$0xff] }
 0x509   : > { %3152 = vrot.lane.b32.xlu1 %v6329_v40, %s4239_s12  ;;  %3154 = vrot.lane.b32.xlu0 %v6326_v36, %s4239_s12 }
 0x50b   : > { %v2866_v51 = vpop.permute.xlu1 %2865  ;;  %v2868_v5 = vpop.permute.xlu0 %2867 }
 0x50c   : > { %2951 = vst.msk [vmem:[#allocation3 + $0x50] sm:$0xff] %vm1086_vm6, %v2866_v51  ;;  %2952 = vst.msk [vmem:[#allocation3 + $0x58] sm:$0xff] %vm1086_vm6, %v2868_v5 }
 0x50d   : > { %3120 = vrot.lane.b32.xlu1 %v6219_v12, %s4239_s12  ;;  %3122 = vrot.lane.b32.xlu0 %v6216_v16, %s4239_s12 }
 0x50f   : > { %v2870_v56 = vpop.permute.xlu1 %2869  ;;  %v2872_v14 = vpop.permute.xlu0 %2871 }
 0x510   : > { %2953 = vst.msk [vmem:[#allocation3 + $0x60] sm:$0xff] %vm1086_vm6, %v2870_v56  ;;  %2954 = vst.msk [vmem:[#allocation3 + $0x68] sm:$0xff] %vm1086_vm6, %v2872_v14 }
 0x511   : > { %3282 = vrot.lane.b32.xlu1 %v6063_v32, %s4240_s13  ;;  %3284 = vrot.lane.b32.xlu0 %v6060_v53, %s4240_s13 }
 0x513   : > { %v2874_v36 = vpop.permute.xlu1 %2873  ;;  %v2876_v40 = vpop.permute.xlu0 %2875 }
 0x514   : > { %2955 = vst.msk [vmem:[#allocation3 + $0x70] sm:$0xff] %vm1086_vm6, %v2874_v36  ;;  %2956 = vst.msk [vmem:[#allocation3 + $0x78] sm:$0xff] %vm1086_vm6, %v2876_v40 }
 0x515   : > { %3250 = vrot.lane.b32.xlu1 %v5833_v23, %s4240_s13  ;;  %3252 = vrot.lane.b32.xlu0 %v5830_v13, %s4240_s13  ;;  %v7369_v13 = vld [vmem:[#allocation6_spill] sm:$0xff]  ;;  %v7370_v23 = vld [vmem:[#allocation19_spill] sm:$0xff] }
 0x517   : > { %v2878_v16 = vpop.permute.xlu1 %2877  ;;  %v2880_v12 = vpop.permute.xlu0 %2879 }
 0x518   : > { %2957 = vst.msk [vmem:[#allocation3 + $0x80] sm:$0xff] %vm1086_vm6, %v2878_v16  ;;  %2958 = vst.msk [vmem:[#allocation3 + $0x88] sm:$0xff] %vm1086_vm6, %v2880_v12  ;;  %v7376_v16 = vld [vmem:[#allocation7_spill] sm:$0xff]  ;;  %v7377_v12 = vld [vmem:[#allocation22_spill] sm:$0xff] }
 0x519   : > { %3416 = vrot.lane.b32.xlu1 %v7367_v9, %s4241_s14  ;;  %3418 = vrot.lane.b32.xlu0 %v7368_v42, %s4241_s14 }
 0x51b   : > { %v3012_v8 = vpop.permute.xlu1 %3011  ;;  %v3014_v43 = vpop.permute.xlu0 %3013 }
 0x51c   : > { %3091 = vst.msk [vmem:[#allocation3 + $0x80] sm:$0xff] %vm1221_vm7, %v3012_v8  ;;  %3092 = vst.msk [vmem:[#allocation3 + $0x88] sm:$0xff] %vm1221_vm7, %v3014_v43 }
 0x51d   : > { %3384 = vrot.lane.b32.xlu1 %v7369_v13, %s4241_s14  ;;  %3386 = vrot.lane.b32.xlu0 %v7370_v23, %s4241_s14 }
 0x51f   : > { %v2980_v18 = vpop.permute.xlu1 %2979  ;;  %v2982_v1 = vpop.permute.xlu0 %2981 }
 0x520   : > { %3075 = vst.msk [vmem:[#allocation3] sm:$0xff] %vm1221_vm7, %v2980_v18  ;;  %3076 = vst.msk [vmem:[#allocation3 + $0x8] sm:$0xff] %vm1221_vm7, %v2982_v1 }
 0x521   : > { %3549 = vrot.lane.b32.xlu1 %v6340_v62, %s4242_s15  ;;  %3551 = vrot.lane.b32.xlu0 %v6337_v34, %s4242_s15 }
 0x523   : > { %v3145_v61 = vpop.permute.xlu1 %3144  ;;  %v3147_v26 = vpop.permute.xlu0 %3146 }
 0x524   : > { %3224 = vst.msk [vmem:[#allocation3 + $0x80] sm:$0xff] %vm1355_vm8, %v3145_v61  ;;  %3225 = vst.msk [vmem:[#allocation3 + $0x88] sm:$0xff] %vm1355_vm8, %v3147_v26 }
 0x525   : > { %3517 = vrot.lane.b32.xlu1 %v6232_v27, %s4242_s15  ;;  %3519 = vrot.lane.b32.xlu0 %v7371_v35, %s4242_s15 }
 0x527   : > { %v3113_v4 = vpop.permute.xlu1 %3112  ;;  %v3115_v7 = vpop.permute.xlu0 %3114 }
 0x528   : > { %3208 = vst.msk [vmem:[#allocation3] sm:$0xff] %vm1355_vm8, %v3113_v4  ;;  %3209 = vst.msk [vmem:[#allocation3 + $0x8] sm:$0xff] %vm1355_vm8, %v3115_v7 }
 0x529   : > { %2889 = vrot.lane.b32.xlu1 %v6063_v32, %s4237_s10  ;;  %2891 = vrot.lane.b32.xlu0 %v6060_v53, %s4237_s10 }
 0x52b   : > { %v3275_v33 = vpop.permute.xlu1 %3274  ;;  %v3277_v58 = vpop.permute.xlu0 %3276 }
 0x52c   : > { %3354 = vst.msk [vmem:[#allocation3 + $0x80] sm:$0xff] %vm1486_vm9, %v3275_v33  ;;  %3355 = vst.msk [vmem:[#allocation3 + $0x88] sm:$0xff] %vm1486_vm9, %v3277_v58 }
 0x52d   : > { %3023 = vrot.lane.b32.xlu1 %v7367_v9, %s4238_s11  ;;  %3025 = vrot.lane.b32.xlu0 %v7368_v42, %s4238_s11 }
 0x52f   : > { %v3243_v0 = vpop.permute.xlu1 %3242  ;;  %v3245_v52 = vpop.permute.xlu0 %3244 }
 0x530   : > { %3338 = vst.msk [vmem:[#allocation3] sm:$0xff] %vm1486_vm9, %v3243_v0  ;;  %3339 = vst.msk [vmem:[#allocation3 + $0x8] sm:$0xff] %vm1486_vm9, %v3245_v52 }
 0x531   : > { %2991 = vrot.lane.b32.xlu1 %v7369_v13, %s4238_s11  ;;  %2993 = vrot.lane.b32.xlu0 %v7370_v23, %s4238_s11  ;;  %v7378_v13 = vld [vmem:[#allocation32_spill] sm:$0xff] }
 0x532   : > { %v7379_v23 = vld [vmem:[#allocation28_spill] sm:$0xff] }
 0x533   : > { %v3409_v32 = vpop.permute.xlu1 %3408  ;;  %v3411_v53 = vpop.permute.xlu0 %3410 }
 0x534   : > { %3488 = vst.msk [vmem:[#allocation3 + $0x80] sm:$0xff] %vm1621_vm10, %v3409_v32  ;;  %3489 = vst.msk [vmem:[#allocation3 + $0x88] sm:$0xff] %vm1621_vm10, %v3411_v53 }
 0x535   : > { %3156 = vrot.lane.b32.xlu1 %v6340_v62, %s4239_s12  ;;  %3158 = vrot.lane.b32.xlu0 %v6337_v34, %s4239_s12 }
 0x537   : > { %v3377_v63 = vpop.permute.xlu1 %3376  ;;  %v3379_v46 = vpop.permute.xlu0 %3378 }
 0x538   : > { %3472 = vst.msk [vmem:[#allocation3] sm:$0xff] %vm1621_vm10, %v3377_v63  ;;  %3473 = vst.msk [vmem:[#allocation3 + $0x8] sm:$0xff] %vm1621_vm10, %v3379_v46 }
 0x539   : > { %3124 = vrot.lane.b32.xlu1 %v6232_v27, %s4239_s12  ;;  %3126 = vrot.lane.b32.xlu0 %v7371_v35, %s4239_s12 }
 0x53b   : > { %v3542_v54 = vpop.permute.xlu1 %3541  ;;  %v3544_v55 = vpop.permute.xlu0 %3543 }
 0x53c   : > { %3621 = vst.msk [vmem:[#allocation3 + $0x80] sm:$0xff] %vm1755_vm11, %v3542_v54  ;;  %3622 = vst.msk [vmem:[#allocation3 + $0x88] sm:$0xff] %vm1755_vm11, %v3544_v55  ;;  %v7380_v54 = vld [vmem:[#allocation47_spill] sm:$0xff]  ;;  %v7381_v55 = vld [vmem:[#allocation46_spill] sm:$0xff] }
 0x53d   : > { %3286 = vrot.lane.b32.xlu1 %v6094_v21, %s4240_s13  ;;  %3288 = vrot.lane.b32.xlu0 %v6091_v60, %s4240_s13 }
 0x53f   : > { %v3510_v62 = vpop.permute.xlu1 %3509  ;;  %v3512_v34 = vpop.permute.xlu0 %3511 }
 0x540   : > { %3605 = vst.msk [vmem:[#allocation3] sm:$0xff] %vm1755_vm11, %v3510_v62  ;;  %3606 = vst.msk [vmem:[#allocation3 + $0x8] sm:$0xff] %vm1755_vm11, %v3512_v34 }
 0x541   : > { %3254 = vrot.lane.b32.xlu1 %v5862_v19, %s4240_s13  ;;  %3256 = vrot.lane.b32.xlu0 %v5859_v37, %s4240_s13  ;;  %v7374_v19 = vld [vmem:[#allocation45_spill] sm:$0xff]  ;;  %v7375_v37 = vld [vmem:[#allocation44_spill] sm:$0xff] }
 0x543   : > { %v2882_v27 = vpop.permute.xlu1 %2881  ;;  %v2884_v22 = vpop.permute.xlu0 %2883  ;;  %v3653_v48 = vld [vmem:[#allocation3 + $0x80] sm:$0xff]  ;;  %v3654_v29 = vld [vmem:[#allocation3 + $0x88] sm:$0xff] }
 0x544   : > { %2959 = vst.msk [vmem:[#allocation3 + $0x90] sm:$0xff] %vm1086_vm6, %v2882_v27  ;;  %2960 = vst.msk [vmem:[#allocation3 + $0x98] sm:$0xff] %vm1086_vm6, %v2884_v22  ;;  %v4154_v51 = vpack.c.bf16 %v3654_v29, %v3653_v48  ;;  %v7382_v22 = vld [vmem:[#allocation8_spill] sm:$0xff] }
 0x545   : > { %3420 = vrot.lane.b32.xlu1 %v7374_v19, %s4241_s14  ;;  %3422 = vrot.lane.b32.xlu0 %v7375_v37, %s4241_s14  ;;  %v7383_v48 = vld [vmem:[#allocation24_spill] sm:$0xff] }
 0x546   : > { %4156 = vmatprep.subr.msk.bf16.mxu1 %vm6669_vm13, %v4154_v51 }
 0x547   : > { %v3016_v5 = vpop.permute.xlu1 %3015  ;;  %v3018_v56 = vpop.permute.xlu0 %3017  ;;  %v3637_v14 = vld [vmem:[#allocation3] sm:$0xff]  ;;  %v3638_v36 = vld [vmem:[#allocation3 + $0x8] sm:$0xff] }
 0x548   : > { %3093 = vst.msk [vmem:[#allocation3 + $0x90] sm:$0xff] %vm1221_vm7, %v3016_v5  ;;  %3094 = vst.msk [vmem:[#allocation3 + $0x98] sm:$0xff] %vm1221_vm7, %v3018_v56  ;;  %v4157_v40 = vpack.c.bf16 %v3638_v36, %v3637_v14  ;;  %v7384_v5 = vld [vmem:[#allocation9_spill] sm:$0xff] }
 0x549   : > { %3388 = vrot.lane.b32.xlu1 %v7376_v16, %s4241_s14  ;;  %3390 = vrot.lane.b32.xlu0 %v7377_v12, %s4241_s14  ;;  %v7385_v56 = vld [vmem:[#allocation33_spill] sm:$0xff] }
 0x54a   : > { %4159 = vmatpush3.bf16.xpose.msk.msra.mxu1 %vm6669_vm13, %v4157_v40 }
 0x54b   : > { %v2984_v9 = vpop.permute.xlu1 %2983  ;;  %v2986_v42 = vpop.permute.xlu0 %2985 }
 0x54c   : > { %3077 = vst.msk [vmem:[#allocation3 + $0x10] sm:$0xff] %vm1221_vm7, %v2984_v9  ;;  %3078 = vst.msk [vmem:[#allocation3 + $0x18] sm:$0xff] %vm1221_vm7, %v2986_v42 }
 0x54d   : > { %3553 = vrot.lane.b32.xlu1 %v6357_v38, %s4242_s15  ;;  %3555 = vrot.lane.b32.xlu0 %v6354_v2, %s4242_s15 }
 0x54f   : > { %v3149_v8 = vpop.permute.xlu1 %3148  ;;  %v3151_v43 = vpop.permute.xlu0 %3150 }
 0x550   : > { %3226 = vst.msk [vmem:[#allocation3 + $0x90] sm:$0xff] %vm1355_vm8, %v3149_v8  ;;  %3227 = vst.msk [vmem:[#allocation3 + $0x98] sm:$0xff] %vm1355_vm8, %v3151_v43 }
 0x551   : > { %3521 = vrot.lane.b32.xlu1 %v7378_v13, %s4242_s15  ;;  %3523 = vrot.lane.b32.xlu0 %v7379_v23, %s4242_s15 }
 0x553   : > { %v3117_v18 = vpop.permute.xlu1 %3116  ;;  %v3119_v1 = vpop.permute.xlu0 %3118 }
 0x554   : > { %3210 = vst.msk [vmem:[#allocation3 + $0x10] sm:$0xff] %vm1355_vm8, %v3117_v18  ;;  %3211 = vst.msk [vmem:[#allocation3 + $0x18] sm:$0xff] %vm1355_vm8, %v3119_v1 }
 0x555   : > { %2893 = vrot.lane.b32.xlu1 %v6094_v21, %s4237_s10  ;;  %2895 = vrot.lane.b32.xlu0 %v6091_v60, %s4237_s10 }
 0x557   : > { %v3279_v61 = vpop.permute.xlu1 %3278  ;;  %v3281_v26 = vpop.permute.xlu0 %3280 }
 0x558   : > { %3356 = vst.msk [vmem:[#allocation3 + $0x90] sm:$0xff] %vm1486_vm9, %v3279_v61  ;;  %3357 = vst.msk [vmem:[#allocation3 + $0x98] sm:$0xff] %vm1486_vm9, %v3281_v26 }
 0x559   : > { %3027 = vrot.lane.b32.xlu1 %v7374_v19, %s4238_s11  ;;  %3029 = vrot.lane.b32.xlu0 %v7375_v37, %s4238_s11 }
 0x55b   : > { %v3247_v35 = vpop.permute.xlu1 %3246  ;;  %v3249_v4 = vpop.permute.xlu0 %3248 }
 0x55c   : > { %3340 = vst.msk [vmem:[#allocation3 + $0x10] sm:$0xff] %vm1486_vm9, %v3247_v35  ;;  %3341 = vst.msk [vmem:[#allocation3 + $0x18] sm:$0xff] %vm1486_vm9, %v3249_v4  ;;  %v7386_v35 = vld [vmem:[#allocation15_spill] sm:$0xff]  ;;  %v7387_v4 = vld [vmem:[#allocation12_spill] sm:$0xff] }
 0x55d   : > { %2995 = vrot.lane.b32.xlu1 %v7376_v16, %s4238_s11  ;;  %2997 = vrot.lane.b32.xlu0 %v7377_v12, %s4238_s11 }
 0x55f   : > { %v3413_v21 = vpop.permute.xlu1 %3412  ;;  %v3415_v60 = vpop.permute.xlu0 %3414 }
 0x560   : > { %3490 = vst.msk [vmem:[#allocation3 + $0x90] sm:$0xff] %vm1621_vm10, %v3413_v21  ;;  %3491 = vst.msk [vmem:[#allocation3 + $0x98] sm:$0xff] %vm1621_vm10, %v3415_v60 }
 0x561   : > { %3160 = vrot.lane.b32.xlu1 %v6357_v38, %s4239_s12  ;;  %3162 = vrot.lane.b32.xlu0 %v6354_v2, %s4239_s12 }
 0x563   : > { %v3381_v7 = vpop.permute.xlu1 %3380  ;;  %v3383_v33 = vpop.permute.xlu0 %3382 }
 0x564   : > { %3474 = vst.msk [vmem:[#allocation3 + $0x10] sm:$0xff] %vm1621_vm10, %v3381_v7  ;;  %3475 = vst.msk [vmem:[#allocation3 + $0x18] sm:$0xff] %vm1621_vm10, %v3383_v33  ;;  %v7388_v33 = vld [vmem:[#allocation29_spill] sm:$0xff] }
 0x565   : > { %3128 = vrot.lane.b32.xlu1 %v7378_v13, %s4239_s12  ;;  %3130 = vrot.lane.b32.xlu0 %v7379_v23, %s4239_s12 }
 0x567   : > { %v3546_v58 = vpop.permute.xlu1 %3545  ;;  %v3548_v0 = vpop.permute.xlu0 %3547 }
 0x568   : > { %3623 = vst.msk [vmem:[#allocation3 + $0x90] sm:$0xff] %vm1755_vm11, %v3546_v58  ;;  %3624 = vst.msk [vmem:[#allocation3 + $0x98] sm:$0xff] %vm1755_vm11, %v3548_v0  ;;  %v7389_v58 = vld [vmem:[#allocation27_spill] sm:$0xff] }
 0x569   : > { %3290 = vrot.lane.b32.xlu1 %v6127_v6, %s4240_s13  ;;  %3292 = vrot.lane.b32.xlu0 %v6124_v44, %s4240_s13 }
 0x56b   : > { %v3514_v2 = vpop.permute.xlu1 %3513  ;;  %v3516_v38 = vpop.permute.xlu0 %3515 }
 0x56c   : > { %3607 = vst.msk [vmem:[#allocation3 + $0x10] sm:$0xff] %vm1755_vm11, %v3514_v2  ;;  %3608 = vst.msk [vmem:[#allocation3 + $0x18] sm:$0xff] %vm1755_vm11, %v3516_v38 }
 0x56d   : > { %3258 = vrot.lane.b32.xlu1 %v5889_v47, %s4240_s13  ;;  %3260 = vrot.lane.b32.xlu0 %v5886_v31, %s4240_s13 }
 0x56f   : > { %v2886_v52 = vpop.permute.xlu1 %2885  ;;  %v2888_v32 = vpop.permute.xlu0 %2887  ;;  %v3655_v53 = vld [vmem:[#allocation3 + $0x90] sm:$0xff]  ;;  %v3656_v63 = vld [vmem:[#allocation3 + $0x98] sm:$0xff] }
 0x570   : > { %2961 = vst.msk [vmem:[#allocation3 + $0xa0] sm:$0xff] %vm1086_vm6, %v2886_v52  ;;  %2962 = vst.msk [vmem:[#allocation3 + $0xa8] sm:$0xff] %vm1086_vm6, %v2888_v32  ;;  %v4160_v46 = vpack.c.bf16 %v3656_v63, %v3655_v53  ;;  %v7390_v32 = vld [vmem:[#allocation40_spill] sm:$0xff] }
 0x571   : > { %3424 = vrot.lane.b32.xlu1 %v7380_v54, %s4241_s14  ;;  %3426 = vrot.lane.b32.xlu0 %v7381_v55, %s4241_s14  ;;  %v7391_v53 = vld [vmem:[#allocation36_spill] sm:$0xff] }
 0x572   : > { %4162 = vmatprep.subr.msk.bf16.mxu1 %vm6669_vm13, %v4160_v46 }
 0x573   : > { %v3020_v47 = vpop.permute.xlu1 %3019  ;;  %v3022_v31 = vpop.permute.xlu0 %3021  ;;  %v3639_v62 = vld [vmem:[#allocation3 + $0x10] sm:$0xff]  ;;  %v3640_v34 = vld [vmem:[#allocation3 + $0x18] sm:$0xff] }
 0x574   : > { %3095 = vst.msk [vmem:[#allocation3 + $0xa0] sm:$0xff] %vm1221_vm7, %v3020_v47  ;;  %3096 = vst.msk [vmem:[#allocation3 + $0xa8] sm:$0xff] %vm1221_vm7, %v3022_v31  ;;  %v4163_v27 = vpack.c.bf16 %v3640_v34, %v3639_v62 }
 0x575   : > { %3392 = vrot.lane.b32.xlu1 %v7382_v22, %s4241_s14  ;;  %3394 = vrot.lane.b32.xlu0 %v7383_v48, %s4241_s14 }
 0x576   : > { %4165 = vmatpush3.bf16.xpose.msk.msra.mxu1 %vm6669_vm13, %v4163_v27 }
 0x577   : > { %v2988_v29 = vpop.permute.xlu1 %2987  ;;  %v2990_v51 = vpop.permute.xlu0 %2989 }
 0x578   : > { %3079 = vst.msk [vmem:[#allocation3 + $0x20] sm:$0xff] %vm1221_vm7, %v2988_v29  ;;  %3080 = vst.msk [vmem:[#allocation3 + $0x28] sm:$0xff] %vm1221_vm7, %v2990_v51 }
 0x579   : > { %3557 = vrot.lane.b32.xlu1 %v6368_v59, %s4242_s15  ;;  %3559 = vrot.lane.b32.xlu0 %v6365_v11, %s4242_s15 }
 0x57b   : > { %v3153_v19 = vpop.permute.xlu1 %3152  ;;  %v3155_v37 = vpop.permute.xlu0 %3154 }
 0x57c   : > { %3228 = vst.msk [vmem:[#allocation3 + $0xa0] sm:$0xff] %vm1355_vm8, %v3153_v19  ;;  %3229 = vst.msk [vmem:[#allocation3 + $0xa8] sm:$0xff] %vm1355_vm8, %v3155_v37 }
 0x57d   : > { %3525 = vrot.lane.b32.xlu1 %v7384_v5, %s4242_s15  ;;  %3527 = vrot.lane.b32.xlu0 %v7385_v56, %s4242_s15 }
 0x57f   : > { %v3121_v14 = vpop.permute.xlu1 %3120  ;;  %v3123_v36 = vpop.permute.xlu0 %3122 }
 0x580   : > { %3212 = vst.msk [vmem:[#allocation3 + $0x20] sm:$0xff] %vm1355_vm8, %v3121_v14  ;;  %3213 = vst.msk [vmem:[#allocation3 + $0x28] sm:$0xff] %vm1355_vm8, %v3123_v36 }
 0x581   : > { %2897 = vrot.lane.b32.xlu1 %v6127_v6, %s4237_s10  ;;  %2899 = vrot.lane.b32.xlu0 %v6124_v44, %s4237_s10 }
 0x583   : > { %v3283_v40 = vpop.permute.xlu1 %3282  ;;  %v3285_v16 = vpop.permute.xlu0 %3284 }
 0x584   : > { %3358 = vst.msk [vmem:[#allocation3 + $0xa0] sm:$0xff] %vm1486_vm9, %v3283_v40  ;;  %3359 = vst.msk [vmem:[#allocation3 + $0xa8] sm:$0xff] %vm1486_vm9, %v3285_v16 }
 0x585   : > { %3031 = vrot.lane.b32.xlu1 %v7380_v54, %s4238_s11  ;;  %3033 = vrot.lane.b32.xlu0 %v7381_v55, %s4238_s11 }
 0x587   : > { %v3251_v12 = vpop.permute.xlu1 %3250  ;;  %v3253_v9 = vpop.permute.xlu0 %3252 }
 0x588   : > { %3342 = vst.msk [vmem:[#allocation3 + $0x20] sm:$0xff] %vm1486_vm9, %v3251_v12  ;;  %3343 = vst.msk [vmem:[#allocation3 + $0x28] sm:$0xff] %vm1486_vm9, %v3253_v9 }
 0x589   : > { %2999 = vrot.lane.b32.xlu1 %v7382_v22, %s4238_s11  ;;  %3001 = vrot.lane.b32.xlu0 %v7383_v48, %s4238_s11  ;;  %v2343_v48 = vld [vmem:[#allocation2 + $0x190] sm:$0x3] }
 0x58b   : > { %v3417_v6 = vpop.permute.xlu1 %3416  ;;  %v3419_v44 = vpop.permute.xlu0 %3418 }
 0x58c   : > { %3492 = vst.msk [vmem:[#allocation3 + $0xa0] sm:$0xff] %vm1621_vm10, %v3417_v6  ;;  %3493 = vst.msk [vmem:[#allocation3 + $0xa8] sm:$0xff] %vm1621_vm10, %v3419_v44 }
 0x58d   : > { %3164 = vrot.lane.b32.xlu1 %v6368_v59, %s4239_s12  ;;  %3166 = vrot.lane.b32.xlu0 %v6365_v11, %s4239_s12 }
 0x58f   : > { %v3385_v42 = vpop.permute.xlu1 %3384  ;;  %v3387_v8 = vpop.permute.xlu0 %3386 }
 0x590   : > { %3476 = vst.msk [vmem:[#allocation3 + $0x20] sm:$0xff] %vm1621_vm10, %v3385_v42  ;;  %3477 = vst.msk [vmem:[#allocation3 + $0x28] sm:$0xff] %vm1621_vm10, %v3387_v8 }
 0x591   : > { %3132 = vrot.lane.b32.xlu1 %v7384_v5, %s4239_s12  ;;  %3134 = vrot.lane.b32.xlu0 %v7385_v56, %s4239_s12  ;;  %v2977_v5 = vrot.slane %v2343_v48, 1 }
 0x593   : > { %v3550_v43 = vpop.permute.xlu1 %3549  ;;  %v3552_v13 = vpop.permute.xlu0 %3551 }
 0x594   : > { %3625 = vst.msk [vmem:[#allocation3 + $0xa0] sm:$0xff] %vm1755_vm11, %v3550_v43  ;;  %3626 = vst.msk [vmem:[#allocation3 + $0xa8] sm:$0xff] %vm1755_vm11, %v3552_v13  ;;  %v3110_v13 = vrot.slane %v2343_v48, 2 }
 0x595   : > { %3294 = vrot.lane.b32.xlu1 %v6155_v25, %s4240_s13  ;;  %3296 = vrot.lane.b32.xlu0 %v6152_v20, %s4240_s13 }
 0x597   : > { %v3518_v11 = vpop.permute.xlu1 %3517  ;;  %v3520_v59 = vpop.permute.xlu0 %3519 }
 0x598   : > { %3609 = vst.msk [vmem:[#allocation3 + $0x20] sm:$0xff] %vm1755_vm11, %v3518_v11  ;;  %3610 = vst.msk [vmem:[#allocation3 + $0x28] sm:$0xff] %vm1755_vm11, %v3520_v59  ;;  %v7392_v11 = vld [vmem:[#allocation20_spill] sm:$0xff]  ;;  %v7393_v59 = vld [vmem:[#allocation37_spill] sm:$0xff] }
 0x599   : > { %3262 = vrot.lane.b32.xlu1 %v5918_v28, %s4240_s13  ;;  %3264 = vrot.lane.b32.xlu0 %v5915_v10, %s4240_s13 }
 0x59b   : > { %v2890_v23 = vpop.permute.xlu1 %2889  ;;  %v2892_v18 = vpop.permute.xlu0 %2891  ;;  %v3657_v1 = vld [vmem:[#allocation3 + $0xa0] sm:$0xff]  ;;  %v3658_v61 = vld [vmem:[#allocation3 + $0xa8] sm:$0xff] }
 0x59c   : > { %2963 = vst.msk [vmem:[#allocation3 + $0xb0] sm:$0xff] %vm1086_vm6, %v2890_v23  ;;  %2964 = vst.msk [vmem:[#allocation3 + $0xb8] sm:$0xff] %vm1086_vm6, %v2892_v18  ;;  %v4166_v26 = vpack.c.bf16 %v3658_v61, %v3657_v1 }
 0x59d   : > { %3428 = vrot.lane.b32.xlu1 %v7386_v35, %s4241_s14  ;;  %3430 = vrot.lane.b32.xlu0 %v7387_v4, %s4241_s14 }
 0x59e   : > { %4168 = vmatprep.subr.msk.bf16.mxu1 %vm6669_vm13, %v4166_v26 }
 0x59f   : > { %v3024_v28 = vpop.permute.xlu1 %3023  ;;  %v3026_v10 = vpop.permute.xlu0 %3025  ;;  %v3641_v21 = vld [vmem:[#allocation3 + $0x20] sm:$0xff]  ;;  %v3642_v60 = vld [vmem:[#allocation3 + $0x28] sm:$0xff] }
 0x5a0   : > { %3097 = vst.msk [vmem:[#allocation3 + $0xb0] sm:$0xff] %vm1221_vm7, %v3024_v28  ;;  %3098 = vst.msk [vmem:[#allocation3 + $0xb8] sm:$0xff] %vm1221_vm7, %v3026_v10  ;;  %v4169_v7 = vpack.c.bf16 %v3642_v60, %v3641_v21  ;;  %v7395_v28 = vld [vmem:[#allocation10_spill] sm:$0xff] }
 0x5a1   : > { %3396 = vrot.lane.b32.xlu1 %v7388_v33, %s4241_s14  ;;  %3398 = vrot.lane.b32.xlu0 %v7389_v58, %s4241_s14 }
 0x5a2   : > { %4171 = vmatpush3.bf16.xpose.msk.msra.mxu1 %vm6669_vm13, %v4169_v7 }
 0x5a3   : > { %v2992_v0 = vpop.permute.xlu1 %2991  ;;  %v2994_v2 = vpop.permute.xlu0 %2993 }
 0x5a4   : > { %3081 = vst.msk [vmem:[#allocation3 + $0x30] sm:$0xff] %vm1221_vm7, %v2992_v0  ;;  %3082 = vst.msk [vmem:[#allocation3 + $0x38] sm:$0xff] %vm1221_vm7, %v2994_v2 }
 0x5a5   : > { %3561 = vrot.lane.b32.xlu1 %v6381_v15, %s4242_s15  ;;  %3563 = vrot.lane.b32.xlu0 %v6378_v57, %s4242_s15 }
 0x5a7   : > { %v3157_v38 = vpop.permute.xlu1 %3156  ;;  %v3159_v52 = vpop.permute.xlu0 %3158 }
 0x5a8   : > { %3230 = vst.msk [vmem:[#allocation3 + $0xb0] sm:$0xff] %vm1355_vm8, %v3157_v38  ;;  %3231 = vst.msk [vmem:[#allocation3 + $0xb8] sm:$0xff] %vm1355_vm8, %v3159_v52 }
 0x5a9   : > { %3529 = vrot.lane.b32.xlu1 %v7390_v32, %s4242_s15  ;;  %3531 = vrot.lane.b32.xlu0 %v7391_v53, %s4242_s15 }
 0x5ab   : > { %v3125_v63 = vpop.permute.xlu1 %3124  ;;  %v3127_v46 = vpop.permute.xlu0 %3126 }
 0x5ac   : > { %3214 = vst.msk [vmem:[#allocation3 + $0x30] sm:$0xff] %vm1355_vm8, %v3125_v63  ;;  %3215 = vst.msk [vmem:[#allocation3 + $0x38] sm:$0xff] %vm1355_vm8, %v3127_v46 }
 0x5ad   : > { %2901 = vrot.lane.b32.xlu1 %v6155_v25, %s4237_s10  ;;  %2903 = vrot.lane.b32.xlu0 %v6152_v20, %s4237_s10 }
 0x5af   : > { %v3287_v54 = vpop.permute.xlu1 %3286  ;;  %v3289_v55 = vpop.permute.xlu0 %3288 }
 0x5b0   : > { %3360 = vst.msk [vmem:[#allocation3 + $0xb0] sm:$0xff] %vm1486_vm9, %v3287_v54  ;;  %3361 = vst.msk [vmem:[#allocation3 + $0xb8] sm:$0xff] %vm1486_vm9, %v3289_v55  ;;  %v2346_v54 = vld [vmem:[#allocation2 + $0x1a8] sm:$0x3] }
 0x5b1   : > { %3035 = vrot.lane.b32.xlu1 %v7386_v35, %s4238_s11  ;;  %3037 = vrot.lane.b32.xlu0 %v7387_v4, %s4238_s11  ;;  %v7394_v4 = vld [vmem:[#allocation41_spill] sm:$0xff] }
 0x5b3   : > { %v3255_v47 = vpop.permute.xlu1 %3254  ;;  %v3257_v31 = vpop.permute.xlu0 %3256 }
 0x5b4   : > { %3344 = vst.msk [vmem:[#allocation3 + $0x30] sm:$0xff] %vm1486_vm9, %v3255_v47  ;;  %3345 = vst.msk [vmem:[#allocation3 + $0x38] sm:$0xff] %vm1486_vm9, %v3257_v31  ;;  %v3374_v31 = vrot.slane %v2346_v54, 1 }
 0x5b5   : > { %3003 = vrot.lane.b32.xlu1 %v7388_v33, %s4238_s11  ;;  %3005 = vrot.lane.b32.xlu0 %v7389_v58, %s4238_s11 }
 0x5b7   : > { %v3421_v20 = vpop.permute.xlu1 %3420  ;;  %v3423_v25 = vpop.permute.xlu0 %3422 }
 0x5b8   : > { %3494 = vst.msk [vmem:[#allocation3 + $0xb0] sm:$0xff] %vm1621_vm10, %v3421_v20  ;;  %3495 = vst.msk [vmem:[#allocation3 + $0xb8] sm:$0xff] %vm1621_vm10, %v3423_v25 }
 0x5b9   : > { %3168 = vrot.lane.b32.xlu1 %v6381_v15, %s4239_s12  ;;  %3170 = vrot.lane.b32.xlu0 %v6378_v57, %s4239_s12  ;;  %v2341_v15 = vld [vmem:[#allocation2 + $0x180] sm:$0xff]  ;;  %v2342_v57 = vld [vmem:[#allocation2 + $0x188] sm:$0xff] }
 0x5ba   : > { %v2974_v19 = vrot.slane %v2341_v15, 1  ;;  %v2975_v37 = vrot.slane %v2342_v57, 1  ;;  %v3107_v42 = vrot.slane %v2341_v15, 2  ;;  %v3108_v8 = vrot.slane %v2342_v57, 2 }
 0x5bb   : > { %v3389_v62 = vpop.permute.xlu1 %3388  ;;  %v3391_v34 = vpop.permute.xlu0 %3390 }
 0x5bc   : > { %3478 = vst.msk [vmem:[#allocation3 + $0x30] sm:$0xff] %vm1621_vm10, %v3389_v62  ;;  %3479 = vst.msk [vmem:[#allocation3 + $0x38] sm:$0xff] %vm1621_vm10, %v3391_v34  ;;  %v2976_v16 = vsel %vm568_vm2, %v2974_v19, %v2975_v37  ;;  %v2978_v12 = vsel %vm568_vm2, %v2975_v37, %v2977_v5  ;;  %v3109_v1 = vsel %vm778_vm4, %v3107_v42, %v3108_v8 }
 0x5bd   : > { %3136 = vrot.lane.b32.xlu1 %v7390_v32, %s4239_s12  ;;  %3138 = vrot.lane.b32.xlu0 %v7391_v53, %s4239_s12  ;;  %v3111_v61 = vsel %vm778_vm4, %v3108_v8, %v3110_v13  ;;  %v2344_v32 = vld [vmem:[#allocation2 + $0x198] sm:$0xff]  ;;  %v2345_v53 = vld [vmem:[#allocation2 + $0x1a0] sm:$0xff] }
 0x5be   : > { %v3371_v55 = vrot.slane %v2344_v32, 1  ;;  %v3372_v47 = vrot.slane %v2345_v53, 1 }
 0x5bf   : > { %v3554_v27 = vpop.permute.xlu1 %3553  ;;  %v3556_v22 = vpop.permute.xlu0 %3555 }
 0x5c0   : > { %3627 = vst.msk [vmem:[#allocation3 + $0xb0] sm:$0xff] %vm1755_vm11, %v3554_v27  ;;  %3628 = vst.msk [vmem:[#allocation3 + $0xb8] sm:$0xff] %vm1755_vm11, %v3556_v22  ;;  %v3373_v62 = vsel %vm568_vm2, %v3371_v55, %v3372_v47  ;;  %v3375_v34 = vsel %vm568_vm2, %v3372_v47, %v3374_v31 }
 0x5c1   : > { %3298 = vrot.lane.b32.xlu1 %v2341_v15, %s4240_s13  ;;  %3300 = vrot.lane.b32.xlu0 %v2342_v57, %s4240_s13 }
 0x5c3   : > { %v3522_v29 = vpop.permute.xlu1 %3521  ;;  %v3524_v51 = vpop.permute.xlu0 %3523 }
 0x5c4   : > { %3611 = vst.msk [vmem:[#allocation3 + $0x30] sm:$0xff] %vm1755_vm11, %v3522_v29  ;;  %3612 = vst.msk [vmem:[#allocation3 + $0x38] sm:$0xff] %vm1755_vm11, %v3524_v51  ;;  %v3505_v29 = vrot.slane %v2345_v53, 2 }
 0x5c5   : > { %3266 = vrot.lane.b32.xlu1 %v5947_v3, %s4240_s13  ;;  %3268 = vrot.lane.b32.xlu0 %v5944_v17, %s4240_s13 }
 0x5c7   : > { %v2894_v56 = vpop.permute.xlu1 %2893  ;;  %v2896_v14 = vpop.permute.xlu0 %2895  ;;  %v3659_v36 = vld [vmem:[#allocation3 + $0xb0] sm:$0xff]  ;;  %v3660_v40 = vld [vmem:[#allocation3 + $0xb8] sm:$0xff] }
 0x5c8   : > { %2965 = vst.msk [vmem:[#allocation3 + $0xc0] sm:$0xff] %vm1086_vm6, %v2894_v56  ;;  %2966 = vst.msk [vmem:[#allocation3 + $0xc8] sm:$0xff] %vm1086_vm6, %v2896_v14  ;;  %v4172_v9 = vpack.c.bf16 %v3660_v40, %v3659_v36 }
 0x5c9   : > { %3432 = vrot.lane.b32.xlu1 %v2976_v16, %s4241_s14  ;;  %3434 = vrot.lane.b32.xlu0 %v2978_v12, %s4241_s14 }
 0x5ca   : > { %4174 = vmatprep.subr.msk.bf16.mxu1 %vm6669_vm13, %v4172_v9 }
 0x5cb   : > { %v3028_v17 = vpop.permute.xlu1 %3027  ;;  %v3030_v3 = vpop.permute.xlu0 %3029  ;;  %v3643_v6 = vld [vmem:[#allocation3 + $0x30] sm:$0xff]  ;;  %v3644_v44 = vld [vmem:[#allocation3 + $0x38] sm:$0xff] }
 0x5cc   : > { %3099 = vst.msk [vmem:[#allocation3 + $0xc0] sm:$0xff] %vm1221_vm7, %v3028_v17  ;;  %3100 = vst.msk [vmem:[#allocation3 + $0xc8] sm:$0xff] %vm1221_vm7, %v3030_v3  ;;  %v4175_v43 = vpack.c.bf16 %v3644_v44, %v3643_v6  ;;  %v3840_v3 = vld [vmem:[%s7071_s5] sm:$0xff]  ;;  %v4243_v44 = vmov 0  }
 0x5cd   : > { %3400 = vrot.lane.b32.xlu1 %v7392_v11, %s4241_s14  ;;  %3402 = vrot.lane.b32.xlu0 %v7393_v59, %s4241_s14  ;;  %v3848_v6 = vld [vmem:[%s7072_s6] sm:$0xff] }
 0x5ce   : > { %4177 = vmatpush3.bf16.xpose.msk.msra.mxu1 %vm6669_vm13, %v4175_v43  ;;  %4220 = vset.pattern.permute.xlu1 %v4243_v44 }
 0x5cf   : > { %v2996_v23 = vpop.permute.xlu1 %2995  ;;  %v2998_v18 = vpop.permute.xlu0 %2997  ;;  %4221 = vset.pattern.permute.xlu0 %v4243_v44 }
 0x5d0   : > { %3083 = vst.msk [vmem:[#allocation3 + $0x40] sm:$0xff] %vm1221_vm7, %v2996_v23  ;;  %3084 = vst.msk [vmem:[#allocation3 + $0x48] sm:$0xff] %vm1221_vm7, %v2998_v18 }
 0x5d1   : > { %3565 = vrot.lane.b32.xlu1 %v3109_v1, %s4242_s15  ;;  %3567 = vrot.lane.b32.xlu0 %v3111_v61, %s4242_s15 }
 0x5d3   : > { %v3161_v26 = vpop.permute.xlu1 %3160  ;;  %v3163_v35 = vpop.permute.xlu0 %3162 }
 0x5d4   : > { %3232 = vst.msk [vmem:[#allocation3 + $0xc0] sm:$0xff] %vm1355_vm8, %v3161_v26  ;;  %3233 = vst.msk [vmem:[#allocation3 + $0xc8] sm:$0xff] %vm1355_vm8, %v3163_v35 }
 0x5d5   : > { %3533 = vrot.lane.b32.xlu1 %v7394_v4, %s4242_s15  ;;  %3535 = vrot.lane.b32.xlu0 %v7395_v28, %s4242_s15 }
 0x5d7   : > { %v3129_v10 = vpop.permute.xlu1 %3128  ;;  %v3131_v21 = vpop.permute.xlu0 %3130 }
 0x5d8   : > { %3216 = vst.msk [vmem:[#allocation3 + $0x40] sm:$0xff] %vm1355_vm8, %v3129_v10  ;;  %3217 = vst.msk [vmem:[#allocation3 + $0x48] sm:$0xff] %vm1355_vm8, %v3131_v21 }
 0x5d9   : > { %2905 = vrot.lane.b32.xlu1 %v2341_v15, %s4237_s10  ;;  %2907 = vrot.lane.b32.xlu0 %v2342_v57, %s4237_s10 }
 0x5db   : > { %v3291_v60 = vpop.permute.xlu1 %3290  ;;  %v3293_v7 = vpop.permute.xlu0 %3292 }
 0x5dc   : > { %3362 = vst.msk [vmem:[#allocation3 + $0xc0] sm:$0xff] %vm1486_vm9, %v3291_v60  ;;  %3363 = vst.msk [vmem:[#allocation3 + $0xc8] sm:$0xff] %vm1486_vm9, %v3293_v7 }
 0x5dd   : > { %3039 = vrot.lane.b32.xlu1 %v2976_v16, %s4238_s11  ;;  %3041 = vrot.lane.b32.xlu0 %v2978_v12, %s4238_s11 }
 0x5df   : > { %v3259_v33 = vpop.permute.xlu1 %3258  ;;  %v3261_v58 = vpop.permute.xlu0 %3260 }
 0x5e0   : > { %3346 = vst.msk [vmem:[#allocation3 + $0x40] sm:$0xff] %vm1486_vm9, %v3259_v33  ;;  %3347 = vst.msk [vmem:[#allocation3 + $0x48] sm:$0xff] %vm1486_vm9, %v3261_v58 }
 0x5e1   : > { %3007 = vrot.lane.b32.xlu1 %v7392_v11, %s4238_s11  ;;  %3009 = vrot.lane.b32.xlu0 %v7393_v59, %s4238_s11 }
 0x5e3   : > { %v3425_v0 = vpop.permute.xlu1 %3424  ;;  %v3427_v2 = vpop.permute.xlu0 %3426 }
 0x5e4   : > { %3496 = vst.msk [vmem:[#allocation3 + $0xc0] sm:$0xff] %vm1621_vm10, %v3425_v0  ;;  %3497 = vst.msk [vmem:[#allocation3 + $0xc8] sm:$0xff] %vm1621_vm10, %v3427_v2 }
 0x5e5   : > { %3172 = vrot.lane.b32.xlu1 %v3109_v1, %s4239_s12  ;;  %3174 = vrot.lane.b32.xlu0 %v3111_v61, %s4239_s12 }
 0x5e7   : > { %v3393_v38 = vpop.permute.xlu1 %3392  ;;  %v3395_v52 = vpop.permute.xlu0 %3394 }
 0x5e8   : > { %3480 = vst.msk [vmem:[#allocation3 + $0x40] sm:$0xff] %vm1621_vm10, %v3393_v38  ;;  %3481 = vst.msk [vmem:[#allocation3 + $0x48] sm:$0xff] %vm1621_vm10, %v3395_v52 }
 0x5e9   : > { %3140 = vrot.lane.b32.xlu1 %v7394_v4, %s4239_s12  ;;  %3142 = vrot.lane.b32.xlu0 %v7395_v28, %s4239_s12 }
 0x5eb   : > { %v3558_v63 = vpop.permute.xlu1 %3557  ;;  %v3560_v46 = vpop.permute.xlu0 %3559 }
 0x5ec   : > { %3629 = vst.msk [vmem:[#allocation3 + $0xc0] sm:$0xff] %vm1755_vm11, %v3558_v63  ;;  %3630 = vst.msk [vmem:[#allocation3 + $0xc8] sm:$0xff] %vm1755_vm11, %v3560_v46 }
 0x5ed   : > { %3302 = vrot.lane.b32.xlu1 %v2344_v32, %s4240_s13  ;;  %3304 = vrot.lane.b32.xlu0 %v2345_v53, %s4240_s13 }
 0x5ef   : > { %v3526_v20 = vpop.permute.xlu1 %3525  ;;  %v3528_v25 = vpop.permute.xlu0 %3527 }
 0x5f0   : > { %3613 = vst.msk [vmem:[#allocation3 + $0x40] sm:$0xff] %vm1755_vm11, %v3526_v20  ;;  %3614 = vst.msk [vmem:[#allocation3 + $0x48] sm:$0xff] %vm1755_vm11, %v3528_v25 }
 0x5f1   : > { %3270 = vrot.lane.b32.xlu1 %v5976_v50, %s4240_s13  ;;  %3272 = vrot.lane.b32.xlu0 %v5973_v45, %s4240_s13  ;;  %v3504_v50 = vrot.slane %v2344_v32, 2  ;;  %v3507_v45 = vrot.slane %v2346_v54, 2 }
 0x5f3   : > { %v2898_v27 = vpop.permute.xlu1 %2897  ;;  %v2900_v22 = vpop.permute.xlu0 %2899  ;;  %v3661_v15 = vld [vmem:[#allocation3 + $0xc0] sm:$0xff]  ;;  %v3662_v57 = vld [vmem:[#allocation3 + $0xc8] sm:$0xff]  ;;  %v3506_v14 = vsel %vm778_vm4, %v3504_v50, %v3505_v29  ;;  %v3508_v36 = vsel %vm778_vm4, %v3505_v29, %v3507_v45 }
 0x5f4   : > { %2967 = vst.msk [vmem:[#allocation3 + $0xd0] sm:$0xff] %vm1086_vm6, %v2898_v27  ;;  %2968 = vst.msk [vmem:[#allocation3 + $0xd8] sm:$0xff] %vm1086_vm6, %v2900_v22  ;;  %v4178_v48 = vpack.c.bf16 %v3662_v57, %v3661_v15 }
 0x5f5   : > { %3436 = vrot.lane.b32.xlu1 %v3373_v62, %s4241_s14  ;;  %3438 = vrot.lane.b32.xlu0 %v3375_v34, %s4241_s14 }
 0x5f6   : > { %4180 = vmatprep.subr.msk.bf16.mxu1 %vm6669_vm13, %v4178_v48 }
 0x5f7   : > { %v3032_v51 = vpop.permute.xlu1 %3031  ;;  %v3034_v19 = vpop.permute.xlu0 %3033  ;;  %v3645_v37 = vld [vmem:[#allocation3 + $0x40] sm:$0xff]  ;;  %v3646_v5 = vld [vmem:[#allocation3 + $0x48] sm:$0xff] }
 0x5f8   : > { %3101 = vst.msk [vmem:[#allocation3 + $0xd0] sm:$0xff] %vm1221_vm7, %v3032_v51  ;;  %3102 = vst.msk [vmem:[#allocation3 + $0xd8] sm:$0xff] %vm1221_vm7, %v3034_v19  ;;  %v4181_v56 = vpack.c.bf16 %v3646_v5, %v3645_v37 }
 0x5f9   : > { %3404 = vrot.lane.b32.xlu1 %v5989_v39, %s4241_s14  ;;  %3406 = vrot.lane.b32.xlu0 %v5986_v24, %s4241_s14  ;;  %v6968_v24 = vld [vmem:[%s7070_s4] sm:$0xff] }
 0x5fa   : > { %4183 = vmatpush3.bf16.xpose.msk.msra.mxu1 %vm6669_vm13, %v4181_v56  ;;  %4070 = vmatprep.mubr.msk.f32.mxu1 %vm1829_vm12, %v6968_v24 }
 0x5fb   : > { %v3000_v40 = vpop.permute.xlu1 %2999  ;;  %v3002_v16 = vpop.permute.xlu0 %3001 }
 0x5fc   : > { %3085 = vst.msk [vmem:[#allocation3 + $0x50] sm:$0xff] %vm1221_vm7, %v3000_v40  ;;  %3086 = vst.msk [vmem:[#allocation3 + $0x58] sm:$0xff] %vm1221_vm7, %v3002_v16 }
 0x5fd   : > { %3569 = vrot.lane.b32.xlu1 %v3506_v14, %s4242_s15  ;;  %3571 = vrot.lane.b32.xlu0 %v3508_v36, %s4242_s15 }
 0x5ff   : > { %v3165_v39 = vpop.permute.xlu1 %3164  ;;  %v3167_v12 = vpop.permute.xlu0 %3166 }
 0x600   : > { %3234 = vst.msk [vmem:[#allocation3 + $0xd0] sm:$0xff] %vm1355_vm8, %v3165_v39  ;;  %3235 = vst.msk [vmem:[#allocation3 + $0xd8] sm:$0xff] %vm1355_vm8, %v3167_v12 }
 0x601   : > { %3537 = vrot.lane.b32.xlu1 %v6301_v41, %s4242_s15  ;;  %3539 = vrot.lane.b32.xlu0 %v6298_v30, %s4242_s15 }
 0x603   : > { %v3133_v9 = vpop.permute.xlu1 %3132  ;;  %v3135_v17 = vpop.permute.xlu0 %3134 }
 0x604   : > { %3218 = vst.msk [vmem:[#allocation3 + $0x50] sm:$0xff] %vm1355_vm8, %v3133_v9  ;;  %3219 = vst.msk [vmem:[#allocation3 + $0x58] sm:$0xff] %vm1355_vm8, %v3135_v17 }
 0x605   : > { %3843 = vperm.xlu1 %4220, %v3840_v3   ;;  %3851 = vperm.xlu0 %4221, %v3848_v6  }
 0x607   : > { %v3295_v41 = vpop.permute.xlu1 %3294  ;;  %v3297_v42 = vpop.permute.xlu0 %3296 }
 0x608   : > { %3364 = vst.msk [vmem:[#allocation3 + $0xd0] sm:$0xff] %vm1486_vm9, %v3295_v41  ;;  %3365 = vst.msk [vmem:[#allocation3 + $0xd8] sm:$0xff] %vm1486_vm9, %v3297_v42 }
 0x60b   : > { %v3263_v30 = vpop.permute.xlu1 %3262  ;;  %v3265_v8 = vpop.permute.xlu0 %3264 }
 0x60c   : > { %3348 = vst.msk [vmem:[#allocation3 + $0x50] sm:$0xff] %vm1486_vm9, %v3263_v30  ;;  %3349 = vst.msk [vmem:[#allocation3 + $0x58] sm:$0xff] %vm1486_vm9, %v3265_v8 }
 0x60f   : > { %v3429_v43 = vpop.permute.xlu1 %3428  ;;  %v3431_v13 = vpop.permute.xlu0 %3430 }
 0x610   : > { %3498 = vst.msk [vmem:[#allocation3 + $0xd0] sm:$0xff] %vm1621_vm10, %v3429_v43  ;;  %3499 = vst.msk [vmem:[#allocation3 + $0xd8] sm:$0xff] %vm1621_vm10, %v3431_v13 }
 0x613   : > { %v3397_v11 = vpop.permute.xlu1 %3396  ;;  %v3399_v59 = vpop.permute.xlu0 %3398 }
 0x614   : > { %3482 = vst.msk [vmem:[#allocation3 + $0x50] sm:$0xff] %vm1621_vm10, %v3397_v11  ;;  %3483 = vst.msk [vmem:[#allocation3 + $0x58] sm:$0xff] %vm1621_vm10, %v3399_v59 }
 0x617   : > { %v3562_v23 = vpop.permute.xlu1 %3561  ;;  %v3564_v18 = vpop.permute.xlu0 %3563 }
 0x618   : > { %3631 = vst.msk [vmem:[#allocation3 + $0xd0] sm:$0xff] %vm1755_vm11, %v3562_v23  ;;  %3632 = vst.msk [vmem:[#allocation3 + $0xd8] sm:$0xff] %vm1755_vm11, %v3564_v18 }
 0x61b   : > { %v3530_v1 = vpop.permute.xlu1 %3529  ;;  %v3532_v61 = vpop.permute.xlu0 %3531 }
 0x61c   : > { %3615 = vst.msk [vmem:[#allocation3 + $0x50] sm:$0xff] %vm1755_vm11, %v3530_v1  ;;  %3616 = vst.msk [vmem:[#allocation3 + $0x58] sm:$0xff] %vm1755_vm11, %v3532_v61 }
 0x61f   : > { %v2902_v26 = vpop.permute.xlu1 %2901  ;;  %v2904_v35 = vpop.permute.xlu0 %2903  ;;  %v3663_v4 = vld [vmem:[#allocation3 + $0xd0] sm:$0xff]  ;;  %v3664_v28 = vld [vmem:[#allocation3 + $0xd8] sm:$0xff] }
 0x620   : > { %2969 = vst.msk [vmem:[#allocation3 + $0xe0] sm:$0xff] %vm1086_vm6, %v2902_v26  ;;  %2970 = vst.msk [vmem:[#allocation3 + $0xe8] sm:$0xff] %vm1086_vm6, %v2904_v35  ;;  %v4184_v10 = vpack.c.bf16 %v3664_v28, %v3663_v4 }
 0x622   : > { %4186 = vmatprep.subr.msk.bf16.mxu1 %vm6669_vm13, %v4184_v10 }
 0x623   : > { %v3036_v21 = vpop.permute.xlu1 %3035  ;;  %v3038_v60 = vpop.permute.xlu0 %3037  ;;  %v3647_v7 = vld [vmem:[#allocation3 + $0x50] sm:$0xff]  ;;  %v3648_v33 = vld [vmem:[#allocation3 + $0x58] sm:$0xff] }
 0x624   : > { %3103 = vst.msk [vmem:[#allocation3 + $0xe0] sm:$0xff] %vm1221_vm7, %v3036_v21  ;;  %3104 = vst.msk [vmem:[#allocation3 + $0xe8] sm:$0xff] %vm1221_vm7, %v3038_v60  ;;  %v4187_v58 = vpack.c.bf16 %v3648_v33, %v3647_v7  ;;  %v4224_v33 = vld [vmem:[%s4346_s30] sm:$0xff] }
 0x626   : > { %4189 = vmatpush3.bf16.xpose.msk.msra.mxu1 %vm6669_vm13, %v4187_v58 }
 0x627   : > { %v3004_v0 = vpop.permute.xlu1 %3003  ;;  %v3006_v2 = vpop.permute.xlu0 %3005 }
 0x628   : > { %3087 = vst.msk [vmem:[#allocation3 + $0x60] sm:$0xff] %vm1221_vm7, %v3004_v0  ;;  %3088 = vst.msk [vmem:[#allocation3 + $0x68] sm:$0xff] %vm1221_vm7, %v3006_v2 }
 0x62b   : > { %v3169_v38 = vpop.permute.xlu1 %3168  ;;  %v3171_v52 = vpop.permute.xlu0 %3170 }
 0x62c   : > { %3236 = vst.msk [vmem:[#allocation3 + $0xe0] sm:$0xff] %vm1355_vm8, %v3169_v38  ;;  %3237 = vst.msk [vmem:[#allocation3 + $0xe8] sm:$0xff] %vm1355_vm8, %v3171_v52 }
 0x62f   : > { %v3137_v32 = vpop.permute.xlu1 %3136  ;;  %v3139_v53 = vpop.permute.xlu0 %3138 }
 0x630   : > { %3220 = vst.msk [vmem:[#allocation3 + $0x60] sm:$0xff] %vm1355_vm8, %v3137_v32  ;;  %3221 = vst.msk [vmem:[#allocation3 + $0x68] sm:$0xff] %vm1355_vm8, %v3139_v53 }
 0x633   : > { %v3299_v63 = vpop.permute.xlu1 %3298  ;;  %v3301_v46 = vpop.permute.xlu0 %3300 }
 0x634   : > { %3366 = vst.msk [vmem:[#allocation3 + $0xe0] sm:$0xff] %vm1486_vm9, %v3299_v63  ;;  %3367 = vst.msk [vmem:[#allocation3 + $0xe8] sm:$0xff] %vm1486_vm9, %v3301_v46 }
 0x637   : > { %v3267_v54 = vpop.permute.xlu1 %3266  ;;  %v3269_v55 = vpop.permute.xlu0 %3268 }
 0x638   : > { %3350 = vst.msk [vmem:[#allocation3 + $0x60] sm:$0xff] %vm1486_vm9, %v3267_v54  ;;  %3351 = vst.msk [vmem:[#allocation3 + $0x68] sm:$0xff] %vm1486_vm9, %v3269_v55 }
 0x63b   : > { %v3433_v47 = vpop.permute.xlu1 %3432  ;;  %v3435_v31 = vpop.permute.xlu0 %3434 }
 0x63c   : > { %3500 = vst.msk [vmem:[#allocation3 + $0xe0] sm:$0xff] %vm1621_vm10, %v3433_v47  ;;  %3501 = vst.msk [vmem:[#allocation3 + $0xe8] sm:$0xff] %vm1621_vm10, %v3435_v31 }
 0x63f   : > { %v3401_v20 = vpop.permute.xlu1 %3400  ;;  %v3403_v25 = vpop.permute.xlu0 %3402 }
 0x640   : > { %3484 = vst.msk [vmem:[#allocation3 + $0x60] sm:$0xff] %vm1621_vm10, %v3401_v20  ;;  %3485 = vst.msk [vmem:[#allocation3 + $0x68] sm:$0xff] %vm1621_vm10, %v3403_v25 }
 0x643   : > { %v3566_v62 = vpop.permute.xlu1 %3565  ;;  %v3568_v34 = vpop.permute.xlu0 %3567 }
 0x644   : > { %3633 = vst.msk [vmem:[#allocation3 + $0xe0] sm:$0xff] %vm1755_vm11, %v3566_v62  ;;  %3634 = vst.msk [vmem:[#allocation3 + $0xe8] sm:$0xff] %vm1755_vm11, %v3568_v34 }
 0x647   : > { %v3534_v27 = vpop.permute.xlu1 %3533  ;;  %v3536_v22 = vpop.permute.xlu0 %3535 }
 0x648   : > { %3617 = vst.msk [vmem:[#allocation3 + $0x60] sm:$0xff] %vm1755_vm11, %v3534_v27  ;;  %3618 = vst.msk [vmem:[#allocation3 + $0x68] sm:$0xff] %vm1755_vm11, %v3536_v22 }
 0x64b   : > { %v2906_v15 = vpop.permute.xlu1 %2905  ;;  %v2908_v57 = vpop.permute.xlu0 %2907  ;;  %v3665_v48 = vld [vmem:[#allocation3 + $0xe0] sm:$0xff]  ;;  %v3666_v50 = vld [vmem:[#allocation3 + $0xe8] sm:$0xff] }
 0x64c   : > { %2971 = vst.msk [vmem:[#allocation3 + $0xf0] sm:$0xff] %vm1086_vm6, %v2906_v15  ;;  %2972 = vst.msk [vmem:[#allocation3 + $0xf8] sm:$0xff] %vm1086_vm6, %v2908_v57  ;;  %v4190_v29 = vpack.c.bf16 %v3666_v50, %v3665_v48 }
 0x64e   : > { %4192 = vmatprep.subr.msk.bf16.mxu1 %vm6669_vm13, %v4190_v29 }
 0x64f   : > { %v3040_v45 = vpop.permute.xlu1 %3039  ;;  %v3042_v51 = vpop.permute.xlu0 %3041  ;;  %v3649_v19 = vld [vmem:[#allocation3 + $0x60] sm:$0xff]  ;;  %v3650_v37 = vld [vmem:[#allocation3 + $0x68] sm:$0xff] }
 0x650   : > { %3105 = vst.msk [vmem:[#allocation3 + $0xf0] sm:$0xff] %vm1221_vm7, %v3040_v45  ;;  %3106 = vst.msk [vmem:[#allocation3 + $0xf8] sm:$0xff] %vm1221_vm7, %v3042_v51  ;;  %v4193_v5 = vpack.c.bf16 %v3650_v37, %v3649_v19 }
 0x652   : > { %4195 = vmatpush3.bf16.xpose.msk.msra.mxu1 %vm6669_vm13, %v4193_v5 }
 0x653   : > { %v3008_v56 = vpop.permute.xlu1 %3007  ;;  %v3010_v14 = vpop.permute.xlu0 %3009 }
 0x654   : > { %3089 = vst.msk [vmem:[#allocation3 + $0x70] sm:$0xff] %vm1221_vm7, %v3008_v56  ;;  %3090 = vst.msk [vmem:[#allocation3 + $0x78] sm:$0xff] %vm1221_vm7, %v3010_v14 }
 0x657   : > { %v3173_v36 = vpop.permute.xlu1 %3172  ;;  %v3175_v40 = vpop.permute.xlu0 %3174 }
 0x658   : > { %3238 = vst.msk [vmem:[#allocation3 + $0xf0] sm:$0xff] %vm1355_vm8, %v3173_v36  ;;  %3239 = vst.msk [vmem:[#allocation3 + $0xf8] sm:$0xff] %vm1355_vm8, %v3175_v40 }
 0x65b   : > { %v3141_v16 = vpop.permute.xlu1 %3140  ;;  %v3143_v39 = vpop.permute.xlu0 %3142 }
 0x65c   : > { %3222 = vst.msk [vmem:[#allocation3 + $0x70] sm:$0xff] %vm1355_vm8, %v3141_v16  ;;  %3223 = vst.msk [vmem:[#allocation3 + $0x78] sm:$0xff] %vm1355_vm8, %v3143_v39 }
 0x65f   : > { %v3303_v12 = vpop.permute.xlu1 %3302  ;;  %v3305_v9 = vpop.permute.xlu0 %3304 }
 0x660   : > { %3368 = vst.msk [vmem:[#allocation3 + $0xf0] sm:$0xff] %vm1486_vm9, %v3303_v12  ;;  %3369 = vst.msk [vmem:[#allocation3 + $0xf8] sm:$0xff] %vm1486_vm9, %v3305_v9 }
 0x663   : > { %v3271_v17 = vpop.permute.xlu1 %3270  ;;  %v3273_v3 = vpop.permute.xlu0 %3272 }
 0x664   : > { %3352 = vst.msk [vmem:[#allocation3 + $0x70] sm:$0xff] %vm1486_vm9, %v3271_v17  ;;  %3353 = vst.msk [vmem:[#allocation3 + $0x78] sm:$0xff] %vm1486_vm9, %v3273_v3 }
 0x667   : > { %v3437_v6 = vpop.permute.xlu1 %3436  ;;  %v3439_v44 = vpop.permute.xlu0 %3438 }
 0x668   : > { %3502 = vst.msk [vmem:[#allocation3 + $0xf0] sm:$0xff] %vm1621_vm10, %v3437_v6  ;;  %3503 = vst.msk [vmem:[#allocation3 + $0xf8] sm:$0xff] %vm1621_vm10, %v3439_v44 }
 0x66b   : > { %v3405_v41 = vpop.permute.xlu1 %3404  ;;  %v3407_v42 = vpop.permute.xlu0 %3406 }
 0x66c   : > { %3486 = vst.msk [vmem:[#allocation3 + $0x70] sm:$0xff] %vm1621_vm10, %v3405_v41  ;;  %3487 = vst.msk [vmem:[#allocation3 + $0x78] sm:$0xff] %vm1621_vm10, %v3407_v42 }
 0x66f   : > { %v3570_v30 = vpop.permute.xlu1 %3569  ;;  %v3572_v8 = vpop.permute.xlu0 %3571 }
 0x670   : > { %3635 = vst.msk [vmem:[#allocation3 + $0xf0] sm:$0xff] %vm1755_vm11, %v3570_v30  ;;  %3636 = vst.msk [vmem:[#allocation3 + $0xf8] sm:$0xff] %vm1755_vm11, %v3572_v8 }
 0x673   : > { %v3538_v43 = vpop.permute.xlu1 %3537  ;;  %v3540_v13 = vpop.permute.xlu0 %3539 }
 0x674   : > { %3619 = vst.msk [vmem:[#allocation3 + $0x70] sm:$0xff] %vm1755_vm11, %v3538_v43  ;;  %3620 = vst.msk [vmem:[#allocation3 + $0x78] sm:$0xff] %vm1755_vm11, %v3540_v13 }
 0x677   : > { %v3667_v11 = vld [vmem:[#allocation3 + $0xf0] sm:$0xff]  ;;  %v3668_v59 = vld [vmem:[#allocation3 + $0xf8] sm:$0xff] }
 0x678   : > { %v4196_v23 = vpack.c.bf16 %v3668_v59, %v3667_v11 }
 0x67a   : > { %4198 = vmatprep.subr.msk.bf16.mxu1 %vm6669_vm13, %v4196_v23 }
 0x67b   : > { %v3651_v18 = vld [vmem:[#allocation3 + $0x70] sm:$0xff]  ;;  %v3652_v1 = vld [vmem:[#allocation3 + $0x78] sm:$0xff] }
 0x67c   : > { %v4199_v61 = vpack.c.bf16 %v3652_v1, %v3651_v18 }
 0x67e   : > { %4201 = vmatpush3.bf16.xpose.msk.msra.mxu1 %vm6669_vm13, %v4199_v61 }
 0x684   : > { %v3844_v26 = vpop.permute.xlu1 %3843  ;;  %v3852_v4 = vpop.permute.xlu0 %3851 }
 0x685   : > { %4071 = vmatmul.mubr.msk.f32.vlgmr.msra.gmra.mrb[0].mxu1 %vm1829_vm12, %v6968_v24 }
 0x758   : > { %v3835_v35 = vpop.f32.mrb[0].mxu1 }
 0x759   : > { %v3846_v28 = vmul.f32 %v3844_v26, %v3835_v35  ;;  %v3837_v10 = vpop.f32.mrb[1].mxu1 }
 0x75a   : > { %v3847_v21 = vmul.f32 %v3844_v26, %v3837_v10 }
 0x75b   : > { %v3854_v60 = vadd.f32 %v3852_v4, %v3846_v28 }
 0x75c   : > { %v3855_v7 = vadd.f32 %v3852_v4, %v3847_v21 }
 0x75d   : > { %v3856_v58 = vadd.f32 %v4224_v33, %v3854_v60 }
 0x75e   : > { %v3857_v0 = vadd.f32 %v4225_v49, %v3855_v7 }
 0x75f   : > { %v3858_v2 = vmax.f32 %v3856_v58, 0.0 }
 0x760   : > { %v3859_v38 = vmax.f32 %v3857_v0, 0.0 }
 0x761   : > { %3860 = vst [vmem:[%s278_s20] sm:$0xff] %v3858_v2 }
 0x762   : > { %3861 = vst [vmem:[%s278_s20 + $0x8] sm:$0xff] %v3859_v38 }
 0x763 PF: > { %s17_s24 = sadd.s32 1, %s4232_s24  }
 0x764   : > { %p14_p4 = scmp.ge.s32.totalorder %s17_s24, 4  }
 0x766   :  { %16 = sbr.rel (!%p14_p4) target bundleno = 1 (0x1), region = 79 }

</bundles_post_ra>
